<compile_context>
chip_gen: v7x
topology: tpu7x:2x2x1
jax: 0.10.0
libtpu: 0.0.40
codegen_flags: <defaults>
</compile_context>

<pallas_src>
import jax
import jax.numpy as jnp
from jax.experimental import pallas as pl
from jax.experimental.pallas import tpu as pltpu

EPS = 1e-5
PADL = 8  # sublane-aligned column offset of the image inside the halo scratch


# ----------------------------------------------------------------------------
# Kernel 1: fused residual tower + combined policy/value 1x1 conv (BN folded)
# ----------------------------------------------------------------------------
def make_tower_kernel(N, H, W, C, cins, ds_flags):
    rows = N * H * W

    def kernel(*refs):
        # ---- parse refs: inputs, output, scratch ----------------------------
        x_ref = refs[0]
        idx = 1
        blocks = []
        for has_ds in ds_flags:
            cnt = 6 if has_ds else 4
            blocks.append(refs[idx:idx + cnt])
            idx += cnt
        hw_ref, hb_ref = refs[idx], refs[idx + 1]
        idx += 2
        head_out = refs[idx]
        pad_ref = refs[idx + 1]

        # Zero only the column window the taps ever read (cols PADL-1..PADL+W).
        # The halo border (rows 0 / H+1, cols PADL-1 / PADL+W) is never written
        # afterwards, so it stays zero == the conv's padding=1; every conv
        # rewrites the interior channels it reads just before reading them.
        pad_ref[:, :, PADL - 1:PADL + W + 1, :] = jnp.zeros(
            (N, H + 2, W + 2, pad_ref.shape[-1]), pad_ref.dtype)

        def conv3x3(a, w_ref, b_ref, cin, relu, residual=None):
            """3x3 same-conv (+folded BN) (+residual) (+ReLU), whole batch.

            a:      (N*H*W, cin) f32 activation, rows NHWC-flattened.
            w_ref:  (9*cin, C)   bf16 im2col weights (BN scale pre-folded),
                    K ordered (dh, dw, ci).
            b_ref:  (1, C)       f32 folded BN shift.
            """
            # aligned interior store (image at sublane-aligned col offset PADL)
            pad_ref[:, 1:H + 1, PADL:PADL + W, 0:cin] = a.reshape(N, H, W, cin)
            # build the im2col matrix: 9 shifted taps concatenated along lanes
            taps = []
            for dh in range(3):
                for dw in range(3):
                    c0 = PADL - 1 + dw
                    taps.append(pad_ref[:, dh:dh + H, c0:c0 + W,
                                        0:cin].reshape(rows, cin))
            col = jnp.concatenate(taps, axis=1).astype(jnp.bfloat16)
            # ONE MXU matmul per conv, f32 accumulate
            y = jnp.dot(col, w_ref[...],
                        preferred_element_type=jnp.float32) + b_ref[...]
            if residual is not None:
                y = y + residual
            if relu:
                y = jnp.maximum(y, 0.0)
            return y

        a = x_ref[...].reshape(rows, cins[0])
        for bi, has_ds in enumerate(ds_flags):
            prm = blocks[bi]
            out1 = conv3x3(a, prm[0], prm[1], cins[bi], relu=True)
            if has_ds:
                res = conv3x3(a, prm[4], prm[5], cins[bi], relu=False)
            else:
                res = a
            a = conv3x3(out1, prm[2], prm[3], C, relu=True, residual=res)

        # combined policy(4)+value(2) 1x1 head conv == one channel matmul
        head = jnp.maximum(
            jnp.dot(a.astype(jnp.bfloat16), hw_ref[...],
                    preferred_element_type=jnp.float32) + hb_ref[...], 0.0)
        head_out[...] = head.astype(head_out.dtype)

    return kernel


# ----------------------------------------------------------------------------
# Kernel 2: fused FC heads (policy FC + log_softmax, value FC1/FC2 + tanh)
# ----------------------------------------------------------------------------
def _heads_kernel(act_ref, pw_ref, pb_ref, v1w_ref, v1b_ref,
                  v2w_ref, v2b_ref, p_out, v_out):
    act = act_ref[...]                                   # (N, H*W*6) bf16
    logits = jnp.dot(act, pw_ref[...],
                     preferred_element_type=jnp.float32) + pb_ref[...]
    m = jnp.max(logits, axis=1, keepdims=True)
    z = logits - m
    p_out[...] = z - jnp.log(jnp.sum(jnp.exp(z), axis=1, keepdims=True))

    h = jnp.maximum(
        jnp.dot(act, v1w_ref[...], preferred_element_type=jnp.float32)
        + v1b_ref[...], 0.0)
    v = jnp.dot(h.astype(jnp.bfloat16), v2w_ref[...],
                preferred_element_type=jnp.float32) + v2b_ref[...]
    v_out[...] = jnp.tanh(v)


# ----------------------------------------------------------------------------
# Parameter init (deterministic, matching module __init__ shapes)
# ----------------------------------------------------------------------------
def _bn_affine(key, c):
    k1, k2, k3, k4 = jax.random.split(key, 4)
    gamma = 1.0 + 0.1 * jax.random.normal(k1, (c,), jnp.float32)
    beta = 0.1 * jax.random.normal(k2, (c,), jnp.float32)
    mean = 0.1 * jax.random.normal(k3, (c,), jnp.float32)
    var = 1.0 + 0.1 * jax.random.uniform(k4, (c,), jnp.float32)
    scale = gamma / jnp.sqrt(var + EPS)
    shift = beta - mean * scale
    return scale, shift


def init_params(key, num_layers, num_channels, n, action_size,
                input_channel_size):
    keys = iter(jax.random.split(key, 8 * num_layers + 16))
    params = {"res": []}
    cin = input_channel_size
    for _ in range(num_layers):
        blk = {}
        blk["w1"] = 0.05 * jax.random.normal(next(keys), (3, 3, cin, num_channels))
        blk["s1"], blk["b1"] = _bn_affine(next(keys), num_channels)
        blk["w2"] = 0.05 * jax.random.normal(next(keys),
                                             (3, 3, num_channels, num_channels))
        blk["s2"], blk["b2"] = _bn_affine(next(keys), num_channels)
        if cin != num_channels:  # downsample branch (conv3x3 + BN)
            blk["wd"] = 0.05 * jax.random.normal(next(keys),
                                                 (3, 3, cin, num_channels))
            blk["sd"], blk["bd"] = _bn_affine(next(keys), num_channels)
        params["res"].append(blk)
        cin = num_channels

    params["p_conv_w"] = 0.1 * jax.random.normal(next(keys), (num_channels, 4))
    params["p_s"], params["p_b"] = _bn_affine(next(keys), 4)
    params["p_fc_w"] = (jax.random.normal(next(keys), (4 * n * n, action_size))
                        / jnp.sqrt(4.0 * n * n))
    params["p_fc_b"] = 0.01 * jax.random.normal(next(keys), (action_size,))

    params["v_conv_w"] = 0.1 * jax.random.normal(next(keys), (num_channels, 2))
    params["v_s"], params["v_b"] = _bn_affine(next(keys), 2)
    params["v_fc1_w"] = (jax.random.normal(next(keys), (2 * n * n, 256))
                         / jnp.sqrt(2.0 * n * n))
    params["v_fc1_b"] = 0.01 * jax.random.normal(next(keys), (256,))
    params["v_fc2_w"] = jax.random.normal(next(keys), (256, 1)) / 16.0
    params["v_fc2_b"] = 0.01 * jax.random.normal(next(keys), (1,))
    return params


# ----------------------------------------------------------------------------
# One-time parameter folding:
#   BN -> conv weights/bias, conv weights -> im2col (9*cin, C) bf16,
#   policy/value head convs -> one (C, 6) matmul,
#   FC rows -> remapped to the kernel-1 (h, w, [p0..p3, v0, v1]) flatten order.
# ----------------------------------------------------------------------------
def fold_params(params, n):
    HW = n * n
    C = params["res"][0]["w1"].shape[-1]
    A = params["p_fc_w"].shape[1]
    f = {"res": [], "cins": [], "ds": [], "C": C, "A": A}
    for blk in params["res"]:
        cin = blk["w1"].shape[2]
        fb = {
            "w1": (blk["w1"] * blk["s1"]).reshape(9 * cin, C).astype(jnp.bfloat16),
            "b1": blk["b1"].reshape(1, C).astype(jnp.float32),
            "w2": (blk["w2"] * blk["s2"]).reshape(9 * C, C).astype(jnp.bfloat16),
            "b2": blk["b2"].reshape(1, C).astype(jnp.float32),
        }
        if "wd" in blk:
            fb["wd"] = (blk["wd"] * blk["sd"]).reshape(9 * cin, C).astype(jnp.bfloat16)
            fb["bd"] = blk["bd"].reshape(1, C).astype(jnp.float32)
        f["res"].append(fb)
        f["cins"].append(cin)
        f["ds"].append("wd" in blk)

    # combined 1x1 head conv (BN folded): channels [p0..p3, v0, v1]
    f["head_w"] = jnp.concatenate(
        [params["p_conv_w"] * params["p_s"],
         params["v_conv_w"] * params["v_s"]], axis=1).astype(jnp.bfloat16)
    f["head_b"] = jnp.concatenate(
        [params["p_b"], params["v_b"]]).reshape(1, 6).astype(jnp.float32)

    # FC weights remapped:
    #   kernel-1 output flattens as k = hw*6 + j, j in [p0..p3, v0, v1];
    #   PyTorch flatten order per head is (c, h, w).
    wp = params["p_fc_w"].reshape(4, HW, A)                       # [c, hw, a]
    wp_new = jnp.zeros((HW, 6, A), jnp.float32).at[:, 0:4, :].set(
        wp.transpose(1, 0, 2))
    f["p_fw"] = wp_new.reshape(HW * 6, A).astype(jnp.bfloat16)
    f["p_fb"] = params["p_fc_b"].reshape(1, A).astype(jnp.float32)

    wv = params["v_fc1_w"].reshape(2, HW, 256)                    # [c, hw, m]
    wv_new = jnp.zeros((HW, 6, 256), jnp.float32).at[:, 4:6, :].set(
        wv.transpose(1, 0, 2))
    f["v_f1w"] = wv_new.reshape(HW * 6, 256).astype(jnp.bfloat16)
    f["v_f1b"] = params["v_fc1_b"].reshape(1, 256).astype(jnp.float32)
    f["v_f2w"] = params["v_fc2_w"].astype(jnp.bfloat16)
    f["v_f2b"] = params["v_fc2_b"].reshape(1, 1).astype(jnp.float32)
    return f


# ----------------------------------------------------------------------------
# Forward pass: two pallas_calls (tower+heads-conv, then FC heads)
# ----------------------------------------------------------------------------
def forward(fused, x_nchw):
    x = jnp.transpose(x_nchw, (0, 2, 3, 1)).astype(jnp.float32)  # NCHW -> NHWC
    N, H, W, _ = x.shape
    C, A = fused["C"], fused["A"]
    cins, ds_flags = fused["cins"], fused["ds"]
    rows = N * H * W
    cpad = max([C] + list(cins))

    flat = [x]
    for fb in fused["res"]:
        flat += [fb["w1"], fb["b1"], fb["w2"], fb["b2"]]
        if "wd" in fb:
            flat += [fb["wd"], fb["bd"]]
    flat += [fused["head_w"], fused["head_b"]]

    conv_flops = 0
    for cin, has_ds in zip(cins, ds_flags):
        conv_flops += 2 * rows * 9 * cin * C
        conv_flops += 2 * rows * 9 * C * C
        if has_ds:
            conv_flops += 2 * rows * 9 * cin * C
    conv_flops += 2 * rows * C * 6
    tower_bytes = sum(int(t.size) * t.dtype.itemsize for t in flat) + rows * 6 * 2

    head = pl.pallas_call(
        make_tower_kernel(N, H, W, C, cins, ds_flags),
        out_shape=jax.ShapeDtypeStruct((rows, 6), jnp.bfloat16),
        scratch_shapes=[
            pltpu.VMEM((N, H + 2, PADL + W + 1, cpad), jnp.float32)],
        compiler_params=pltpu.CompilerParams(vmem_limit_bytes=64 * 1024 * 1024),
        cost_estimate=pl.CostEstimate(flops=int(conv_flops), transcendentals=0,
                                      bytes_accessed=int(tower_bytes)),
    )(*flat)

    # Free contiguous HBM reshape: (N*H*W, 6) -> (N, H*W*6).  The FC weights
    # were pre-remapped to this layout, so no transpose is needed anywhere.
    act = head.reshape(N, H * W * 6)

    fc_flops = 2 * N * (6 * H * W * A + 6 * H * W * 256 + 256)
    fc_bytes = (act.size * 2 + fused["p_fw"].size * 2 + fused["v_f1w"].size * 2
                + fused["v_f2w"].size * 2 + N * A * 4 + N * 4)
    p_out, v_out = pl.pallas_call(
        _heads_kernel,
        out_shape=(jax.ShapeDtypeStruct((N, A), jnp.float32),
                   jax.ShapeDtypeStruct((N, 1), jnp.float32)),
        compiler_params=pltpu.CompilerParams(vmem_limit_bytes=32 * 1024 * 1024),
        cost_estimate=pl.CostEstimate(flops=int(fc_flops),
                                      transcendentals=int(N * (A + 1)),
                                      bytes_accessed=int(fc_bytes)),
    )(act, fused["p_fw"], fused["p_fb"],
      fused["v_f1w"], fused["v_f1b"], fused["v_f2w"], fused["v_f2b"])
    return p_out, v_out


# ----------------------------------------------------------------------------
# Pure-JAX reference (for correctness check) — uses the RAW (unfolded) params
# ----------------------------------------------------------------------------
def reference_forward(params, x_nchw):
    x = jnp.transpose(x_nchw, (0, 2, 3, 1)).astype(jnp.float32)

    def conv(x, w):
        return jax.lax.conv_general_dilated(
            x, w, window_strides=(1, 1), padding="SAME",
            dimension_numbers=("NHWC", "HWIO", "NHWC"))

    for blk in params["res"]:
        o = jnp.maximum(conv(x, blk["w1"]) * blk["s1"] + blk["b1"], 0.0)
        if "wd" in blk:
            res = conv(x, blk["wd"]) * blk["sd"] + blk["bd"]
        else:
            res = x
        x = jnp.maximum(conv(o, blk["w2"]) * blk["s2"] + blk["b2"] + res, 0.0)

    N, H, W, C = x.shape
    xf = x.reshape(N * H * W, C)
    p = jnp.maximum(xf @ params["p_conv_w"] * params["p_s"] + params["p_b"], 0.0)
    p = p.reshape(N, H, W, 4).transpose(0, 3, 1, 2).reshape(N, -1)
    p = jax.nn.log_softmax(p @ params["p_fc_w"] + params["p_fc_b"], axis=1)
    v = jnp.maximum(xf @ params["v_conv_w"] * params["v_s"] + params["v_b"], 0.0)
    v = v.reshape(N, H, W, 2).transpose(0, 3, 1, 2).reshape(N, -1)
    v = jnp.maximum(v @ params["v_fc1_w"] + params["v_fc1_b"], 0.0)
    v = jnp.tanh(v @ params["v_fc2_w"] + params["v_fc2_b"])
    return p, v


if __name__ == "__main__":
    # Module hyper-params (small): num_layers=2, num_channels=32, n=8,
    # action_size=64, input_channel_size=4  -> input x: (2, 4, 8, 8) NCHW.
    num_layers, num_channels, n, action_size, in_ch = 2, 32, 8, 64, 4
    batch = 2

    root = jax.random.PRNGKey(0)
    k_param, k_x = jax.random.split(root)
    params = init_params(k_param, num_layers, num_channels, n, action_size, in_ch)
    fused = fold_params(params, n)                 # fold BN / remap FC once
    x = jax.random.normal(k_x, (batch, in_ch, n, n), jnp.float32)

    p, v = jax.block_until_ready(forward(fused, x))
    p_ref, v_ref = jax.block_until_ready(reference_forward(params, x))

    assert p.shape == (batch, action_size) and v.shape == (batch, 1)
    assert bool(jnp.all(jnp.isfinite(p))) and bool(jnp.all(jnp.isfinite(v)))
    # 3e-2 tolerance: weights/activations stored in bf16, all accumulation f32.
    assert bool(jnp.allclose(p, p_ref, rtol=3e-2, atol=3e-2)), "policy mismatch"
    assert bool(jnp.allclose(v, v_ref, rtol=3e-2, atol=3e-2)), "value mismatch"
    print("KERNEL_OK")
</pallas_src>

<mosaic_0001>
module attributes {stable_mosaic.version = 11 : i64} {
  func.func @kernel(%arg0: memref<2x8x8x4xf32, #tpu.memory_space<vmem>>, %arg1: memref<36x32xbf16, #tpu.memory_space<vmem>>, %arg2: memref<1x32xf32, #tpu.memory_space<vmem>>, %arg3: memref<288x32xbf16, #tpu.memory_space<vmem>>, %arg4: memref<1x32xf32, #tpu.memory_space<vmem>>, %arg5: memref<36x32xbf16, #tpu.memory_space<vmem>>, %arg6: memref<1x32xf32, #tpu.memory_space<vmem>>, %arg7: memref<288x32xbf16, #tpu.memory_space<vmem>>, %arg8: memref<1x32xf32, #tpu.memory_space<vmem>>, %arg9: memref<288x32xbf16, #tpu.memory_space<vmem>>, %arg10: memref<1x32xf32, #tpu.memory_space<vmem>>, %arg11: memref<32x6xbf16, #tpu.memory_space<vmem>>, %arg12: memref<1x6xf32, #tpu.memory_space<vmem>>, %arg13: memref<128x6xbf16, #tpu.memory_space<vmem>>, %arg14: memref<2x10x17x32xf32, #tpu.memory_space<vmem>>) attributes {dimension_semantics = [], scalar_prefetch = 0 : i64, scratch_operands = 1 : i64, tpu.core_type = #tpu.core_type<tc>} {
    %cst = arith.constant 0.000000e+00 : f32
    %0 = vector.broadcast %cst : f32 to vector<2x10x10x32xf32>
    %c0 = arith.constant 0 : index
    %c0_0 = arith.constant 0 : index
    %c7 = arith.constant 7 : index
    %c0_1 = arith.constant 0 : index
    %1 = vector.load %arg14[%c0, %c0_0, %c7, %c0_1] : memref<2x10x17x32xf32, #tpu.memory_space<vmem>>, vector<2x10x10x32xf32>
    tpu.vector_store %arg14[%c0, %c0_0, %c7, %c0_1], %0 {strides = array<i32>} : memref<2x10x17x32xf32, #tpu.memory_space<vmem>>, vector<2x10x10x32xf32>,
    %c0_2 = arith.constant 0 : index
    %c0_3 = arith.constant 0 : index
    %c0_4 = arith.constant 0 : index
    %c0_5 = arith.constant 0 : index
    %2 = vector.load %arg0[%c0_2, %c0_3, %c0_4, %c0_5] : memref<2x8x8x4xf32, #tpu.memory_space<vmem>>, vector<2x8x8x4xf32>
    %3 = vector.shape_cast %2 : vector<2x8x8x4xf32> to vector<128x4xf32>
    %4 = vector.shape_cast %3 : vector<128x4xf32> to vector<2x8x8x4xf32>
    %c0_6 = arith.constant 0 : index
    %c1 = arith.constant 1 : index
    %c8 = arith.constant 8 : index
    %c0_7 = arith.constant 0 : index
    %5 = vector.load %arg14[%c0_6, %c1, %c8, %c0_7] : memref<2x10x17x32xf32, #tpu.memory_space<vmem>>, vector<2x8x8x4xf32>
    tpu.vector_store %arg14[%c0_6, %c1, %c8, %c0_7], %4 {strides = array<i32>} : memref<2x10x17x32xf32, #tpu.memory_space<vmem>>, vector<2x8x8x4xf32>,
    %c0_8 = arith.constant 0 : index
    %c0_9 = arith.constant 0 : index
    %c7_10 = arith.constant 7 : index
    %c0_11 = arith.constant 0 : index
    %6 = vector.load %arg14[%c0_8, %c0_9, %c7_10, %c0_11] : memref<2x10x17x32xf32, #tpu.memory_space<vmem>>, vector<2x8x8x4xf32>
    %7 = vector.shape_cast %6 : vector<2x8x8x4xf32> to vector<128x4xf32>
    %c0_12 = arith.constant 0 : index
    %c0_13 = arith.constant 0 : index
    %c8_14 = arith.constant 8 : index
    %c0_15 = arith.constant 0 : index
    %8 = vector.load %arg14[%c0_12, %c0_13, %c8_14, %c0_15] : memref<2x10x17x32xf32, #tpu.memory_space<vmem>>, vector<2x8x8x4xf32>
    %9 = vector.shape_cast %8 : vector<2x8x8x4xf32> to vector<128x4xf32>
    %c0_16 = arith.constant 0 : index
    %c0_17 = arith.constant 0 : index
    %c9 = arith.constant 9 : index
    %c0_18 = arith.constant 0 : index
    %10 = vector.load %arg14[%c0_16, %c0_17, %c9, %c0_18] : memref<2x10x17x32xf32, #tpu.memory_space<vmem>>, vector<2x8x8x4xf32>
    %11 = vector.shape_cast %10 : vector<2x8x8x4xf32> to vector<128x4xf32>
    %c0_19 = arith.constant 0 : index
    %c1_20 = arith.constant 1 : index
    %c7_21 = arith.constant 7 : index
    %c0_22 = arith.constant 0 : index
    %12 = vector.load %arg14[%c0_19, %c1_20, %c7_21, %c0_22] : memref<2x10x17x32xf32, #tpu.memory_space<vmem>>, vector<2x8x8x4xf32>
    %13 = vector.shape_cast %12 : vector<2x8x8x4xf32> to vector<128x4xf32>
    %c0_23 = arith.constant 0 : index
    %c1_24 = arith.constant 1 : index
    %c8_25 = arith.constant 8 : index
    %c0_26 = arith.constant 0 : index
    %14 = vector.load %arg14[%c0_23, %c1_24, %c8_25, %c0_26] : memref<2x10x17x32xf32, #tpu.memory_space<vmem>>, vector<2x8x8x4xf32>
    %15 = vector.shape_cast %14 : vector<2x8x8x4xf32> to vector<128x4xf32>
    %c0_27 = arith.constant 0 : index
    %c1_28 = arith.constant 1 : index
    %c9_29 = arith.constant 9 : index
    %c0_30 = arith.constant 0 : index
    %16 = vector.load %arg14[%c0_27, %c1_28, %c9_29, %c0_30] : memref<2x10x17x32xf32, #tpu.memory_space<vmem>>, vector<2x8x8x4xf32>
    %17 = vector.shape_cast %16 : vector<2x8x8x4xf32> to vector<128x4xf32>
    %c0_31 = arith.constant 0 : index
    %c2 = arith.constant 2 : index
    %c7_32 = arith.constant 7 : index
    %c0_33 = arith.constant 0 : index
    %18 = vector.load %arg14[%c0_31, %c2, %c7_32, %c0_33] : memref<2x10x17x32xf32, #tpu.memory_space<vmem>>, vector<2x8x8x4xf32>
    %19 = vector.shape_cast %18 : vector<2x8x8x4xf32> to vector<128x4xf32>
    %c0_34 = arith.constant 0 : index
    %c2_35 = arith.constant 2 : index
    %c8_36 = arith.constant 8 : index
    %c0_37 = arith.constant 0 : index
    %20 = vector.load %arg14[%c0_34, %c2_35, %c8_36, %c0_37] : memref<2x10x17x32xf32, #tpu.memory_space<vmem>>, vector<2x8x8x4xf32>
    %21 = vector.shape_cast %20 : vector<2x8x8x4xf32> to vector<128x4xf32>
    %c0_38 = arith.constant 0 : index
    %c2_39 = arith.constant 2 : index
    %c9_40 = arith.constant 9 : index
    %c0_41 = arith.constant 0 : index
    %22 = vector.load %arg14[%c0_38, %c2_39, %c9_40, %c0_41] : memref<2x10x17x32xf32, #tpu.memory_space<vmem>>, vector<2x8x8x4xf32>
    %23 = vector.shape_cast %22 : vector<2x8x8x4xf32> to vector<128x4xf32>
    %24 = tpu.concatenate %7, %9, %11, %13, %15, %17, %19, %21, %23 in 1 : vector<128x4xf32>, vector<128x4xf32>, vector<128x4xf32>, vector<128x4xf32>, vector<128x4xf32>, vector<128x4xf32>, vector<128x4xf32>, vector<128x4xf32>, vector<128x4xf32> -> vector<128x36xf32>
    %25 = arith.truncf %24 : vector<128x36xf32> to vector<128x36xbf16>
    %c0_42 = arith.constant 0 : index
    %c0_43 = arith.constant 0 : index
    %26 = vector.load %arg1[%c0_42, %c0_43] : memref<36x32xbf16, #tpu.memory_space<vmem>>, vector<36x32xbf16>
    %cst_44 = arith.constant dense<0.000000e+00> : vector<128x32xf32>
    %27 = tpu.matmul %25, %26, %cst_44 {dimension_numbers = #tpu.dot_dimension_numbers<[1], [0], [0], [1], [0, 0, 1, 1], [], []>} : vector<128x36xbf16>, vector<36x32xbf16>, vector<128x32xf32> -> vector<128x32xf32>
    %c0_45 = arith.constant 0 : index
    %c0_46 = arith.constant 0 : index
    %28 = vector.load %arg2[%c0_45, %c0_46] : memref<1x32xf32, #tpu.memory_space<vmem>>, vector<1x32xf32>
    %29 = vector.broadcast %28 : vector<1x32xf32> to vector<128x32xf32>
    %30 = arith.addf %27, %29 : vector<128x32xf32>
    %cst_47 = arith.constant 0.000000e+00 : f32
    %31 = vector.broadcast %cst_47 : f32 to vector<128x32xf32>
    %32 = arith.maximumf %30, %31 : vector<128x32xf32>
    %33 = vector.shape_cast %3 : vector<128x4xf32> to vector<2x8x8x4xf32>
    %c0_48 = arith.constant 0 : index
    %c1_49 = arith.constant 1 : index
    %c8_50 = arith.constant 8 : index
    %c0_51 = arith.constant 0 : index
    %34 = vector.load %arg14[%c0_48, %c1_49, %c8_50, %c0_51] : memref<2x10x17x32xf32, #tpu.memory_space<vmem>>, vector<2x8x8x4xf32>
    tpu.vector_store %arg14[%c0_48, %c1_49, %c8_50, %c0_51], %33 {strides = array<i32>} : memref<2x10x17x32xf32, #tpu.memory_space<vmem>>, vector<2x8x8x4xf32>,
    %c0_52 = arith.constant 0 : index
    %c0_53 = arith.constant 0 : index
    %c7_54 = arith.constant 7 : index
    %c0_55 = arith.constant 0 : index
    %35 = vector.load %arg14[%c0_52, %c0_53, %c7_54, %c0_55] : memref<2x10x17x32xf32, #tpu.memory_space<vmem>>, vector<2x8x8x4xf32>
    %36 = vector.shape_cast %35 : vector<2x8x8x4xf32> to vector<128x4xf32>
    %c0_56 = arith.constant 0 : index
    %c0_57 = arith.constant 0 : index
    %c8_58 = arith.constant 8 : index
    %c0_59 = arith.constant 0 : index
    %37 = vector.load %arg14[%c0_56, %c0_57, %c8_58, %c0_59] : memref<2x10x17x32xf32, #tpu.memory_space<vmem>>, vector<2x8x8x4xf32>
    %38 = vector.shape_cast %37 : vector<2x8x8x4xf32> to vector<128x4xf32>
    %c0_60 = arith.constant 0 : index
    %c0_61 = arith.constant 0 : index
    %c9_62 = arith.constant 9 : index
    %c0_63 = arith.constant 0 : index
    %39 = vector.load %arg14[%c0_60, %c0_61, %c9_62, %c0_63] : memref<2x10x17x32xf32, #tpu.memory_space<vmem>>, vector<2x8x8x4xf32>
    %40 = vector.shape_cast %39 : vector<2x8x8x4xf32> to vector<128x4xf32>
    %c0_64 = arith.constant 0 : index
    %c1_65 = arith.constant 1 : index
    %c7_66 = arith.constant 7 : index
    %c0_67 = arith.constant 0 : index
    %41 = vector.load %arg14[%c0_64, %c1_65, %c7_66, %c0_67] : memref<2x10x17x32xf32, #tpu.memory_space<vmem>>, vector<2x8x8x4xf32>
    %42 = vector.shape_cast %41 : vector<2x8x8x4xf32> to vector<128x4xf32>
    %c0_68 = arith.constant 0 : index
    %c1_69 = arith.constant 1 : index
    %c8_70 = arith.constant 8 : index
    %c0_71 = arith.constant 0 : index
    %43 = vector.load %arg14[%c0_68, %c1_69, %c8_70, %c0_71] : memref<2x10x17x32xf32, #tpu.memory_space<vmem>>, vector<2x8x8x4xf32>
    %44 = vector.shape_cast %43 : vector<2x8x8x4xf32> to vector<128x4xf32>
    %c0_72 = arith.constant 0 : index
    %c1_73 = arith.constant 1 : index
    %c9_74 = arith.constant 9 : index
    %c0_75 = arith.constant 0 : index
    %45 = vector.load %arg14[%c0_72, %c1_73, %c9_74, %c0_75] : memref<2x10x17x32xf32, #tpu.memory_space<vmem>>, vector<2x8x8x4xf32>
    %46 = vector.shape_cast %45 : vector<2x8x8x4xf32> to vector<128x4xf32>
    %c0_76 = arith.constant 0 : index
    %c2_77 = arith.constant 2 : index
    %c7_78 = arith.constant 7 : index
    %c0_79 = arith.constant 0 : index
    %47 = vector.load %arg14[%c0_76, %c2_77, %c7_78, %c0_79] : memref<2x10x17x32xf32, #tpu.memory_space<vmem>>, vector<2x8x8x4xf32>
    %48 = vector.shape_cast %47 : vector<2x8x8x4xf32> to vector<128x4xf32>
    %c0_80 = arith.constant 0 : index
    %c2_81 = arith.constant 2 : index
    %c8_82 = arith.constant 8 : index
    %c0_83 = arith.constant 0 : index
    %49 = vector.load %arg14[%c0_80, %c2_81, %c8_82, %c0_83] : memref<2x10x17x32xf32, #tpu.memory_space<vmem>>, vector<2x8x8x4xf32>
    %50 = vector.shape_cast %49 : vector<2x8x8x4xf32> to vector<128x4xf32>
    %c0_84 = arith.constant 0 : index
    %c2_85 = arith.constant 2 : index
    %c9_86 = arith.constant 9 : index
    %c0_87 = arith.constant 0 : index
    %51 = vector.load %arg14[%c0_84, %c2_85, %c9_86, %c0_87] : memref<2x10x17x32xf32, #tpu.memory_space<vmem>>, vector<2x8x8x4xf32>
    %52 = vector.shape_cast %51 : vector<2x8x8x4xf32> to vector<128x4xf32>
    %53 = tpu.concatenate %36, %38, %40, %42, %44, %46, %48, %50, %52 in 1 : vector<128x4xf32>, vector<128x4xf32>, vector<128x4xf32>, vector<128x4xf32>, vector<128x4xf32>, vector<128x4xf32>, vector<128x4xf32>, vector<128x4xf32>, vector<128x4xf32> -> vector<128x36xf32>
    %54 = arith.truncf %53 : vector<128x36xf32> to vector<128x36xbf16>
    %c0_88 = arith.constant 0 : index
    %c0_89 = arith.constant 0 : index
    %55 = vector.load %arg5[%c0_88, %c0_89] : memref<36x32xbf16, #tpu.memory_space<vmem>>, vector<36x32xbf16>
    %cst_90 = arith.constant dense<0.000000e+00> : vector<128x32xf32>
    %56 = tpu.matmul %54, %55, %cst_90 {dimension_numbers = #tpu.dot_dimension_numbers<[1], [0], [0], [1], [0, 0, 1, 1], [], []>} : vector<128x36xbf16>, vector<36x32xbf16>, vector<128x32xf32> -> vector<128x32xf32>
    %c0_91 = arith.constant 0 : index
    %c0_92 = arith.constant 0 : index
    %57 = vector.load %arg6[%c0_91, %c0_92] : memref<1x32xf32, #tpu.memory_space<vmem>>, vector<1x32xf32>
    %58 = vector.broadcast %57 : vector<1x32xf32> to vector<128x32xf32>
    %59 = arith.addf %56, %58 : vector<128x32xf32>
    %60 = vector.shape_cast %32 : vector<128x32xf32> to vector<2x8x8x32xf32>
    %c0_93 = arith.constant 0 : index
    %c1_94 = arith.constant 1 : index
    %c8_95 = arith.constant 8 : index
    %c0_96 = arith.constant 0 : index
    %61 = vector.load %arg14[%c0_93, %c1_94, %c8_95, %c0_96] : memref<2x10x17x32xf32, #tpu.memory_space<vmem>>, vector<2x8x8x32xf32>
    tpu.vector_store %arg14[%c0_93, %c1_94, %c8_95, %c0_96], %60 {strides = array<i32>} : memref<2x10x17x32xf32, #tpu.memory_space<vmem>>, vector<2x8x8x32xf32>,
    %c0_97 = arith.constant 0 : index
    %c0_98 = arith.constant 0 : index
    %c7_99 = arith.constant 7 : index
    %c0_100 = arith.constant 0 : index
    %62 = vector.load %arg14[%c0_97, %c0_98, %c7_99, %c0_100] : memref<2x10x17x32xf32, #tpu.memory_space<vmem>>, vector<2x8x8x32xf32>
    %63 = vector.shape_cast %62 : vector<2x8x8x32xf32> to vector<128x32xf32>
    %c0_101 = arith.constant 0 : index
    %c0_102 = arith.constant 0 : index
    %c8_103 = arith.constant 8 : index
    %c0_104 = arith.constant 0 : index
    %64 = vector.load %arg14[%c0_101, %c0_102, %c8_103, %c0_104] : memref<2x10x17x32xf32, #tpu.memory_space<vmem>>, vector<2x8x8x32xf32>
    %65 = vector.shape_cast %64 : vector<2x8x8x32xf32> to vector<128x32xf32>
    %c0_105 = arith.constant 0 : index
    %c0_106 = arith.constant 0 : index
    %c9_107 = arith.constant 9 : index
    %c0_108 = arith.constant 0 : index
    %66 = vector.load %arg14[%c0_105, %c0_106, %c9_107, %c0_108] : memref<2x10x17x32xf32, #tpu.memory_space<vmem>>, vector<2x8x8x32xf32>
    %67 = vector.shape_cast %66 : vector<2x8x8x32xf32> to vector<128x32xf32>
    %c0_109 = arith.constant 0 : index
    %c1_110 = arith.constant 1 : index
    %c7_111 = arith.constant 7 : index
    %c0_112 = arith.constant 0 : index
    %68 = vector.load %arg14[%c0_109, %c1_110, %c7_111, %c0_112] : memref<2x10x17x32xf32, #tpu.memory_space<vmem>>, vector<2x8x8x32xf32>
    %69 = vector.shape_cast %68 : vector<2x8x8x32xf32> to vector<128x32xf32>
    %c0_113 = arith.constant 0 : index
    %c1_114 = arith.constant 1 : index
    %c8_115 = arith.constant 8 : index
    %c0_116 = arith.constant 0 : index
    %70 = vector.load %arg14[%c0_113, %c1_114, %c8_115, %c0_116] : memref<2x10x17x32xf32, #tpu.memory_space<vmem>>, vector<2x8x8x32xf32>
    %71 = vector.shape_cast %70 : vector<2x8x8x32xf32> to vector<128x32xf32>
    %c0_117 = arith.constant 0 : index
    %c1_118 = arith.constant 1 : index
    %c9_119 = arith.constant 9 : index
    %c0_120 = arith.constant 0 : index
    %72 = vector.load %arg14[%c0_117, %c1_118, %c9_119, %c0_120] : memref<2x10x17x32xf32, #tpu.memory_space<vmem>>, vector<2x8x8x32xf32>
    %73 = vector.shape_cast %72 : vector<2x8x8x32xf32> to vector<128x32xf32>
    %c0_121 = arith.constant 0 : index
    %c2_122 = arith.constant 2 : index
    %c7_123 = arith.constant 7 : index
    %c0_124 = arith.constant 0 : index
    %74 = vector.load %arg14[%c0_121, %c2_122, %c7_123, %c0_124] : memref<2x10x17x32xf32, #tpu.memory_space<vmem>>, vector<2x8x8x32xf32>
    %75 = vector.shape_cast %74 : vector<2x8x8x32xf32> to vector<128x32xf32>
    %c0_125 = arith.constant 0 : index
    %c2_126 = arith.constant 2 : index
    %c8_127 = arith.constant 8 : index
    %c0_128 = arith.constant 0 : index
    %76 = vector.load %arg14[%c0_125, %c2_126, %c8_127, %c0_128] : memref<2x10x17x32xf32, #tpu.memory_space<vmem>>, vector<2x8x8x32xf32>
    %77 = vector.shape_cast %76 : vector<2x8x8x32xf32> to vector<128x32xf32>
    %c0_129 = arith.constant 0 : index
    %c2_130 = arith.constant 2 : index
    %c9_131 = arith.constant 9 : index
    %c0_132 = arith.constant 0 : index
    %78 = vector.load %arg14[%c0_129, %c2_130, %c9_131, %c0_132] : memref<2x10x17x32xf32, #tpu.memory_space<vmem>>, vector<2x8x8x32xf32>
    %79 = vector.shape_cast %78 : vector<2x8x8x32xf32> to vector<128x32xf32>
    %80 = tpu.concatenate %63, %65, %67, %69, %71, %73, %75, %77, %79 in 1 : vector<128x32xf32>, vector<128x32xf32>, vector<128x32xf32>, vector<128x32xf32>, vector<128x32xf32>, vector<128x32xf32>, vector<128x32xf32>, vector<128x32xf32>, vector<128x32xf32> -> vector<128x288xf32>
    %81 = arith.truncf %80 : vector<128x288xf32> to vector<128x288xbf16>
    %c0_133 = arith.constant 0 : index
    %c0_134 = arith.constant 0 : index
    %82 = vector.load %arg3[%c0_133, %c0_134] : memref<288x32xbf16, #tpu.memory_space<vmem>>, vector<288x32xbf16>
    %cst_135 = arith.constant dense<0.000000e+00> : vector<128x32xf32>
    %83 = tpu.matmul %81, %82, %cst_135 {dimension_numbers = #tpu.dot_dimension_numbers<[1], [0], [0], [1], [0, 0, 1, 1], [], []>} : vector<128x288xbf16>, vector<288x32xbf16>, vector<128x32xf32> -> vector<128x32xf32>
    %c0_136 = arith.constant 0 : index
    %c0_137 = arith.constant 0 : index
    %84 = vector.load %arg4[%c0_136, %c0_137] : memref<1x32xf32, #tpu.memory_space<vmem>>, vector<1x32xf32>
    %85 = vector.broadcast %84 : vector<1x32xf32> to vector<128x32xf32>
    %86 = arith.addf %83, %85 : vector<128x32xf32>
    %87 = arith.addf %86, %59 : vector<128x32xf32>
    %cst_138 = arith.constant 0.000000e+00 : f32
    %88 = vector.broadcast %cst_138 : f32 to vector<128x32xf32>
    %89 = arith.maximumf %87, %88 : vector<128x32xf32>
    %90 = vector.shape_cast %89 : vector<128x32xf32> to vector<2x8x8x32xf32>
    %c0_139 = arith.constant 0 : index
    %c1_140 = arith.constant 1 : index
    %c8_141 = arith.constant 8 : index
    %c0_142 = arith.constant 0 : index
    %91 = vector.load %arg14[%c0_139, %c1_140, %c8_141, %c0_142] : memref<2x10x17x32xf32, #tpu.memory_space<vmem>>, vector<2x8x8x32xf32>
    tpu.vector_store %arg14[%c0_139, %c1_140, %c8_141, %c0_142], %90 {strides = array<i32>} : memref<2x10x17x32xf32, #tpu.memory_space<vmem>>, vector<2x8x8x32xf32>,
    %c0_143 = arith.constant 0 : index
    %c0_144 = arith.constant 0 : index
    %c7_145 = arith.constant 7 : index
    %c0_146 = arith.constant 0 : index
    %92 = vector.load %arg14[%c0_143, %c0_144, %c7_145, %c0_146] : memref<2x10x17x32xf32, #tpu.memory_space<vmem>>, vector<2x8x8x32xf32>
    %93 = vector.shape_cast %92 : vector<2x8x8x32xf32> to vector<128x32xf32>
    %c0_147 = arith.constant 0 : index
    %c0_148 = arith.constant 0 : index
    %c8_149 = arith.constant 8 : index
    %c0_150 = arith.constant 0 : index
    %94 = vector.load %arg14[%c0_147, %c0_148, %c8_149, %c0_150] : memref<2x10x17x32xf32, #tpu.memory_space<vmem>>, vector<2x8x8x32xf32>
    %95 = vector.shape_cast %94 : vector<2x8x8x32xf32> to vector<128x32xf32>
    %c0_151 = arith.constant 0 : index
    %c0_152 = arith.constant 0 : index
    %c9_153 = arith.constant 9 : index
    %c0_154 = arith.constant 0 : index
    %96 = vector.load %arg14[%c0_151, %c0_152, %c9_153, %c0_154] : memref<2x10x17x32xf32, #tpu.memory_space<vmem>>, vector<2x8x8x32xf32>
    %97 = vector.shape_cast %96 : vector<2x8x8x32xf32> to vector<128x32xf32>
    %c0_155 = arith.constant 0 : index
    %c1_156 = arith.constant 1 : index
    %c7_157 = arith.constant 7 : index
    %c0_158 = arith.constant 0 : index
    %98 = vector.load %arg14[%c0_155, %c1_156, %c7_157, %c0_158] : memref<2x10x17x32xf32, #tpu.memory_space<vmem>>, vector<2x8x8x32xf32>
    %99 = vector.shape_cast %98 : vector<2x8x8x32xf32> to vector<128x32xf32>
    %c0_159 = arith.constant 0 : index
    %c1_160 = arith.constant 1 : index
    %c8_161 = arith.constant 8 : index
    %c0_162 = arith.constant 0 : index
    %100 = vector.load %arg14[%c0_159, %c1_160, %c8_161, %c0_162] : memref<2x10x17x32xf32, #tpu.memory_space<vmem>>, vector<2x8x8x32xf32>
    %101 = vector.shape_cast %100 : vector<2x8x8x32xf32> to vector<128x32xf32>
    %c0_163 = arith.constant 0 : index
    %c1_164 = arith.constant 1 : index
    %c9_165 = arith.constant 9 : index
    %c0_166 = arith.constant 0 : index
    %102 = vector.load %arg14[%c0_163, %c1_164, %c9_165, %c0_166] : memref<2x10x17x32xf32, #tpu.memory_space<vmem>>, vector<2x8x8x32xf32>
    %103 = vector.shape_cast %102 : vector<2x8x8x32xf32> to vector<128x32xf32>
    %c0_167 = arith.constant 0 : index
    %c2_168 = arith.constant 2 : index
    %c7_169 = arith.constant 7 : index
    %c0_170 = arith.constant 0 : index
    %104 = vector.load %arg14[%c0_167, %c2_168, %c7_169, %c0_170] : memref<2x10x17x32xf32, #tpu.memory_space<vmem>>, vector<2x8x8x32xf32>
    %105 = vector.shape_cast %104 : vector<2x8x8x32xf32> to vector<128x32xf32>
    %c0_171 = arith.constant 0 : index
    %c2_172 = arith.constant 2 : index
    %c8_173 = arith.constant 8 : index
    %c0_174 = arith.constant 0 : index
    %106 = vector.load %arg14[%c0_171, %c2_172, %c8_173, %c0_174] : memref<2x10x17x32xf32, #tpu.memory_space<vmem>>, vector<2x8x8x32xf32>
    %107 = vector.shape_cast %106 : vector<2x8x8x32xf32> to vector<128x32xf32>
    %c0_175 = arith.constant 0 : index
    %c2_176 = arith.constant 2 : index
    %c9_177 = arith.constant 9 : index
    %c0_178 = arith.constant 0 : index
    %108 = vector.load %arg14[%c0_175, %c2_176, %c9_177, %c0_178] : memref<2x10x17x32xf32, #tpu.memory_space<vmem>>, vector<2x8x8x32xf32>
    %109 = vector.shape_cast %108 : vector<2x8x8x32xf32> to vector<128x32xf32>
    %110 = tpu.concatenate %93, %95, %97, %99, %101, %103, %105, %107, %109 in 1 : vector<128x32xf32>, vector<128x32xf32>, vector<128x32xf32>, vector<128x32xf32>, vector<128x32xf32>, vector<128x32xf32>, vector<128x32xf32>, vector<128x32xf32>, vector<128x32xf32> -> vector<128x288xf32>
    %111 = arith.truncf %110 : vector<128x288xf32> to vector<128x288xbf16>
    %c0_179 = arith.constant 0 : index
    %c0_180 = arith.constant 0 : index
    %112 = vector.load %arg7[%c0_179, %c0_180] : memref<288x32xbf16, #tpu.memory_space<vmem>>, vector<288x32xbf16>
    %cst_181 = arith.constant dense<0.000000e+00> : vector<128x32xf32>
    %113 = tpu.matmul %111, %112, %cst_181 {dimension_numbers = #tpu.dot_dimension_numbers<[1], [0], [0], [1], [0, 0, 1, 1], [], []>} : vector<128x288xbf16>, vector<288x32xbf16>, vector<128x32xf32> -> vector<128x32xf32>
    %c0_182 = arith.constant 0 : index
    %c0_183 = arith.constant 0 : index
    %114 = vector.load %arg8[%c0_182, %c0_183] : memref<1x32xf32, #tpu.memory_space<vmem>>, vector<1x32xf32>
    %115 = vector.broadcast %114 : vector<1x32xf32> to vector<128x32xf32>
    %116 = arith.addf %113, %115 : vector<128x32xf32>
    %cst_184 = arith.constant 0.000000e+00 : f32
    %117 = vector.broadcast %cst_184 : f32 to vector<128x32xf32>
    %118 = arith.maximumf %116, %117 : vector<128x32xf32>
    %119 = vector.shape_cast %118 : vector<128x32xf32> to vector<2x8x8x32xf32>
    %c0_185 = arith.constant 0 : index
    %c1_186 = arith.constant 1 : index
    %c8_187 = arith.constant 8 : index
    %c0_188 = arith.constant 0 : index
    %120 = vector.load %arg14[%c0_185, %c1_186, %c8_187, %c0_188] : memref<2x10x17x32xf32, #tpu.memory_space<vmem>>, vector<2x8x8x32xf32>
    tpu.vector_store %arg14[%c0_185, %c1_186, %c8_187, %c0_188], %119 {strides = array<i32>} : memref<2x10x17x32xf32, #tpu.memory_space<vmem>>, vector<2x8x8x32xf32>,
    %c0_189 = arith.constant 0 : index
    %c0_190 = arith.constant 0 : index
    %c7_191 = arith.constant 7 : index
    %c0_192 = arith.constant 0 : index
    %121 = vector.load %arg14[%c0_189, %c0_190, %c7_191, %c0_192] : memref<2x10x17x32xf32, #tpu.memory_space<vmem>>, vector<2x8x8x32xf32>
    %122 = vector.shape_cast %121 : vector<2x8x8x32xf32> to vector<128x32xf32>
    %c0_193 = arith.constant 0 : index
    %c0_194 = arith.constant 0 : index
    %c8_195 = arith.constant 8 : index
    %c0_196 = arith.constant 0 : index
    %123 = vector.load %arg14[%c0_193, %c0_194, %c8_195, %c0_196] : memref<2x10x17x32xf32, #tpu.memory_space<vmem>>, vector<2x8x8x32xf32>
    %124 = vector.shape_cast %123 : vector<2x8x8x32xf32> to vector<128x32xf32>
    %c0_197 = arith.constant 0 : index
    %c0_198 = arith.constant 0 : index
    %c9_199 = arith.constant 9 : index
    %c0_200 = arith.constant 0 : index
    %125 = vector.load %arg14[%c0_197, %c0_198, %c9_199, %c0_200] : memref<2x10x17x32xf32, #tpu.memory_space<vmem>>, vector<2x8x8x32xf32>
    %126 = vector.shape_cast %125 : vector<2x8x8x32xf32> to vector<128x32xf32>
    %c0_201 = arith.constant 0 : index
    %c1_202 = arith.constant 1 : index
    %c7_203 = arith.constant 7 : index
    %c0_204 = arith.constant 0 : index
    %127 = vector.load %arg14[%c0_201, %c1_202, %c7_203, %c0_204] : memref<2x10x17x32xf32, #tpu.memory_space<vmem>>, vector<2x8x8x32xf32>
    %128 = vector.shape_cast %127 : vector<2x8x8x32xf32> to vector<128x32xf32>
    %c0_205 = arith.constant 0 : index
    %c1_206 = arith.constant 1 : index
    %c8_207 = arith.constant 8 : index
    %c0_208 = arith.constant 0 : index
    %129 = vector.load %arg14[%c0_205, %c1_206, %c8_207, %c0_208] : memref<2x10x17x32xf32, #tpu.memory_space<vmem>>, vector<2x8x8x32xf32>
    %130 = vector.shape_cast %129 : vector<2x8x8x32xf32> to vector<128x32xf32>
    %c0_209 = arith.constant 0 : index
    %c1_210 = arith.constant 1 : index
    %c9_211 = arith.constant 9 : index
    %c0_212 = arith.constant 0 : index
    %131 = vector.load %arg14[%c0_209, %c1_210, %c9_211, %c0_212] : memref<2x10x17x32xf32, #tpu.memory_space<vmem>>, vector<2x8x8x32xf32>
    %132 = vector.shape_cast %131 : vector<2x8x8x32xf32> to vector<128x32xf32>
    %c0_213 = arith.constant 0 : index
    %c2_214 = arith.constant 2 : index
    %c7_215 = arith.constant 7 : index
    %c0_216 = arith.constant 0 : index
    %133 = vector.load %arg14[%c0_213, %c2_214, %c7_215, %c0_216] : memref<2x10x17x32xf32, #tpu.memory_space<vmem>>, vector<2x8x8x32xf32>
    %134 = vector.shape_cast %133 : vector<2x8x8x32xf32> to vector<128x32xf32>
    %c0_217 = arith.constant 0 : index
    %c2_218 = arith.constant 2 : index
    %c8_219 = arith.constant 8 : index
    %c0_220 = arith.constant 0 : index
    %135 = vector.load %arg14[%c0_217, %c2_218, %c8_219, %c0_220] : memref<2x10x17x32xf32, #tpu.memory_space<vmem>>, vector<2x8x8x32xf32>
    %136 = vector.shape_cast %135 : vector<2x8x8x32xf32> to vector<128x32xf32>
    %c0_221 = arith.constant 0 : index
    %c2_222 = arith.constant 2 : index
    %c9_223 = arith.constant 9 : index
    %c0_224 = arith.constant 0 : index
    %137 = vector.load %arg14[%c0_221, %c2_222, %c9_223, %c0_224] : memref<2x10x17x32xf32, #tpu.memory_space<vmem>>, vector<2x8x8x32xf32>
    %138 = vector.shape_cast %137 : vector<2x8x8x32xf32> to vector<128x32xf32>
    %139 = tpu.concatenate %122, %124, %126, %128, %130, %132, %134, %136, %138 in 1 : vector<128x32xf32>, vector<128x32xf32>, vector<128x32xf32>, vector<128x32xf32>, vector<128x32xf32>, vector<128x32xf32>, vector<128x32xf32>, vector<128x32xf32>, vector<128x32xf32> -> vector<128x288xf32>
    %140 = arith.truncf %139 : vector<128x288xf32> to vector<128x288xbf16>
    %c0_225 = arith.constant 0 : index
    %c0_226 = arith.constant 0 : index
    %141 = vector.load %arg9[%c0_225, %c0_226] : memref<288x32xbf16, #tpu.memory_space<vmem>>, vector<288x32xbf16>
    %cst_227 = arith.constant dense<0.000000e+00> : vector<128x32xf32>
    %142 = tpu.matmul %140, %141, %cst_227 {dimension_numbers = #tpu.dot_dimension_numbers<[1], [0], [0], [1], [0, 0, 1, 1], [], []>} : vector<128x288xbf16>, vector<288x32xbf16>, vector<128x32xf32> -> vector<128x32xf32>
    %c0_228 = arith.constant 0 : index
    %c0_229 = arith.constant 0 : index
    %143 = vector.load %arg10[%c0_228, %c0_229] : memref<1x32xf32, #tpu.memory_space<vmem>>, vector<1x32xf32>
    %144 = vector.broadcast %143 : vector<1x32xf32> to vector<128x32xf32>
    %145 = arith.addf %142, %144 : vector<128x32xf32>
    %146 = arith.addf %145, %89 : vector<128x32xf32>
    %cst_230 = arith.constant 0.000000e+00 : f32
    %147 = vector.broadcast %cst_230 : f32 to vector<128x32xf32>
    %148 = arith.maximumf %146, %147 : vector<128x32xf32>
    %149 = arith.truncf %148 : vector<128x32xf32> to vector<128x32xbf16>
    %c0_231 = arith.constant 0 : index
    %c0_232 = arith.constant 0 : index
    %150 = vector.load %arg11[%c0_231, %c0_232] : memref<32x6xbf16, #tpu.memory_space<vmem>>, vector<32x6xbf16>
    %cst_233 = arith.constant dense<0.000000e+00> : vector<128x6xf32>
    %151 = tpu.matmul %149, %150, %cst_233 {dimension_numbers = #tpu.dot_dimension_numbers<[1], [0], [0], [1], [0, 0, 1, 1], [], []>} : vector<128x32xbf16>, vector<32x6xbf16>, vector<128x6xf32> -> vector<128x6xf32>
    %c0_234 = arith.constant 0 : index
    %c0_235 = arith.constant 0 : index
    %152 = vector.load %arg12[%c0_234, %c0_235] : memref<1x6xf32, #tpu.memory_space<vmem>>, vector<1x6xf32>
    %153 = vector.broadcast %152 : vector<1x6xf32> to vector<128x6xf32>
    %154 = arith.addf %151, %153 : vector<128x6xf32>
    %cst_236 = arith.constant 0.000000e+00 : f32
    %155 = vector.broadcast %cst_236 : f32 to vector<128x6xf32>
    %156 = arith.maximumf %154, %155 : vector<128x6xf32>
    %157 = arith.truncf %156 : vector<128x6xf32> to vector<128x6xbf16>
    %c0_237 = arith.constant 0 : index
    %c0_238 = arith.constant 0 : index
    %158 = vector.load %arg13[%c0_237, %c0_238] : memref<128x6xbf16, #tpu.memory_space<vmem>>, vector<128x6xbf16>
    tpu.vector_store %arg13[%c0_237, %c0_238], %157 {strides = array<i32>} : memref<128x6xbf16, #tpu.memory_space<vmem>>, vector<128x6xbf16>,
    return
  }
}

</mosaic_0001>

<bundles_post_ra>
// kernel: tpu_custom_call.1
= control target key start
LH: loop header
LB: loop body
LE: loop exit
PB: predicated region body
PF: predicated region fallthrough
CT: control target
= control target key end

     0   :  { %18 = vsyncpa [#allocation4], 0  ;;  %s10698_s0 = inlined_call_operand.hbm [shape: f32[2,8,8,4], index: 0, kind: input, shape index: {}]   ;;  %s10699_s1 = inlined_call_operand.hbm [shape: bf16[36,32], index: 1, kind: input, shape index: {}]   ;;  %s10700_s2 = inlined_call_operand.hbm [shape: f32[1,32], index: 2, kind: input, shape index: {}]   ;;  %s10701_s3 = inlined_call_operand.hbm [shape: bf16[288,32], index: 3, kind: input, shape index: {}]   ;;  %s10702_s4 = inlined_call_operand.hbm [shape: f32[1,32], index: 4, kind: input, shape index: {}]   ;;  %s10703_s5 = inlined_call_operand.hbm [shape: bf16[36,32], index: 5, kind: input, shape index: {}]   ;;  %s10704_s6 = inlined_call_operand.hbm [shape: f32[1,32], index: 6, kind: input, shape index: {}]   ;;  %s10705_s7 = inlined_call_operand.hbm [shape: bf16[288,32], index: 7, kind: input, shape index: {}]   ;;  %s10706_s8 = inlined_call_operand.hbm [shape: f32[1,32], index: 8, kind: input, shape index: {}]   ;;  %s10707_s9 = inlined_call_operand.hbm [shape: bf16[288,32], index: 9, kind: input, shape index: {}]   ;;  %s10708_s10 = inlined_call_operand.hbm [shape: f32[1,32], index: 10, kind: input, shape index: {}]   ;;  %s10709_s11 = inlined_call_operand.hbm [shape: bf16[32,6], index: 11, kind: input, shape index: {}]   ;;  %s10710_s12 = inlined_call_operand.hbm [shape: f32[1,6], index: 12, kind: input, shape index: {}]   ;;  %s10711_s13 = inlined_call_operand.hbm [shape: bf16[128,6], index: 13, kind: output, shape index: {}]  }
   0x1   :  { %19 = vsyncpa [#allocation7], 0 }
   0x2   :  { %20 = vsyncpa [#allocation10], 0 }
   0x3   :  { %21 = vsyncpa [#allocation13], 0 }
   0x4   :  { %22 = vsyncpa [#allocation16], 0 }
   0x5   :  { %23 = vsyncpa [#allocation19], 0 }
   0x6   :  { %24 = vsyncpa [#allocation22], 0 }
   0x7   :  { %25 = vsyncpa [#allocation5], 0  ;;  %s8015_s25 = smov [#allocation6]   ;;  %s7691_s29 = scalar_lea.hbm %s10699_s1, 320 }
   0x8   :  { %s43_s26 = sshll.u32 %s8015_s25, 4  ;;  %p7692_p0 = scmp.ne.s32.totalorder %s10699_s1, %s7691_s29  ;;  %s44_s26 = int_to_ptr.vmem [resolvable:$true] %s43_s26 }
   0x9   :  { %p7695_p1 = scmp.lt.u32.totalorder %s7691_s29, %s10699_s1 }
   0xb   :  { %p7697_p2 = pnand %p7695_p1, %p7692_p0 }
   0xd   :  { %7700 = shalt.err (!%p7697_p2)
}
   0xe   :  { %s7701_s17 = scalar_lea.vmem %s44_s26, 320  ;;  %p7706_p4 = scmp.lt.s32.totalorder %s44_s26, %s44_s26 }
   0xf   :  { %p7702_p3 = scmp.ne.s32.totalorder %s44_s26, %s7701_s17  ;;  %p7707_p5 = scmp.lt.s32.totalorder %s7701_s17, %s7701_s17 }
  0x11   :  { %p7708_p6 = por %p7707_p5, %p7706_p4 }
  0x13   :  { %p7709_p7 = pnand %p7708_p6, %p7702_p3 }
  0x15   :  { %7712 = shalt.err (!%p7709_p7)
}
  0x16   :  { %s8016_s18 = smov 64   ;;  %s8017_s19 = smov 4  }
  0x17   :  { %49 = dma.hbm_to_vmem [thread:$0]  %s10699_s1, 320, %s44_s26, [#allocation7], %s8016_s18, %s8016_s18, %s8017_s19  }
  0x18   :  { %s8018_s22 = smov [#allocation9]   ;;  %s8019_s24 = smov [#allocation12]  }
  0x19   :  { %s65_s23 = sshll.u32 %s8018_s22, 4  ;;  %s87_s25 = sshll.u32 %s8019_s24, 4  ;;  %s66_s23 = int_to_ptr.vmem [resolvable:$true] %s65_s23  ;;  %s88_s25 = int_to_ptr.vmem [resolvable:$true] %s87_s25 }
  0x1a   :  { %s7713_s29 = scalar_lea.hbm %s10701_s3, 2304 }
  0x1b   :  { %p7714_p8 = scmp.ne.s32.totalorder %s10701_s3, %s7713_s29  ;;  %p7717_p9 = scmp.lt.u32.totalorder %s7713_s29, %s10701_s3 }
  0x1d   :  { %p7719_p10 = pnand %p7717_p9, %p7714_p8 }
  0x1f   :  { %7722 = shalt.err (!%p7719_p10)
}
  0x20   :  { %s7723_s1 = scalar_lea.vmem %s66_s23, 2304  ;;  %p7728_p12 = scmp.lt.s32.totalorder %s66_s23, %s66_s23 }
  0x21   :  { %p7724_p11 = scmp.ne.s32.totalorder %s66_s23, %s7723_s1  ;;  %p7729_p13 = scmp.lt.s32.totalorder %s7723_s1, %s7723_s1 }
  0x23   :  { %p7730_p0 = por %p7729_p13, %p7728_p12 }
  0x25   :  { %p7731_p1 = pnand %p7730_p0, %p7724_p11 }
  0x27   :  { %7734 = shalt.err (!%p7731_p1)
}
  0x28   :  { %71 = dma.hbm_to_vmem [thread:$0]  %s10701_s3, 2304, %s66_s23, [#allocation10], %s8016_s18, %s8016_s18, %s8017_s19  }
  0x29   :  { %s7735_s22 = scalar_lea.hbm %s10703_s5, 320 }
  0x2a   :  { %p7736_p2 = scmp.ne.s32.totalorder %s10703_s5, %s7735_s22  ;;  %p7739_p3 = scmp.lt.u32.totalorder %s7735_s22, %s10703_s5 }
  0x2c   :  { %p7741_p4 = pnand %p7739_p3, %p7736_p2 }
  0x2e   :  { %7744 = shalt.err (!%p7741_p4)
}
  0x2f   :  { %s7745_s30 = scalar_lea.vmem %s88_s25, 320  ;;  %p7750_p6 = scmp.lt.s32.totalorder %s88_s25, %s88_s25 }
  0x30   :  { %p7746_p5 = scmp.ne.s32.totalorder %s88_s25, %s7745_s30  ;;  %p7751_p7 = scmp.lt.s32.totalorder %s7745_s30, %s7745_s30 }
  0x32   :  { %p7752_p8 = por %p7751_p7, %p7750_p6 }
  0x34   :  { %p7753_p9 = pnand %p7752_p8, %p7746_p5 }
  0x36   :  { %7756 = shalt.err (!%p7753_p9)
}
  0x37   :  { %93 = dma.hbm_to_vmem [thread:$0]  %s10703_s5, 320, %s88_s25, [#allocation13], %s8016_s18, %s8016_s18, %s8017_s19  }
  0x38   :  { %s8020_s14 = smov [#allocation15]   ;;  %s8021_s16 = smov [#allocation18]  }
  0x39   :  { %s109_s15 = sshll.u32 %s8020_s14, 4  ;;  %s131_s1 = sshll.u32 %s8021_s16, 4  ;;  %s110_s15 = int_to_ptr.vmem [resolvable:$true] %s109_s15  ;;  %s132_s1 = int_to_ptr.vmem [resolvable:$true] %s131_s1 }
  0x3a   :  { %s7757_s20 = scalar_lea.hbm %s10705_s7, 2304 }
  0x3b   :  { %p7758_p10 = scmp.ne.s32.totalorder %s10705_s7, %s7757_s20  ;;  %p7761_p11 = scmp.lt.u32.totalorder %s7757_s20, %s10705_s7 }
  0x3d   :  { %p7763_p12 = pnand %p7761_p11, %p7758_p10 }
  0x3f   :  { %7766 = shalt.err (!%p7763_p12)
}
  0x40   :  { %s7767_s5 = scalar_lea.vmem %s110_s15, 2304  ;;  %p7772_p0 = scmp.lt.s32.totalorder %s110_s15, %s110_s15 }
  0x41   :  { %p7768_p13 = scmp.ne.s32.totalorder %s110_s15, %s7767_s5  ;;  %p7773_p1 = scmp.lt.s32.totalorder %s7767_s5, %s7767_s5 }
  0x43   :  { %p7774_p2 = por %p7773_p1, %p7772_p0 }
  0x45   :  { %p7775_p3 = pnand %p7774_p2, %p7768_p13 }
  0x47   :  { %7778 = shalt.err (!%p7775_p3)
}
  0x48   :  { %115 = dma.hbm_to_vmem [thread:$0]  %s10705_s7, 2304, %s110_s15, [#allocation16], %s8016_s18, %s8016_s18, %s8017_s19  }
  0x49   :  { %s7779_s3 = scalar_lea.hbm %s10707_s9, 2304 }
  0x4a   :  { %p7780_p4 = scmp.ne.s32.totalorder %s10707_s9, %s7779_s3  ;;  %p7783_p5 = scmp.lt.u32.totalorder %s7779_s3, %s10707_s9 }
  0x4c   :  { %p7785_p6 = pnand %p7783_p5, %p7780_p4 }
  0x4e   :  { %7788 = shalt.err (!%p7785_p6)
}
  0x4f   :  { %s7789_s17 = scalar_lea.vmem %s132_s1, 2304  ;;  %p7794_p8 = scmp.lt.s32.totalorder %s132_s1, %s132_s1 }
  0x50   :  { %p7790_p7 = scmp.ne.s32.totalorder %s132_s1, %s7789_s17  ;;  %p7795_p9 = scmp.lt.s32.totalorder %s7789_s17, %s7789_s17 }
  0x52   :  { %p7796_p10 = por %p7795_p9, %p7794_p8 }
  0x54   :  { %p7797_p11 = pnand %p7796_p10, %p7790_p7 }
  0x56   :  { %7800 = shalt.err (!%p7797_p11)
}
  0x57   :  { %137 = dma.hbm_to_vmem [thread:$0]  %s10707_s9, 2304, %s132_s1, [#allocation19], %s8016_s18, %s8016_s18, %s8017_s19  }
  0x58   :  { %s8022_s20 = smov [#allocation21]   ;;  %s8023_s22 = smov [#allocation3]  }
  0x59   :  { %s153_s21 = sshll.u32 %s8022_s20, 4  ;;  %s31_s24 = sshll.u32 %s8023_s22, 4  ;;  %s154_s21 = int_to_ptr.vmem [resolvable:$true] %s153_s21  ;;  %s32_s24 = int_to_ptr.vmem [resolvable:$true] %s31_s24 }
  0x5a   :  { %s7801_s25 = scalar_lea.hbm %s10709_s11, 256 }
  0x5b   :  { %p7802_p12 = scmp.ne.s32.totalorder %s10709_s11, %s7801_s25  ;;  %p7805_p13 = scmp.lt.u32.totalorder %s7801_s25, %s10709_s11 }
  0x5d   :  { %p7807_p0 = pnand %p7805_p13, %p7802_p12 }
  0x5f   :  { %7810 = shalt.err (!%p7807_p0)
}
  0x60   :  { %s7811_s9 = scalar_lea.vmem %s154_s21, 256  ;;  %p7816_p2 = scmp.lt.s32.totalorder %s154_s21, %s154_s21 }
  0x61   :  { %p7812_p1 = scmp.ne.s32.totalorder %s154_s21, %s7811_s9  ;;  %p7817_p3 = scmp.lt.s32.totalorder %s7811_s9, %s7811_s9 }
  0x63   :  { %p7818_p4 = por %p7817_p3, %p7816_p2 }
  0x65   :  { %p7819_p5 = pnand %p7818_p4, %p7812_p1 }
  0x67   :  { %7822 = shalt.err (!%p7819_p5)
}
  0x68   :  { %159 = dma.hbm_to_vmem [thread:$0]  %s10709_s11, 256, %s154_s21, [#allocation22], %s8016_s18, %s8016_s18, %s8017_s19  }
  0x69   :  { %s7823_s26 = scalar_lea.hbm %s10698_s0, 2048 }
  0x6a   :  { %p7824_p6 = scmp.ne.s32.totalorder %s10698_s0, %s7823_s26  ;;  %p7827_p7 = scmp.lt.u32.totalorder %s7823_s26, %s10698_s0 }
  0x6c   :  { %p7829_p8 = pnand %p7827_p7, %p7824_p6 }
  0x6e   :  { %7832 = shalt.err (!%p7829_p8)
}
  0x6f   :  { %s7833_s22 = scalar_lea.vmem %s32_s24, 2048  ;;  %p7838_p10 = scmp.lt.s32.totalorder %s32_s24, %s32_s24 }
  0x70   :  { %p7834_p9 = scmp.ne.s32.totalorder %s32_s24, %s7833_s22  ;;  %p7839_p11 = scmp.lt.s32.totalorder %s7833_s22, %s7833_s22 }
  0x72   :  { %p7840_p12 = por %p7839_p11, %p7838_p10 }
  0x74   :  { %p7841_p13 = pnand %p7840_p12, %p7834_p9 }
  0x76   :  { %7844 = shalt.err (!%p7841_p13)
}
  0x77   :  { %s8024_s11 = smov 128   ;;  %s8025_s21 = smov 8  }
  0x78   :  { %37 = dma.hbm_to_vmem [thread:$0]  %s10698_s0, 2048, %s32_s24, [#allocation4], %s8024_s11, %s8024_s11, %s8025_s21  }
  0x79   :  { %s8026_s25 = smov [#allocation8]   ;;  %s8027_s29 = smov [#allocation11]  }
  0x7a   :  { %s56_s28 = sshll.u32 %s8026_s25, 4  ;;  %s78_s30 = sshll.u32 %s8027_s29, 4  ;;  %s57_s28 = int_to_ptr.vmem [resolvable:$true] %s56_s28  ;;  %s79_s30 = int_to_ptr.vmem [resolvable:$true] %s78_s30 }
  0x7b   :  { %s7845_s1 = scalar_lea.hbm %s10700_s2, 16 }
  0x7c   :  { %p7846_p0 = scmp.ne.s32.totalorder %s10700_s2, %s7845_s1  ;;  %p7849_p1 = scmp.lt.u32.totalorder %s7845_s1, %s10700_s2 }
  0x7e   :  { %p7851_p2 = pnand %p7849_p1, %p7846_p0 }
  0x80   :  { %7854 = shalt.err (!%p7851_p2)
}
  0x81   :  { %s7855_s0 = scalar_lea.vmem %s57_s28, 16  ;;  %s7859_s24 = scalar_lea.vmem %s57_s28, 32 }
  0x82   :  { %p7856_p3 = scmp.ne.s32.totalorder %s57_s28, %s7855_s0  ;;  %p7860_p4 = scmp.lt.s32.totalorder %s57_s28, %s57_s28 }
  0x83   :  { %p7861_p5 = scmp.lt.s32.totalorder %s7859_s24, %s7855_s0 }
  0x85   :  { %p7862_p6 = por %p7861_p5, %p7860_p4 }
  0x87   :  { %p7863_p7 = pnand %p7862_p6, %p7856_p3 }
  0x89   :  { %7866 = shalt.err (!%p7863_p7)
}
  0x8a   :  { %59 = dma.hbm_to_vmem [thread:$0]  %s10700_s2, 16, %s57_s28, [#allocation7]  }
  0x8b   :  { %s7867_s22 = scalar_lea.hbm %s10702_s4, 16 }
  0x8c   :  { %p7868_p8 = scmp.ne.s32.totalorder %s10702_s4, %s7867_s22  ;;  %p7871_p9 = scmp.lt.u32.totalorder %s7867_s22, %s10702_s4 }
  0x8e   :  { %p7873_p10 = pnand %p7871_p9, %p7868_p8 }
  0x90   :  { %7876 = shalt.err (!%p7873_p10)
}
  0x91   :  { %s7877_s29 = scalar_lea.vmem %s79_s30, 16  ;;  %s7881_s3 = scalar_lea.vmem %s79_s30, 32 }
  0x92   :  { %p7878_p11 = scmp.ne.s32.totalorder %s79_s30, %s7877_s29  ;;  %p7882_p12 = scmp.lt.s32.totalorder %s79_s30, %s79_s30 }
  0x93   :  { %p7883_p13 = scmp.lt.s32.totalorder %s7881_s3, %s7877_s29 }
  0x95   :  { %p7884_p0 = por %p7883_p13, %p7882_p12 }
  0x97   :  { %p7885_p1 = pnand %p7884_p0, %p7878_p11 }
  0x99   :  { %7888 = shalt.err (!%p7885_p1)
}
  0x9a   :  { %81 = dma.hbm_to_vmem [thread:$0]  %s10702_s4, 16, %s79_s30, [#allocation10]  }
  0x9b   :  { %s8028_s9 = smov [#allocation14]   ;;  %s8029_s23 = smov [#allocation17]  }
  0x9c   :  { %s100_s1 = sshll.u32 %s8028_s9, 4  ;;  %s122_s14 = sshll.u32 %s8029_s23, 4  ;;  %s101_s1 = int_to_ptr.vmem [resolvable:$true] %s100_s1  ;;  %s123_s14 = int_to_ptr.vmem [resolvable:$true] %s122_s14 }
  0x9d   :  { %s7889_s0 = scalar_lea.hbm %s10704_s6, 16 }
  0x9e   :  { %p7890_p2 = scmp.ne.s32.totalorder %s10704_s6, %s7889_s0  ;;  %p7893_p3 = scmp.lt.u32.totalorder %s7889_s0, %s10704_s6 }
  0xa0   :  { %p7895_p4 = pnand %p7893_p3, %p7890_p2 }
  0xa2   :  { %7898 = shalt.err (!%p7895_p4)
}
  0xa3   :  { %s7899_s4 = scalar_lea.vmem %s101_s1, 16  ;;  %s7903_s30 = scalar_lea.vmem %s101_s1, 32 }
  0xa4   :  { %p7900_p5 = scmp.ne.s32.totalorder %s101_s1, %s7899_s4  ;;  %p7904_p6 = scmp.lt.s32.totalorder %s101_s1, %s101_s1 }
  0xa5   :  { %p7905_p7 = scmp.lt.s32.totalorder %s7903_s30, %s7899_s4 }
  0xa7   :  { %p7906_p8 = por %p7905_p7, %p7904_p6 }
  0xa9   :  { %p7907_p9 = pnand %p7906_p8, %p7900_p5 }
  0xab   :  { %7910 = shalt.err (!%p7907_p9)
}
  0xac   :  { %103 = dma.hbm_to_vmem [thread:$0]  %s10704_s6, 16, %s101_s1, [#allocation13]  }
  0xad   :  { %s7911_s5 = scalar_lea.hbm %s10706_s8, 16 }
  0xae   :  { %p7912_p10 = scmp.ne.s32.totalorder %s10706_s8, %s7911_s5  ;;  %p7915_p11 = scmp.lt.u32.totalorder %s7911_s5, %s10706_s8 }
  0xb0   :  { %p7917_p12 = pnand %p7915_p11, %p7912_p10 }
  0xb2   :  { %7920 = shalt.err (!%p7917_p12)
}
  0xb3   :  { %s7921_s28 = scalar_lea.vmem %s123_s14, 16  ;;  %s7925_s9 = scalar_lea.vmem %s123_s14, 32 }
  0xb4   :  { %p7922_p13 = scmp.ne.s32.totalorder %s123_s14, %s7921_s28  ;;  %p7926_p0 = scmp.lt.s32.totalorder %s123_s14, %s123_s14 }
  0xb5   :  { %p7927_p1 = scmp.lt.s32.totalorder %s7925_s9, %s7921_s28 }
  0xb7   :  { %p7928_p2 = por %p7927_p1, %p7926_p0 }
  0xb9   :  { %p7929_p3 = pnand %p7928_p2, %p7922_p13 }
  0xbb   :  { %7932 = shalt.err (!%p7929_p3)
}
  0xbc   :  { %125 = dma.hbm_to_vmem [thread:$0]  %s10706_s8, 16, %s123_s14, [#allocation16]  }
  0xbd   :  { %s8030_s23 = smov [#allocation20]   ;;  %s8031_s26 = smov [#allocation23]  }
  0xbe   :  { %s144_s16 = sshll.u32 %s8030_s23, 4  ;;  %s166_s0 = sshll.u32 %s8031_s26, 4  ;;  %s145_s16 = int_to_ptr.vmem [resolvable:$true] %s144_s16  ;;  %s167_s0 = int_to_ptr.vmem [resolvable:$true] %s166_s0 }
  0xbf   :  { %s7933_s7 = scalar_lea.hbm %s10708_s10, 16 }
  0xc0   :  { %p7934_p4 = scmp.ne.s32.totalorder %s10708_s10, %s7933_s7  ;;  %p7937_p5 = scmp.lt.u32.totalorder %s7933_s7, %s10708_s10 }
  0xc2   :  { %p7939_p6 = pnand %p7937_p5, %p7934_p4 }
  0xc4   :  { %7942 = shalt.err (!%p7939_p6)
}
  0xc5   :  { %s7943_s8 = scalar_lea.vmem %s145_s16, 16  ;;  %s7947_s14 = scalar_lea.vmem %s145_s16, 32 }
  0xc6   :  { %p7944_p7 = scmp.ne.s32.totalorder %s145_s16, %s7943_s8  ;;  %p7948_p8 = scmp.lt.s32.totalorder %s145_s16, %s145_s16 }
  0xc7   :  { %p7949_p9 = scmp.lt.s32.totalorder %s7947_s14, %s7943_s8 }
  0xc9   :  { %p7950_p10 = por %p7949_p9, %p7948_p8 }
  0xcb   :  { %p7951_p11 = pnand %p7950_p10, %p7944_p7 }
  0xcd   :  { %7954 = shalt.err (!%p7951_p11)
}
  0xce   :  { %147 = dma.hbm_to_vmem [thread:$0]  %s10708_s10, 16, %s145_s16, [#allocation19]  }
  0xcf   :  { %s7955_s25 = scalar_lea.hbm %s10710_s12, 16 }
  0xd0   :  { %p7956_p12 = scmp.ne.s32.totalorder %s10710_s12, %s7955_s25  ;;  %p7959_p13 = scmp.lt.u32.totalorder %s7955_s25, %s10710_s12 }
  0xd2   :  { %p7961_p0 = pnand %p7959_p13, %p7956_p12 }
  0xd4   :  { %7964 = shalt.err (!%p7961_p0)
}
  0xd5   :  { %s7965_s9 = scalar_lea.vmem %s167_s0, 16  ;;  %s7969_s6 = scalar_lea.vmem %s167_s0, 32 }
  0xd6   :  { %p7966_p1 = scmp.ne.s32.totalorder %s167_s0, %s7965_s9  ;;  %p7970_p2 = scmp.lt.s32.totalorder %s167_s0, %s167_s0 }
  0xd7   :  { %p7971_p3 = scmp.lt.s32.totalorder %s7969_s6, %s7965_s9 }
  0xd9   :  { %p7972_p4 = por %p7971_p3, %p7970_p2 }
  0xdb   :  { %p7973_p5 = pnand %p7972_p4, %p7966_p1 }
  0xdd   :  { %7976 = shalt.err (!%p7973_p5)
}
  0xde   :  { %169 = dma.hbm_to_vmem [thread:$0]  %s10710_s12, 16, %s167_s0, [#allocation22]  }
  0xdf   :  { %7999 = dma.done.wait [#allocation4], 2048  }
  0xe0   :  { %8000 = vsyncadd [#allocation4], 4294965248 }
  0xe1   :  { %8001 = dma.done.wait [#allocation7], 336  }
  0xe2   :  { %8002 = vsyncadd [#allocation7], 4294966960 }
  0xe3   :  { %8003 = dma.done.wait [#allocation10], 2320  }
  0xe4   :  { %8004 = vsyncadd [#allocation10], 4294964976 }
  0xe5   :  { %8005 = dma.done.wait [#allocation13], 336  }
  0xe6   :  { %8006 = vsyncadd [#allocation13], 4294966960 }
  0xe7   :  { %8007 = dma.done.wait [#allocation16], 2320  }
  0xe8   :  { %8008 = vsyncadd [#allocation16], 4294964976 }
  0xe9   :  { %8009 = dma.done.wait [#allocation19], 2320  }
  0xea   :  { %8010 = vsyncadd [#allocation19], 4294964976 }
  0xeb   :  { %8011 = dma.done.wait [#allocation22], 272  }
  0xec   :  { %8012 = vsyncadd [#allocation22], 4294967024  ;;  %vm210_vm0 = vcmask 261120   ;;  %vm212_vm1 = vcmask 254976   ;;  %v8032_v0 = vmov 0.0   ;;  %vm269_vm2 = vcmask 31744  }
  0xed   :  { %211 = vst.msk [vmem:[#allocation2 + $0x7] sm:$0xff] %vm210_vm0, %v8032_v0  ;;  %214 = vst.msk [vmem:[#allocation2 + $0x1f] sm:$0xff] %vm210_vm0, %v8032_v0  ;;  %v252_v1 = vld [vmem:[#allocation3] sm:$0xff]  ;;  %v253_v2 = vld [vmem:[#allocation3 + $0x8] sm:$0xff]  ;;  %s8033_s12 = smov 12   ;;  %s8034_s23 = smov 16  }
  0xee   :  { %213 = vst.msk [vmem:[#allocation2 + $0xf] sm:$0x3] %vm212_vm1, %v8032_v0  ;;  %215 = vst.msk [vmem:[#allocation2 + $0x27] sm:$0x3] %vm212_vm1, %v8032_v0  ;;  %v254_v3 = vld [vmem:[#allocation3 + $0x10] sm:$0xff]  ;;  %v255_v4 = vld [vmem:[#allocation3 + $0x18] sm:$0xff] }
  0xef   :  { %216 = vst.msk [vmem:[#allocation2 + $0x37] sm:$0xff] %vm210_vm0, %v8032_v0  ;;  %218 = vst.msk [vmem:[#allocation2 + $0x4f] sm:$0xff] %vm210_vm0, %v8032_v0  ;;  %v256_v5 = vld [vmem:[#allocation3 + $0x20] sm:$0xff]  ;;  %v8330_v6 = vld [vmem:[#allocation3 + $0x28] sm:$0xff]  ;;  %s8035_s16 = smov 20   ;;  %vm1137_vm3 = vcmask 1041408  }
  0xf0   :  { %217 = vst.msk [vmem:[#allocation2 + $0x3f] sm:$0x3] %vm212_vm1, %v8032_v0  ;;  %219 = vst.msk [vmem:[#allocation2 + $0x57] sm:$0x3] %vm212_vm1, %v8032_v0  ;;  %v8332_v7 = vld [vmem:[#allocation3 + $0x30] sm:$0xff]  ;;  %v259_v8 = vld [vmem:[#allocation3 + $0x38] sm:$0xff] }
  0xf1   :  { %220 = vst.msk [vmem:[#allocation2 + $0x67] sm:$0xff] %vm210_vm0, %v8032_v0  ;;  %222 = vst.msk [vmem:[#allocation2 + $0x7f] sm:$0xff] %vm210_vm0, %v8032_v0  ;;  %v8340_v9 = vld [vmem:[#allocation3 + $0x48] sm:$0xff]  ;;  %v8342_v10 = vld [vmem:[#allocation3 + $0x50] sm:$0xff]  ;;  %s8036_s26 = smov 24   ;;  %s8037_s0 = smov 28  }
  0xf2   :  { %221 = vst.msk [vmem:[#allocation2 + $0x6f] sm:$0x3] %vm212_vm1, %v8032_v0  ;;  %223 = vst.msk [vmem:[#allocation2 + $0x87] sm:$0x3] %vm212_vm1, %v8032_v0  ;;  %v8352_v13 = vld [vmem:[#allocation3 + $0x40] sm:$0xff]  ;;  %v8356_v14 = vld [vmem:[#allocation3 + $0x58] sm:$0xff] }
  0xf3   :  { %224 = vst.msk [vmem:[#allocation2 + $0x97] sm:$0xff] %vm210_vm0, %v8032_v0  ;;  %226 = vst.msk [vmem:[#allocation2 + $0xaf] sm:$0xff] %vm210_vm0, %v8032_v0  ;;  %v8358_v15 = vld [vmem:[#allocation3 + $0x60] sm:$0xff]  ;;  %v8360_v16 = vld [vmem:[#allocation3 + $0x68] sm:$0xff]  ;;  %s8038_s24 = smov 32   ;;  %vm959_vm4 = vcmask 64512  }
  0xf4   :  { %225 = vst.msk [vmem:[#allocation2 + $0x9f] sm:$0x3] %vm212_vm1, %v8032_v0  ;;  %227 = vst.msk [vmem:[#allocation2 + $0xb7] sm:$0x3] %vm212_vm1, %v8032_v0  ;;  %v8366_v17 = vld [vmem:[#allocation3 + $0x70] sm:$0xff]  ;;  %v8370_v18 = vld [vmem:[#allocation3 + $0x78] sm:$0xff] }
  0xf5   :  { %228 = vst.msk [vmem:[#allocation2 + $0xc7] sm:$0xff] %vm210_vm0, %v8032_v0  ;;  %230 = vst.msk [vmem:[#allocation2 + $0xdf] sm:$0xff] %vm210_vm0, %v8032_v0  ;;  %v8344_v11 = vld [vmem:[#allocation2 + $0x9] sm:$0xff]  ;;  %vm976_vm5 = vcmask 97280   ;;  %vm993_vm6 = vcmask 130048   ;;  %vm1010_vm7 = vcmask 162816  }
  0xf6   :  { %229 = vst.msk [vmem:[#allocation2 + $0xcf] sm:$0x3] %vm212_vm1, %v8032_v0  ;;  %231 = vst.msk [vmem:[#allocation2 + $0xe7] sm:$0x3] %vm212_vm1, %v8032_v0  ;;  %v8346_v12 = vld [vmem:[#allocation2 + $0x8] sm:$0xff]  ;;  %vm1027_vm8 = vcmask 195584  }
  0xf7   :  { %232 = vst.msk [vmem:[#allocation2 + $0xf7] sm:$0xff] %vm210_vm0, %v8032_v0  ;;  %234 = vst.msk [vmem:[#allocation2 + $0x10f] sm:$0xff] %vm210_vm0, %v8032_v0  ;;  %vm1044_vm9 = vcmask 228352   ;;  %vm1112_vm10 = vcmask 293888   ;;  %vm2773_vm11 = vcmask 523264   ;;  %vm2790_vm12 = vcmask 785408  }
  0xf8   :  { %233 = vst.msk [vmem:[#allocation2 + $0xff] sm:$0x3] %vm212_vm1, %v8032_v0  ;;  %235 = vst.msk [vmem:[#allocation2 + $0x117] sm:$0x3] %vm212_vm1, %v8032_v0  ;;  %vm5626_vm13 = vcmask 44032   ;;  %s8040_s17 = smov [#allocation24]  }
  0xf9   :  { %236 = vst.msk [vmem:[#allocation2 + $0x127] sm:$0xff] %vm210_vm0, %v8032_v0  ;;  %238 = vst.msk [vmem:[#allocation2 + $0x13f] sm:$0xff] %vm210_vm0, %v8032_v0  ;;  %s5648_s7 = sshll.u32 %s8040_s17, 4  ;;  %s5649_s7 = int_to_ptr.vmem [resolvable:$true] %s5648_s7 }
  0xfa   :  { %237 = vst.msk [vmem:[#allocation2 + $0x12f] sm:$0x3] %vm212_vm1, %v8032_v0  ;;  %239 = vst.msk [vmem:[#allocation2 + $0x147] sm:$0x3] %vm212_vm1, %v8032_v0  ;;  %s7977_s15 = scalar_lea.vmem %s5649_s7, 1024  ;;  %p7982_p7 = scmp.lt.s32.totalorder %s5649_s7, %s5649_s7 }
  0xfb   :  { %240 = vst.msk [vmem:[#allocation2 + $0x157] sm:$0xff] %vm210_vm0, %v8032_v0  ;;  %242 = vst.msk [vmem:[#allocation2 + $0x16f] sm:$0xff] %vm210_vm0, %v8032_v0  ;;  %p7978_p6 = scmp.ne.s32.totalorder %s5649_s7, %s7977_s15  ;;  %p7983_p8 = scmp.lt.s32.totalorder %s7977_s15, %s7977_s15 }
  0xfc   :  { %241 = vst.msk [vmem:[#allocation2 + $0x15f] sm:$0x3] %vm212_vm1, %v8032_v0  ;;  %243 = vst.msk [vmem:[#allocation2 + $0x177] sm:$0x3] %vm212_vm1, %v8032_v0 }
  0xfd   :  { %244 = vst.msk [vmem:[#allocation2 + $0x187] sm:$0xff] %vm210_vm0, %v8032_v0  ;;  %246 = vst.msk [vmem:[#allocation2 + $0x19f] sm:$0xff] %vm210_vm0, %v8032_v0  ;;  %p7984_p9 = por %p7983_p8, %p7982_p7 }
  0xfe   :  { %245 = vst.msk [vmem:[#allocation2 + $0x18f] sm:$0x3] %vm212_vm1, %v8032_v0  ;;  %247 = vst.msk [vmem:[#allocation2 + $0x1a7] sm:$0x3] %vm212_vm1, %v8032_v0 }
  0xff   :  { %248 = vst.msk [vmem:[#allocation2 + $0x1b7] sm:$0xff] %vm210_vm0, %v8032_v0  ;;  %250 = vst.msk [vmem:[#allocation2 + $0x1cf] sm:$0xff] %vm210_vm0, %v8032_v0  ;;  %p7985_p10 = pnand %p7984_p9, %p7978_p6 }
 0x100   :  { %249 = vst.msk [vmem:[#allocation2 + $0x1bf] sm:$0x3] %vm212_vm1, %v8032_v0  ;;  %251 = vst.msk [vmem:[#allocation2 + $0x1d7] sm:$0x3] %vm212_vm1, %v8032_v0 }
 0x101   :  { %270 = vst.msk [vmem:[#allocation2 + $0x20] sm:$0xff] %vm269_vm2, %v252_v1  ;;  %271 = vst.msk [vmem:[#allocation2 + $0x38] sm:$0xff] %vm269_vm2, %v253_v2 }
 0x102   :  { %272 = vst.msk [vmem:[#allocation2 + $0x50] sm:$0xff] %vm269_vm2, %v254_v3  ;;  %273 = vst.msk [vmem:[#allocation2 + $0x68] sm:$0xff] %vm269_vm2, %v255_v4 }
 0x103   :  { %274 = vst.msk [vmem:[#allocation2 + $0x80] sm:$0xff] %vm269_vm2, %v256_v5  ;;  %275 = vst.msk [vmem:[#allocation2 + $0x98] sm:$0xff] %vm269_vm2, %v8330_v6 }
 0x104   :  { %276 = vst.msk [vmem:[#allocation2 + $0xb0] sm:$0xff] %vm269_vm2, %v8332_v7  ;;  %277 = vst.msk [vmem:[#allocation2 + $0xc8] sm:$0xff] %vm269_vm2, %v259_v8 }
 0x105   :  { %279 = vst.msk [vmem:[#allocation2 + $0x128] sm:$0xff] %vm269_vm2, %v8340_v9  ;;  %280 = vst.msk [vmem:[#allocation2 + $0x140] sm:$0xff] %vm269_vm2, %v8342_v10 }
 0x106   :  { %278 = vst.msk [vmem:[#allocation2 + $0x110] sm:$0xff] %vm269_vm2, %v8352_v13  ;;  %281 = vst.msk [vmem:[#allocation2 + $0x158] sm:$0xff] %vm269_vm2, %v8356_v14 }
 0x107   :  { %282 = vst.msk [vmem:[#allocation2 + $0x170] sm:$0xff] %vm269_vm2, %v8358_v15  ;;  %283 = vst.msk [vmem:[#allocation2 + $0x188] sm:$0xff] %vm269_vm2, %v8360_v16 }
 0x108   :  { %v8372_v19 = vld [vmem:[#allocation2 + $0x21] sm:$0xff]  ;;  %v8376_v21 = vld [vmem:[#allocation2 + $0x39] sm:$0xff]  ;;  %284 = vst.msk [vmem:[#allocation2 + $0x1a0] sm:$0xff] %vm269_vm2, %v8366_v17  ;;  %285 = vst.msk [vmem:[#allocation2 + $0x1b8] sm:$0xff] %vm269_vm2, %v8370_v18 }
 0x109   :  { %v8374_v20 = vld [vmem:[#allocation2 + $0x20] sm:$0xff]  ;;  %v6278_v22 = vpack.i.bf16 %v8372_v19, %v8344_v11  ;;  %v8386_v24 = vld [vmem:[#allocation2 + $0x51] sm:$0xff]  ;;  %v8410_v33 = vld [vmem:[#allocation2 + $0x68] sm:$0xff] }
 0x10a   :  { %v6268_v23 = vpack.i.bf16 %v8374_v20, %v8346_v12  ;;  %v8388_v25 = vld [vmem:[#allocation2 + $0x38] sm:$0xff]  ;;  %v8390_v26 = vld [vmem:[#allocation2 + $0x50] sm:$0xff]  ;;  %v8392_v27 = vld [vmem:[#allocation2 + $0x67] sm:$0xff]  ;;  %v8402_v30 = vpack.i.bf16 %v8386_v24, %v8376_v21 }
 0x10b   :  { %v8394_v28 = vld [vmem:[#allocation2 + $0x4f] sm:$0xff]  ;;  %v8396_v29 = vld [vmem:[#allocation2 + $0x1f] sm:$0xff]  ;;  %6279 = vrot.lane.b32.xlu1 %v6278_v22, %s8025_s21  ;;  %v8406_v31 = vpack.i.bf16 %v8390_v26, %v8388_v25  ;;  %v8408_v32 = vld [vmem:[#allocation2 + $0x37] sm:$0xff]  ;;  %v6303_v59 = vpack.i.bf16 %v8410_v33, %v8390_v26  ;;  %v6298_v60 = vpack.i.bf16 %v8388_v25, %v8374_v20 }
 0x10c   :  { %6269 = vrot.lane.b32.xlu0 %v6268_v23, %s8017_s19  ;;  %v8412_v34 = vld [vmem:[#allocation2 + $0x69] sm:$0xff]  ;;  %1254 = vst.msk [vmem:[#allocation2 + $0x20] sm:$0xff] %vm269_vm2, %v252_v1  ;;  %1256 = vst.msk [vmem:[#allocation2 + $0x50] sm:$0xff] %vm269_vm2, %v254_v3  ;;  %v8416_v35 = vld [vmem:[#allocation2 + $0x7f] sm:$0xff]  ;;  %v6293_v44 = vpack.i.bf16 %v8392_v27, %v8394_v28  ;;  %v6288_v45 = vpack.i.bf16 %v8408_v32, %v8396_v29 }
 0x10d   :  { %v8418_v36 = vld [vmem:[#allocation2 + $0x80] sm:$0xff]  ;;  %1257 = vst.msk [vmem:[#allocation2 + $0x68] sm:$0xff] %vm269_vm2, %v255_v4  ;;  %1255 = vst.msk [vmem:[#allocation2 + $0x38] sm:$0xff] %vm269_vm2, %v253_v2  ;;  %v8424_v38 = vld [vmem:[#allocation2 + $0x98] sm:$0xff] }
 0x10e   :  { %v8420_v37 = vld [vmem:[#allocation2 + $0x81] sm:$0xff]  ;;  %v8426_v39 = vld [vmem:[#allocation2 + $0xb0] sm:$0xff]  ;;  %v8428_v40 = vld [vmem:[#allocation2 + $0x99] sm:$0xff] }
 0x10f   :  { %1258 = vst.msk [vmem:[#allocation2 + $0x80] sm:$0xff] %vm269_vm2, %v256_v5  ;;  %v8431_v41 = vld [vmem:[#allocation2 + $0xb1] sm:$0xff]  ;;  %v8435_v43 = vld [vmem:[#allocation2 + $0xc7] sm:$0xff]  ;;  %6284 = vrot.lane.b32.xlu1 %v8402_v30, %s8025_s21  ;;  %v8470_v56 = vld [vmem:[#allocation2 + $0x13f] sm:$0xff]  ;;  %v6353_v25 = vpack.i.bf16 %v8426_v39, %v8424_v38 }
 0x110   :  { %v8433_v42 = vld [vmem:[#allocation2 + $0xaf] sm:$0xff]  ;;  %6274 = vrot.lane.b32.xlu0 %v8406_v31, %s8017_s19  ;;  %v8445_v46 = vld [vmem:[#allocation2 + $0x97] sm:$0xff]  ;;  %v8456_v50 = vld [vmem:[#allocation2 + $0x140] sm:$0xff]  ;;  %v6363_v26 = vpack.i.bf16 %v8431_v41, %v8428_v40 }
 0x111   :  { %v8447_v47 = vld [vmem:[#allocation2 + $0xc8] sm:$0xff]  ;;  %1260 = vst.msk [vmem:[#allocation2 + $0xb0] sm:$0xff] %vm269_vm2, %v8332_v7  ;;  %v8458_v51 = vld [vmem:[#allocation2 + $0x110] sm:$0xff]  ;;  %1259 = vst.msk [vmem:[#allocation2 + $0x98] sm:$0xff] %vm269_vm2, %v8330_v6 }
 0x112   :  { %v8449_v48 = vld [vmem:[#allocation2 + $0xc9] sm:$0xff]  ;;  %v8464_v53 = vld [vmem:[#allocation2 + $0x141] sm:$0xff]  ;;  %v8466_v54 = vld [vmem:[#allocation2 + $0x111] sm:$0xff] }
 0x113   :  { %1261 = vst.msk [vmem:[#allocation2 + $0xc8] sm:$0xff] %vm269_vm2, %v259_v8  ;;  %v8454_v49 = vld [vmem:[#allocation2 + $0x128] sm:$0xff]  ;;  %v8468_v55 = vld [vmem:[#allocation2 + $0x157] sm:$0xff]  ;;  %6294 = vrot.lane.b32.xlu1 %v6293_v44, %s8033_s12  ;;  %1264 = vst.msk [vmem:[#allocation2 + $0x140] sm:$0xff] %vm269_vm2, %v8342_v10  ;;  %v6313_v8 = vpack.i.bf16 %v8412_v34, %v8386_v24  ;;  %v6343_v24 = vpack.i.bf16 %v8420_v37, %v8412_v34  ;;  %v6378_v34 = vpack.i.bf16 %v8424_v38, %v8418_v36 }
 0x114   :  { %v8462_v52 = vld [vmem:[#allocation2 + $0x129] sm:$0xff]  ;;  %v6458_v58 = vpack.i.bf16 %v8454_v49, %v8458_v51  ;;  %6289 = vrot.lane.b32.xlu0 %v6288_v45, %s8033_s12  ;;  %v8484_v62 = vld [vmem:[#allocation2 + $0x158] sm:$0xff]  ;;  %v8500_v2 = vld [vmem:[#allocation2 + $0x1a0] sm:$0xff]  ;;  %v6393_v45 = vpack.i.bf16 %v8449_v48, %v8431_v41  ;;  %v6398_v38 = vpack.i.bf16 %v8433_v42, %v8445_v46 }
 0x115   :  { %v8472_v57 = vld [vmem:[#allocation2 + $0x10f] sm:$0xff]  ;;  %v8482_v61 = vld [vmem:[#allocation2 + $0x127] sm:$0xff]  ;;  %v8486_v63 = vld [vmem:[#allocation2 + $0x159] sm:$0xff]  ;;  %v6463_v0 = vpack.i.bf16 %v8484_v62, %v8456_v50 }
 0x116   :  { %1262 = vst.msk [vmem:[#allocation2 + $0x110] sm:$0xff] %vm269_vm2, %v8352_v13  ;;  %1265 = vst.msk [vmem:[#allocation2 + $0x158] sm:$0xff] %vm269_vm2, %v8356_v14  ;;  %v8498_v1 = vld [vmem:[#allocation2 + $0x188] sm:$0xff]  ;;  %v8510_v6 = vld [vmem:[#allocation2 + $0x19f] sm:$0xff] }
 0x117   :  { %1263 = vst.msk [vmem:[#allocation2 + $0x128] sm:$0xff] %vm269_vm2, %v8340_v9  ;;  %v8502_v3 = vld [vmem:[#allocation2 + $0x189] sm:$0xff]  ;;  %v8506_v4 = vpack.i.bf16 %v8500_v2, %v8498_v1  ;;  %v8508_v5 = vld [vmem:[#allocation2 + $0x1a1] sm:$0xff]  ;;  %v8512_v7 = vld [vmem:[#allocation2 + $0x1b7] sm:$0xff]  ;;  %6304 = vrot.lane.b32.xlu1 %v6303_v59, %s8034_s23  ;;  %v6308_v9 = vpack.i.bf16 %v8376_v21, %v8372_v19  ;;  %v6323_v19 = vpack.i.bf16 %v8416_v35, %v8392_v27 }
 0x118   :  { %6299 = vrot.lane.b32.xlu0 %v6298_v60, %s8034_s23  ;;  %v8520_v10 = vld [vmem:[#allocation2 + $0x187] sm:$0xff]  ;;  %v8522_v13 = vld [vmem:[#allocation2 + $0x1b8] sm:$0xff]  ;;  %1268 = vst.msk [vmem:[#allocation2 + $0x1a0] sm:$0xff] %vm269_vm2, %v8366_v17  ;;  %v6318_v17 = vpack.i.bf16 %v8394_v28, %v8408_v32  ;;  %v7630_v23 = vld [vmem:[#allocation6 + $0x10] ss:$0 sps:$4 sm:$0x33]   ;;  %v6388_v59 = vpack.i.bf16 %v8428_v40, %v8420_v37 }
 0x119   :  { %v8524_v14 = vld [vmem:[#allocation2 + $0x1b9] sm:$0xff]  ;;  %v6543_v20 = vpack.i.bf16 %v8522_v13, %v8500_v2  ;;  %1267 = vst.msk [vmem:[#allocation2 + $0x188] sm:$0xff] %vm269_vm2, %v8360_v16  ;;  %v7629_v22 = vld [vmem:[#allocation6 + $0x8] sm:$0xff]   ;;  %v6333_v16 = vpack.i.bf16 %v8418_v36, %v8410_v33  ;;  %v6383_v33 = vpack.i.bf16 %v8447_v47, %v8426_v39 }
 0x11a   :  { %1269 = vst.msk [vmem:[#allocation2 + $0x1b8] sm:$0xff] %vm269_vm2, %v8370_v18  ;;  %v7628_v21 = vld [vmem:[#allocation6] sm:$0xff]   ;;  %v1139_v18 = vsel %vm1137_vm3, %v7630_v23, 0 }
 0x11b   :  { %6314 = vrot.lane.b32.xlu1 %v6313_v8, %s8035_s16  ;;  %6068 = vmatprep.subr.bf16.mxu0 %v7628_v21  ;;  %v8572_v44 = vld [vmem:[#allocation2 + $0xdf] sm:$0xff] }
 0x11c   :  { %6309 = vrot.lane.b32.xlu0 %v6308_v9, %s8035_s16  ;;  %6069 = vmatpush3.bf16.msra.mxu0 %v7628_v21  ;;  %v406_v60 = vld [vmem:[#allocation2 + $0xe0] sm:$0xff]  ;;  %v6403_v36 = vpack.i.bf16 %v8572_v44, %v8435_v43  ;;  %v8589_v8 = vld [vmem:[#allocation2 + $0xf8] sm:$0xff]  ;;  %v6443_v9 = vpack.i.bf16 %v8464_v53, %v8462_v52  ;;  %v6473_v21 = vpack.i.bf16 %v8486_v63, %v8464_v53 }
 0x11d   :  { %6070 = vmatprep.subr.bf16.mxu0 %v7629_v22  ;;  %v6413_v39 = vpack.i.bf16 %v406_v60, %v8447_v47  ;;  %v422_v41 = vld [vmem:[#allocation2 + $0xe1] sm:$0xff]  ;;  %v326_v40 = vld [vmem:[#allocation2 + $0xf9] sm:$0xff]  ;;  %v6428_v47 = vpack.i.bf16 %v8458_v51, %v8589_v8  ;;  %v6533_v53 = vpack.i.bf16 %v8512_v7, %v8510_v6 }
 0x11e   :  { %v6423_v37 = vpack.i.bf16 %v422_v41, %v8449_v48  ;;  %v6438_v48 = vpack.i.bf16 %v8466_v54, %v326_v40  ;;  %v1318_v40 = vld [vmem:[#allocation2 + $0x1f] sm:$0xff] }
 0x11f   :  { %6324 = vrot.lane.b32.xlu1 %v6323_v19, %s8036_s26  ;;  %v6453_v19 = vpack.i.bf16 %v8468_v55, %v8470_v56 }
 0x120   :  { %6319 = vrot.lane.b32.xlu0 %v6318_v17, %s8036_s26  ;;  %6071 = vmatpush3.bf16.msra.mxu0 %v7629_v22  ;;  %v6448_v17 = vpack.i.bf16 %v8482_v61, %v8472_v57  ;;  %v6468_v22 = vpack.i.bf16 %v8462_v52, %v8466_v54  ;;  %v6523_v52 = vpack.i.bf16 %v8508_v5, %v8502_v3 }
 0x121   :  { %6240 = vmatprep.subr.msk.bf16.mxu0 %vm1137_vm3, %v7630_v23  ;;  %v394_v23 = vld [vmem:[#allocation2 + $0x16f] sm:$0xff] }
 0x122   :  { %v6528_v54 = vpack.i.bf16 %v8520_v10, %v394_v23 }
 0x123   :  { %6334 = vrot.lane.b32.xlu1 %v6333_v16, %s8037_s0 }
 0x124   :  { %6329 = vrot.lane.b32.xlu0 %v8406_v31, %s8037_s0  ;;  %6073 = vmatpush3.bf16.msra.mxu0 %v1139_v18  ;;  %v6373_v31 = vpack.i.bf16 %v8435_v43, %v8433_v42  ;;  %v6433_v43 = vpack.i.bf16 %v8456_v50, %v8454_v49  ;;  %v426_v18 = vld [vmem:[#allocation2 + $0x171] sm:$0xff]  ;;  %v6483_v49 = vpack.i.bf16 %v394_v23, %v8468_v55 }
 0x125   :  { %v6478_v50 = vpack.i.bf16 %v8470_v56, %v8482_v61  ;;  %v8720_v23 = vld [vmem:[#allocation2 + $0x4f] sm:$0xff] }
 0x127   :  { %6344 = vrot.lane.b32.xlu1 %v6343_v24, %s8038_s24 }
 0x128   :  { %6339 = vrot.lane.b32.xlu0 %v8402_v30, %s8038_s24  ;;  %v6368_v30 = vpack.i.bf16 %v8445_v46, %v8416_v35 }
 0x12b   :  { %6354 = vrot.lane.b32.xlu1 %v6353_v25, %s8017_s19 }
 0x12c   :  { %6349 = vrot.lane.b32.xlu0 %v6333_v16, %s8017_s19  ;;  %v410_v16 = vld [vmem:[#allocation2 + $0x170] sm:$0xff] }
 0x12d   :  { %v6493_v51 = vpack.i.bf16 %v410_v16, %v8484_v62  ;;  %v6553_v62 = vpack.i.bf16 %v8524_v14, %v8508_v5  ;;  %v430_v5 = vld [vmem:[#allocation2 + $0x1d1] sm:$0xff] }
 0x12f   :  { %6364 = vrot.lane.b32.xlu1 %v6363_v26, %s8025_s21 }
 0x130   :  { %6359 = vrot.lane.b32.xlu0 %v6343_v24, %s8025_s21  ;;  %v8625_v24 = vld [vmem:[#allocation2 + $0x16f] sm:$0xff] }
 0x131   :  { %1266 = vst.msk [vmem:[#allocation2 + $0x170] sm:$0xff] %vm269_vm2, %v8358_v15  ;;  %v6503_v15 = vpack.i.bf16 %v426_v18, %v8486_v63  ;;  %v6548_v63 = vpack.i.bf16 %v8502_v3, %v426_v18 }
 0x133   :  { %6374 = vrot.lane.b32.xlu1 %v6373_v31, %s8033_s12 }
 0x134   :  { %6369 = vrot.lane.b32.xlu0 %v6368_v30, %s8033_s12 }
 0x137   :  { %6384 = vrot.lane.b32.xlu1 %v6383_v33, %s8034_s23  ;;  %v8679_v33 = vld [vmem:[#allocation2 + $0x20] sm:$0xff] }
 0x138   :  { %6379 = vrot.lane.b32.xlu0 %v6378_v34, %s8034_s23  ;;  %v8681_v34 = vld [vmem:[#allocation2 + $0x38] sm:$0xff]  ;;  %v6588_v60 = vpack.i.bf16 %v8679_v33, %v8346_v12  ;;  %v286_v12 = vld [vmem:[#allocation2 + $0x7] sm:$0xff] }
 0x139   :  { %v6618_v18 = vpack.i.bf16 %v8681_v34, %v8679_v33 }
 0x13b   :  { %6394 = vrot.lane.b32.xlu1 %v6393_v45, %s8035_s16  ;;  %v8683_v45 = vld [vmem:[#allocation2 + $0x50] sm:$0xff] }
 0x13c   :  { %6389 = vrot.lane.b32.xlu0 %v6388_v59, %s8035_s16 }
 0x13f   :  { %6404 = vrot.lane.b32.xlu1 %v6403_v36, %s8036_s26  ;;  %v8699_v36 = vld [vmem:[#allocation2 + $0x39] sm:$0xff] }
 0x140   :  { %6399 = vrot.lane.b32.xlu0 %v6398_v38, %s8036_s26  ;;  %v8701_v38 = vld [vmem:[#allocation2 + $0x51] sm:$0xff] }
 0x143   :  { %6414 = vrot.lane.b32.xlu1 %v6413_v39, %s8037_s0 }
 0x144   :  { %6409 = vrot.lane.b32.xlu0 %v6353_v25, %s8037_s0 }
 0x147   :  { %6424 = vrot.lane.b32.xlu1 %v6423_v37, %s8038_s24 }
 0x148   :  { %6419 = vrot.lane.b32.xlu0 %v6363_v26, %s8038_s24  ;;  %v414_v26 = vld [vmem:[#allocation2 + $0x1d0] sm:$0xff] }
 0x149   :  { %v6573_v3 = vpack.i.bf16 %v414_v26, %v8522_v13 }
 0x14b   :  { %6434 = vrot.lane.b32.xlu1 %v6433_v43, %s8017_s19 }
 0x14c   :  { %6429 = vrot.lane.b32.xlu0 %v6428_v47, %s8017_s19 }
 0x14f   :  { %6444 = vrot.lane.b32.xlu1 %v6443_v9, %s8025_s21 }
 0x150   :  { %6439 = vrot.lane.b32.xlu0 %v6438_v48, %s8025_s21 }
 0x153   :  { %6454 = vrot.lane.b32.xlu1 %v6453_v19, %s8033_s12 }
 0x154   :  { %6449 = vrot.lane.b32.xlu0 %v6448_v17, %s8033_s12  ;;  %v8716_v17 = vpack.i.bf16 %v8701_v38, %v8699_v36 }
 0x157   :  { %6464 = vrot.lane.b32.xlu1 %v6463_v0, %s8034_s23  ;;  %v398_v0 = vld [vmem:[#allocation2 + $0x1cf] sm:$0xff] }
 0x158   :  { %6459 = vrot.lane.b32.xlu0 %v6458_v58, %s8034_s23  ;;  %v6538_v58 = vpack.i.bf16 %v8498_v1, %v410_v16  ;;  %v6563_v25 = vpack.i.bf16 %v398_v0, %v8512_v7  ;;  %v6558_v1 = vpack.i.bf16 %v8510_v6, %v8520_v10  ;;  %v6583_v7 = vpack.i.bf16 %v430_v5, %v8524_v14  ;;  %v8697_v14 = vld [vmem:[#allocation2 + $0x21] sm:$0xff] }
 0x159   :  { %v6598_v19 = vpack.i.bf16 %v8697_v14, %v8344_v11  ;;  %v8722_v16 = vld [vmem:[#allocation2 + $0x67] sm:$0xff] }
 0x15b   :  { %6474 = vrot.lane.b32.xlu1 %v6473_v21, %s8035_s16 }
 0x15c   :  { %6469 = vrot.lane.b32.xlu0 %v6468_v22, %s8035_s16 }
 0x15f   :  { %6484 = vrot.lane.b32.xlu1 %v6483_v49, %s8036_s26  ;;  %v6628_v49 = vpack.i.bf16 %v8699_v36, %v8697_v14 }
 0x160   :  { %6479 = vrot.lane.b32.xlu0 %v6478_v50, %s8036_s26 }
 0x163   :  { %6494 = vrot.lane.b32.xlu1 %v6493_v51, %s8037_s0 }
 0x164   :  { %6489 = vrot.lane.b32.xlu0 %v6433_v43, %s8037_s0  ;;  %v8707_v43 = vld [vmem:[#allocation2 + $0x37] sm:$0xff] }
 0x165   :  { %v6608_v22 = vpack.i.bf16 %v8707_v43, %v1318_v40 }
 0x167   :  { %6504 = vrot.lane.b32.xlu1 %v6503_v15, %s8038_s24 }
 0x168   :  { %6499 = vrot.lane.b32.xlu0 %v6443_v9, %s8038_s24 }
 0x16b   :  { %6514 = vrot.lane.b32.xlu1 %v8506_v4, %s8017_s19 }
 0x16c   :  { %6509 = vrot.lane.b32.xlu0 %v6493_v51, %s8017_s19 }
 0x16f   :  { %6524 = vrot.lane.b32.xlu1 %v6523_v52, %s8025_s21 }
 0x170   :  { %6519 = vrot.lane.b32.xlu0 %v6503_v15, %s8025_s21 }
 0x173   :  { %6534 = vrot.lane.b32.xlu1 %v6533_v53, %s8033_s12 }
 0x174   :  { %6529 = vrot.lane.b32.xlu0 %v6528_v54, %s8033_s12  ;;  %v8732_v54 = vld [vmem:[#allocation2 + $0x68] sm:$0xff] }
 0x177   :  { %6544 = vrot.lane.b32.xlu1 %v6543_v20, %s8034_s23 }
 0x178   :  { %6539 = vrot.lane.b32.xlu0 %v6538_v58, %s8034_s23  ;;  %v8734_v58 = vld [vmem:[#allocation2 + $0x69] sm:$0xff] }
 0x17b   :  { %6554 = vrot.lane.b32.xlu1 %v6553_v62, %s8035_s16 }
 0x17c   :  { %6549 = vrot.lane.b32.xlu0 %v6548_v63, %s8035_s16 }
 0x17d   :  { %v8668_v2 = vpop.permute.xlu1 %6279 }
 0x17e   :  { %v6270_v20 = vpop.permute.xlu0 %6269  ;;  %v6281_v21 = vunpack.i.l.bf16 %v8668_v2  ;;  %v6282_v11 = vunpack.i.h.bf16 %v8668_v2 }
 0x17f   :  { %6564 = vrot.lane.b32.xlu1 %v6563_v25, %s8036_s26  ;;  %v6271_v39 = vunpack.i.l.bf16 %v6270_v20  ;;  %v6272_v47 = vunpack.i.h.bf16 %v6270_v20  ;;  %v6633_v20 = vpack.i.bf16 %v8734_v58, %v8701_v38 }
 0x180   :  { %6559 = vrot.lane.b32.xlu0 %v6558_v1, %s8036_s26 }
 0x181   :  { %v8673_v31 = vpop.permute.xlu1 %6284  ;;  %v943_v50 = vsel %vm269_vm2, %v286_v12, %v6271_v39  ;;  %v944_v62 = vsel %vm269_vm2, %v8396_v29, %v6272_v47 }
 0x182   :  { %v6275_v30 = vpop.permute.xlu0 %6274  ;;  %v6287_v51 = vunpack.i.h.bf16 %v8673_v31  ;;  %v6286_v15 = vunpack.i.l.bf16 %v8673_v31  ;;  %v960_v29 = vsel %vm959_vm4, %v943_v50, %v6281_v21 }
 0x183   :  { %6574 = vrot.lane.b32.xlu1 %v6573_v3, %s8037_s0  ;;  %v6277_v9 = vunpack.i.h.bf16 %v6275_v30  ;;  %v6276_v48 = vunpack.i.l.bf16 %v6275_v30  ;;  %v6638_v3 = vpack.i.bf16 %v8720_v23, %v8707_v43  ;;  %v961_v30 = vsel %vm959_vm4, %v944_v62, %v6282_v11  ;;  %v8818_v43 = vld [vmem:[#allocation2 + $0x98] sm:$0xff] }
 0x184   :  { %6569 = vrot.lane.b32.xlu0 %v8506_v4, %s8037_s0  ;;  %v8695_v4 = vpack.i.bf16 %v8683_v45, %v8681_v34 }
 0x185   :  { %v8685_v59 = vpop.permute.xlu1 %6294  ;;  %v946_v63 = vsel %vm269_vm2, %v8394_v28, %v6277_v9  ;;  %v945_v0 = vsel %vm269_vm2, %v8408_v32, %v6276_v48  ;;  %v6613_v28 = vpack.i.bf16 %v8722_v16, %v8720_v23  ;;  %v6623_v32 = vpack.i.bf16 %v8732_v54, %v8683_v45  ;;  %v8820_v23 = vld [vmem:[#allocation2 + $0xb0] sm:$0xff] }
 0x186   :  { %v8687_v13 = vpop.permute.xlu0 %6289  ;;  %v6296_v25 = vunpack.i.l.bf16 %v8685_v59  ;;  %v6297_v1 = vunpack.i.h.bf16 %v8685_v59  ;;  %v962_v5 = vsel %vm959_vm4, %v945_v0, %v6286_v15  ;;  %v963_v31 = vsel %vm959_vm4, %v946_v63, %v6287_v51 }
 0x187   :  { %6584 = vrot.lane.b32.xlu1 %v6583_v7, %s8038_s24  ;;  %v6292_v26 = vunpack.i.h.bf16 %v8687_v13  ;;  %v6291_v2 = vunpack.i.l.bf16 %v8687_v13 }
 0x188   :  { %6579 = vrot.lane.b32.xlu0 %v6523_v52, %s8038_s24  ;;  %v979_v59 = vsel %vm976_vm5, %v962_v5, %v6296_v25  ;;  %v980_v38 = vsel %vm976_vm5, %v963_v31, %v6297_v1 }
 0x189   :  { %v8703_v41 = vpop.permute.xlu1 %6304  ;;  %v977_v39 = vsel %vm976_vm5, %v960_v29, %v6291_v2  ;;  %v978_v40 = vsel %vm976_vm5, %v961_v30, %v6292_v26 }
 0x18a   :  { %v8705_v37 = vpop.permute.xlu0 %6299  ;;  %v6306_v7 = vunpack.i.l.bf16 %v8703_v41  ;;  %v6307_v45 = vunpack.i.h.bf16 %v8703_v41 }
 0x18b   :  { %6594 = vrot.lane.b32.xlu1 %v8695_v4, %s8017_s19  ;;  %v6302_v13 = vunpack.i.h.bf16 %v8705_v37 }
 0x18c   :  { %6589 = vrot.lane.b32.xlu0 %v6588_v60, %s8017_s19  ;;  %v6301_v60 = vunpack.i.l.bf16 %v8705_v37  ;;  %v996_v41 = vsel %vm993_vm6, %v979_v59, %v6306_v7  ;;  %v997_v15 = vsel %vm993_vm6, %v980_v38, %v6307_v45  ;;  %v8786_v45 = vld [vmem:[#allocation2 + $0x7f] sm:$0xff] }
 0x18d   :  { %v6315_v52 = vpop.permute.xlu1 %6314  ;;  %v995_v63 = vsel %vm993_vm6, %v978_v40, %v6302_v13  ;;  %v6643_v36 = vpack.i.bf16 %v8786_v45, %v8722_v16  ;;  %v8815_v16 = vld [vmem:[#allocation2 + $0x81] sm:$0xff] }
 0x18e   :  { %v6310_v53 = vpop.permute.xlu0 %6309  ;;  %v6316_v47 = vunpack.i.l.bf16 %v6315_v52  ;;  %v6317_v12 = vunpack.i.h.bf16 %v6315_v52  ;;  %v994_v62 = vsel %vm993_vm6, %v977_v39, %v6301_v60 }
 0x18f   :  { %6604 = vrot.lane.b32.xlu1 %v8716_v17, %s8025_s21  ;;  %v6312_v9 = vunpack.i.h.bf16 %v6310_v53  ;;  %v6311_v48 = vunpack.i.l.bf16 %v6310_v53 }
 0x190   :  { %6599 = vrot.lane.b32.xlu0 %v6598_v19, %s8025_s21  ;;  %v1013_v0 = vsel %vm1010_vm7, %v996_v41, %v6316_v47  ;;  %v1014_v1 = vsel %vm1010_vm7, %v997_v15, %v6317_v12  ;;  %v8834_v15 = vld [vmem:[#allocation2 + $0xc7] sm:$0xff] }
 0x191   :  { %v6325_v33 = vpop.permute.xlu1 %6324  ;;  %v1011_v26 = vsel %vm1010_vm7, %v994_v62, %v6311_v48  ;;  %v1012_v2 = vsel %vm1010_vm7, %v995_v63, %v6312_v9 }
 0x192   :  { %v6320_v34 = vpop.permute.xlu0 %6319  ;;  %v6326_v19 = vunpack.i.l.bf16 %v6325_v33  ;;  %v6327_v21 = vunpack.i.h.bf16 %v6325_v33 }
 0x193   :  { %6614 = vrot.lane.b32.xlu1 %v6613_v28, %s8033_s12  ;;  %v6322_v11 = vunpack.i.h.bf16 %v6320_v34  ;;  %v6321_v37 = vunpack.i.l.bf16 %v6320_v34 }
 0x194   :  { %6609 = vrot.lane.b32.xlu0 %v6608_v22, %s8033_s12  ;;  %v1030_v28 = vsel %vm1027_vm8, %v1013_v0, %v6326_v19  ;;  %v1031_v29 = vsel %vm1027_vm8, %v1014_v1, %v6327_v21 }
 0x195   :  { %v6335_v50 = vpop.permute.xlu1 %6334  ;;  %v1028_v7 = vsel %vm1027_vm8, %v1011_v26, %v6321_v37 }
 0x196   :  { %v6330_v51 = vpop.permute.xlu0 %6329  ;;  %v6336_v22 = vunpack.i.l.bf16 %v6335_v50  ;;  %v6337_v52 = vunpack.i.h.bf16 %v6335_v50  ;;  %v8828_v50 = vld [vmem:[#allocation2 + $0xb1] sm:$0xff] }
 0x197   :  { %v6332_v25 = vunpack.i.h.bf16 %v6330_v51  ;;  %v6331_v53 = vunpack.i.l.bf16 %v6330_v51  ;;  %6624 = vrot.lane.b32.xlu1 %v6623_v32, %s8034_s23  ;;  %v8832_v51 = vld [vmem:[#allocation2 + $0xaf] sm:$0xff] }
 0x198   :  { %6619 = vrot.lane.b32.xlu0 %v6618_v18, %s8034_s23  ;;  %v1047_v5 = vsel %vm1044_vm9, %v1030_v28, %v6336_v22  ;;  %v1029_v18 = vsel %vm1027_vm8, %v1012_v2, %v6322_v11  ;;  %v1048_v13 = vsel %vm1044_vm9, %v1031_v29, %v6337_v52  ;;  %v6693_v0 = vpack.i.bf16 %v8834_v15, %v8832_v51 }
 0x199   :  { %v6345_v31 = vpop.permute.xlu1 %6344  ;;  %v1045_v60 = vsel %vm1044_vm9, %v1028_v7, %v6331_v53  ;;  %v1046_v38 = vsel %vm1044_vm9, %v1029_v18, %v6332_v25  ;;  %v8856_v25 = vld [vmem:[#allocation2 + $0xc8] sm:$0xff] }
 0x19a   :  { %v6340_v30 = vpop.permute.xlu0 %6339  ;;  %v6347_v33 = vunpack.i.h.bf16 %v6345_v31  ;;  %v6346_v32 = vunpack.i.l.bf16 %v6345_v31  ;;  %v8858_v53 = vld [vmem:[#allocation2 + $0xc9] sm:$0xff] }
 0x19b   :  { %v6342_v34 = vunpack.i.h.bf16 %v6340_v30  ;;  %v6341_v59 = vunpack.i.l.bf16 %v6340_v30  ;;  %6634 = vrot.lane.b32.xlu1 %v6633_v20, %s8035_s16 }
 0x19c   :  { %6629 = vrot.lane.b32.xlu0 %v6628_v49, %s8035_s16  ;;  %v1063_v39 = vsel %vm210_vm0, %v1047_v5, %v6346_v32  ;;  %v1064_v40 = vsel %vm210_vm0, %v1048_v13, %v6347_v33  ;;  %v8802_v49 = vld [vmem:[#allocation2 + $0x80] sm:$0xff]  ;;  %v6703_v33 = vpack.i.bf16 %v8856_v25, %v8820_v23 }
 0x19d   :  { %v1061_v47 = vsel %vm210_vm0, %v1045_v60, %v6341_v59  ;;  %v1062_v12 = vsel %vm210_vm0, %v1046_v38, %v6342_v34  ;;  %v6355_v9 = vpop.permute.xlu1 %6354  ;;  %v1078_v14 = vpack.c.bf16 %v1064_v40, %v1063_v39  ;;  %v6653_v21 = vpack.i.bf16 %v8802_v49, %v8732_v54  ;;  %v8826_v54 = vld [vmem:[#allocation2 + $0x99] sm:$0xff] }
 0x19e   :  { %v6350_v48 = vpop.permute.xlu0 %6349  ;;  %v1077_v19 = vpack.c.bf16 %v1062_v12, %v1061_v47  ;;  %v6698_v52 = vpack.i.bf16 %v8818_v43, %v8802_v49  ;;  %v6357_v1 = vunpack.i.h.bf16 %v6355_v9  ;;  %v6356_v26 = vunpack.i.l.bf16 %v6355_v9 }
 0x19f   :  { %6644 = vrot.lane.b32.xlu1 %v6643_v36, %s8036_s26  ;;  %v6352_v2 = vunpack.i.h.bf16 %v6350_v48  ;;  %v6351_v28 = vunpack.i.l.bf16 %v6350_v48  ;;  %v6708_v32 = vpack.i.bf16 %v8826_v54, %v8815_v16  ;;  %v6713_v34 = vpack.i.bf16 %v8858_v53, %v8828_v50 }
 0x1a0   :  { %6074 = vmatprep.mubr.msk.bf16.mxu0 %vm1112_vm10, %v1077_v19  ;;  %6639 = vrot.lane.b32.xlu0 %v6638_v3, %s8036_s26  ;;  %v6668_v3 = vpack.i.bf16 %v8815_v16, %v8734_v58  ;;  %v8848_v58 = vpack.i.bf16 %v8828_v50, %v8826_v54  ;;  %v950_v39 = vsel %vm269_vm2, %v8433_v42, %v6357_v1 }
 0x1a1   :  { %6075 = vmatmul.mubr.msk.bf16.vlgmr.msra.gmra.mrb[0].mxu0 %vm1112_vm10, %v1078_v14  ;;  %v6365_v20 = vpop.permute.xlu1 %6364  ;;  %v949_v40 = vsel %vm269_vm2, %v8445_v46, %v6356_v26  ;;  %v948_v47 = vsel %vm269_vm2, %v8416_v35, %v6352_v2  ;;  %v947_v12 = vsel %vm269_vm2, %v8392_v27, %v6351_v28  ;;  %v6723_v54 = vpack.i.bf16 %v8572_v44, %v8834_v15  ;;  %v1405_v44 = vld [vmem:[#allocation2 + $0xe1] sm:$0xff] }
 0x1a2   :  { %v6360_v41 = vpop.permute.xlu0 %6359  ;;  %v6367_v29 = vunpack.i.h.bf16 %v6365_v20  ;;  %v6366_v5 = vunpack.i.l.bf16 %v6365_v20 }
 0x1a3   :  { %6654 = vrot.lane.b32.xlu1 %v6653_v21, %s8037_s0  ;;  %v6362_v31 = vunpack.i.h.bf16 %v6360_v41  ;;  %v6361_v30 = vunpack.i.l.bf16 %v6360_v41 }
 0x1a4   :  { %6649 = vrot.lane.b32.xlu0 %v8695_v4, %s8037_s0  ;;  %v8830_v4 = vld [vmem:[#allocation2 + $0x97] sm:$0xff]  ;;  %v966_v9 = vsel %vm959_vm4, %v949_v40, %v6366_v5  ;;  %v967_v48 = vsel %vm959_vm4, %v950_v39, %v6367_v29 }
 0x1a5   :  { %v6375_v11 = vpop.permute.xlu1 %6374  ;;  %v6688_v22 = vpack.i.bf16 %v8830_v4, %v8786_v45  ;;  %v6718_v59 = vpack.i.bf16 %v8832_v51, %v8830_v4  ;;  %v964_v19 = vsel %vm959_vm4, %v947_v12, %v6361_v30  ;;  %v965_v14 = vsel %vm959_vm4, %v948_v47, %v6362_v31 }
 0x1a6   :  { %v6370_v37 = vpop.permute.xlu0 %6369  ;;  %v6377_v45 = vunpack.i.h.bf16 %v6375_v11  ;;  %v6376_v13 = vunpack.i.l.bf16 %v6375_v11 }
 0x1a7   :  { %6664 = vrot.lane.b32.xlu1 %v6653_v21, %s8017_s19  ;;  %v6372_v60 = vunpack.i.h.bf16 %v6370_v37  ;;  %v6371_v38 = vunpack.i.l.bf16 %v6370_v37 }
 0x1a8   :  { %6659 = vrot.lane.b32.xlu0 %v8716_v17, %s8038_s24  ;;  %v8843_v17 = vpack.i.bf16 %v8820_v23, %v8818_v43  ;;  %v983_v20 = vsel %vm976_vm5, %v966_v9, %v6376_v13  ;;  %v984_v41 = vsel %vm976_vm5, %v967_v48, %v6377_v45 }
 0x1a9   :  { %v8836_v62 = vpop.permute.xlu1 %6384  ;;  %v981_v21 = vsel %vm976_vm5, %v964_v19, %v6371_v38  ;;  %v982_v11 = vsel %vm976_vm5, %v965_v14, %v6372_v60 }
 0x1aa   :  { %v8838_v63 = vpop.permute.xlu0 %6379  ;;  %v6387_v42 = vunpack.i.h.bf16 %v8836_v62  ;;  %v6386_v35 = vunpack.i.l.bf16 %v8836_v62 }
 0x1ab   :  { %6674 = vrot.lane.b32.xlu1 %v8843_v17, %s8017_s19  ;;  %v6382_v46 = vunpack.i.h.bf16 %v8838_v63  ;;  %v6381_v27 = vunpack.i.l.bf16 %v8838_v63 }
 0x1ac   :  { %6669 = vrot.lane.b32.xlu0 %v6668_v3, %s8038_s24  ;;  %v1000_v29 = vsel %vm993_vm6, %v983_v20, %v6386_v35  ;;  %v1001_v5 = vsel %vm993_vm6, %v984_v41, %v6387_v42 }
 0x1ad   :  { %v6395_v7 = vpop.permute.xlu1 %6394  ;;  %v998_v31 = vsel %vm993_vm6, %v981_v21, %v6381_v27 }
 0x1ae   :  { %v6390_v18 = vpop.permute.xlu0 %6389  ;;  %v6397_v37 = vunpack.i.h.bf16 %v6395_v7  ;;  %v6396_v43 = vunpack.i.l.bf16 %v6395_v7 }
 0x1af   :  { %6684 = vrot.lane.b32.xlu1 %v8848_v58, %s8025_s21  ;;  %v6392_v23 = vunpack.i.h.bf16 %v6390_v18 }
 0x1b0   :  { %6679 = vrot.lane.b32.xlu0 %v6668_v3, %s8025_s21  ;;  %v6391_v3 = vunpack.i.l.bf16 %v6390_v18  ;;  %v1017_v13 = vsel %vm1010_vm7, %v1000_v29, %v6396_v43  ;;  %v1018_v60 = vsel %vm1010_vm7, %v1001_v5, %v6397_v37  ;;  %v8969_v29 = vld [vmem:[#allocation2 + $0x127] sm:$0xff]  ;;  %v8973_v5 = vld [vmem:[#allocation2 + $0x157] sm:$0xff] }
 0x1b1   :  { %v6405_v36 = vpop.permute.xlu1 %6404 }
 0x1b2   :  { %v6400_v49 = vpop.permute.xlu0 %6399  ;;  %v6407_v1 = vunpack.i.h.bf16 %v6405_v36  ;;  %v6406_v62 = vunpack.i.l.bf16 %v6405_v36 }
 0x1b3   :  { %v6402_v26 = vunpack.i.h.bf16 %v6400_v49  ;;  %v6401_v2 = vunpack.i.l.bf16 %v6400_v49  ;;  %6694 = vrot.lane.b32.xlu1 %v6693_v0, %s8033_s12  ;;  %v1015_v0 = vsel %vm1010_vm7, %v998_v31, %v6391_v3 }
 0x1b4   :  { %6689 = vrot.lane.b32.xlu0 %v6688_v22, %s8033_s12  ;;  %v999_v22 = vsel %vm993_vm6, %v982_v11, %v6382_v46  ;;  %v1034_v39 = vsel %vm1027_vm8, %v1017_v13, %v6406_v62  ;;  %v1035_v40 = vsel %vm1027_vm8, %v1018_v60, %v6407_v1  ;;  %v8954_v1 = vld [vmem:[#allocation2 + $0x128] sm:$0xff]  ;;  %v8956_v62 = vld [vmem:[#allocation2 + $0x140] sm:$0xff]  ;;  %v8996_v13 = vld [vmem:[#allocation2 + $0x158] sm:$0xff] }
 0x1b5   :  { %v6415_v28 = vpop.permute.xlu1 %6414  ;;  %v1016_v38 = vsel %vm1010_vm7, %v999_v22, %v6392_v23  ;;  %v1032_v47 = vsel %vm1027_vm8, %v1015_v0, %v6401_v2  ;;  %v8963_v2 = vld [vmem:[#allocation2 + $0x129] sm:$0xff]  ;;  %v8998_v60 = vld [vmem:[#allocation2 + $0x159] sm:$0xff] }
 0x1b6   :  { %v6410_v63 = vpop.permute.xlu0 %6409  ;;  %v6417_v30 = vunpack.i.h.bf16 %v6415_v28  ;;  %v6416_v7 = vunpack.i.l.bf16 %v6415_v28  ;;  %v1033_v12 = vsel %vm1027_vm8, %v1016_v38, %v6402_v26  ;;  %v8958_v26 = vld [vmem:[#allocation2 + $0x111] sm:$0xff]  ;;  %v8965_v28 = vld [vmem:[#allocation2 + $0x141] sm:$0xff] }
 0x1b7   :  { %v6412_v45 = vunpack.i.h.bf16 %v6410_v63  ;;  %v6411_v18 = vunpack.i.l.bf16 %v6410_v63  ;;  %6704 = vrot.lane.b32.xlu1 %v6703_v33, %s8034_s23  ;;  %v8967_v63 = vld [vmem:[#allocation2 + $0x10f] sm:$0xff] }
 0x1b8   :  { %6699 = vrot.lane.b32.xlu0 %v6698_v52, %s8034_s23  ;;  %v1051_v49 = vsel %vm1044_vm9, %v1034_v39, %v6416_v7  ;;  %v1052_v42 = vsel %vm1044_vm9, %v1035_v40, %v6417_v30  ;;  %v8988_v30 = vpack.i.bf16 %v8965_v28, %v8963_v2  ;;  %v6768_v7 = vpack.i.bf16 %v8969_v29, %v8967_v63 }
 0x1b9   :  { %v6425_v9 = vpop.permute.xlu1 %6424  ;;  %v1049_v35 = vsel %vm1044_vm9, %v1032_v47, %v6411_v18  ;;  %v1050_v46 = vsel %vm1044_vm9, %v1033_v12, %v6412_v45  ;;  %v9004_v47 = vld [vmem:[#allocation2 + $0xf7] sm:$0xff] }
 0x1ba   :  { %v6420_v48 = vpop.permute.xlu0 %6419  ;;  %v6427_v52 = vunpack.i.h.bf16 %v6425_v9  ;;  %v6426_v19 = vunpack.i.l.bf16 %v6425_v9 }
 0x1bb   :  { %v6422_v14 = vunpack.i.h.bf16 %v6420_v48  ;;  %v6421_v36 = vunpack.i.l.bf16 %v6420_v48  ;;  %6714 = vrot.lane.b32.xlu1 %v6713_v34, %s8035_s16  ;;  %v8943_v34 = vld [vmem:[#allocation2 + $0x110] sm:$0xff] }
 0x1bc   :  { %6709 = vrot.lane.b32.xlu0 %v6708_v32, %s8035_s16  ;;  %v1067_v27 = vsel %vm210_vm0, %v1051_v49, %v6426_v19  ;;  %v1068_v33 = vsel %vm210_vm0, %v1052_v42, %v6427_v52  ;;  %v1389_v32 = vld [vmem:[#allocation2 + $0xe0] sm:$0xff]  ;;  %v6778_v18 = vpack.i.bf16 %v8954_v1, %v8943_v34  ;;  %v6788_v49 = vpack.i.bf16 %v8963_v2, %v8958_v26 }
 0x1bd   :  { %v1065_v20 = vsel %vm210_vm0, %v1049_v35, %v6421_v36  ;;  %v1066_v41 = vsel %vm210_vm0, %v1050_v46, %v6422_v14  ;;  %v8921_v21 = vpop.permute.xlu1 %6434  ;;  %v1080_v16 = vpack.c.bf16 %v1068_v33, %v1067_v27  ;;  %v6733_v50 = vpack.i.bf16 %v1389_v32, %v8856_v25  ;;  %v1310_v25 = vld [vmem:[#allocation2 + $0xf9] sm:$0xff] }
 0x1be   :  { %v8923_v11 = vpop.permute.xlu0 %6429  ;;  %v1079_v37 = vpack.c.bf16 %v1066_v41, %v1065_v20  ;;  %v6437_v0 = vunpack.i.h.bf16 %v8921_v21  ;;  %v6436_v38 = vunpack.i.l.bf16 %v8921_v21  ;;  %v6783_v36 = vpack.i.bf16 %v8996_v13, %v8956_v62 }
 0x1bf   :  { %6724 = vrot.lane.b32.xlu1 %v6723_v54, %s8036_s26  ;;  %v6432_v39 = vunpack.i.h.bf16 %v8923_v11  ;;  %v6431_v40 = vunpack.i.l.bf16 %v8923_v11  ;;  %v6793_v42 = vpack.i.bf16 %v8998_v60, %v8965_v28 }
 0x1c0   :  { %6078 = vmatprep.mubr.msk.bf16.mxu0 %vm1112_vm10, %v1079_v37  ;;  %6719 = vrot.lane.b32.xlu0 %v6718_v59, %s8036_s26  ;;  %v6743_v59 = vpack.i.bf16 %v8943_v34, %v8589_v8  ;;  %v8971_v8 = vld [vmem:[#allocation2 + $0x13f] sm:$0xff]  ;;  %v954_v41 = vsel %vm269_vm2, %v8470_v56, %v6437_v0  ;;  %v953_v21 = vsel %vm269_vm2, %v8482_v61, %v6436_v38 }
 0x1c1   :  { %6079 = vmatmul.mubr.msk.bf16.gmra.mrb[4].mxu0 %vm1112_vm10, %v1080_v16  ;;  %v8937_v43 = vpop.permute.xlu1 %6444  ;;  %v6773_v45 = vpack.i.bf16 %v8973_v5, %v8971_v8  ;;  %v6798_v35 = vpack.i.bf16 %v8971_v8, %v8969_v29  ;;  %v952_v11 = vsel %vm269_vm2, %v8472_v57, %v6432_v39  ;;  %v951_v37 = vsel %vm269_vm2, %v9004_v47, %v6431_v40 }
 0x1c2   :  { %v8939_v23 = vpop.permute.xlu0 %6439  ;;  %v6447_v12 = vunpack.i.h.bf16 %v8937_v43  ;;  %v6446_v9 = vunpack.i.l.bf16 %v8937_v43 }
 0x1c3   :  { %6734 = vrot.lane.b32.xlu1 %v6733_v50, %s8037_s0  ;;  %v6442_v48 = vunpack.i.h.bf16 %v8939_v23  ;;  %v6441_v52 = vunpack.i.l.bf16 %v8939_v23 }
 0x1c4   :  { %6729 = vrot.lane.b32.xlu0 %v8843_v17, %s8037_s0  ;;  %v6748_v17 = vpack.i.bf16 %v1405_v44, %v8858_v53  ;;  %v6758_v53 = vpack.i.bf16 %v8958_v26, %v1310_v25  ;;  %v970_v16 = vsel %vm959_vm4, %v953_v21, %v6446_v9  ;;  %v971_v54 = vsel %vm959_vm4, %v954_v41, %v6447_v12 }
 0x1c5   :  { %v8947_v15 = vpop.permute.xlu1 %6454  ;;  %v968_v32 = vsel %vm959_vm4, %v951_v37, %v6441_v52  ;;  %v969_v43 = vsel %vm959_vm4, %v952_v11, %v6442_v48 }
 0x1c6   :  { %v8949_v3 = vpop.permute.xlu0 %6449  ;;  %v6457_v46 = vunpack.i.h.bf16 %v8947_v15  ;;  %v6456_v27 = vunpack.i.l.bf16 %v8947_v15 }
 0x1c7   :  { %6744 = vrot.lane.b32.xlu1 %v6743_v59, %s8017_s19  ;;  %v6452_v33 = vunpack.i.h.bf16 %v8949_v3  ;;  %v6451_v20 = vunpack.i.l.bf16 %v8949_v3 }
 0x1c8   :  { %6739 = vrot.lane.b32.xlu0 %v8848_v58, %s8038_s24  ;;  %v8982_v58 = vpack.i.bf16 %v8956_v62, %v8954_v1  ;;  %v987_v44 = vsel %vm976_vm5, %v970_v16, %v6456_v27  ;;  %v988_v15 = vsel %vm976_vm5, %v971_v54, %v6457_v46 }
 0x1c9   :  { %v8975_v31 = vpop.permute.xlu1 %6464  ;;  %v985_v3 = vsel %vm976_vm5, %v968_v32, %v6451_v20  ;;  %v986_v59 = vsel %vm976_vm5, %v969_v43, %v6452_v33 }
 0x1ca   :  { %v8977_v22 = vpop.permute.xlu0 %6459  ;;  %v6467_v56 = vunpack.i.h.bf16 %v8975_v31  ;;  %v6466_v57 = vunpack.i.l.bf16 %v8975_v31 }
 0x1cb   :  { %6754 = vrot.lane.b32.xlu1 %v8982_v58, %s8017_s19  ;;  %v6462_v61 = vunpack.i.h.bf16 %v8977_v22  ;;  %v6461_v34 = vunpack.i.l.bf16 %v8977_v22 }
 0x1cc   :  { %6749 = vrot.lane.b32.xlu0 %v6748_v17, %s8038_s24  ;;  %v1004_v40 = vsel %vm993_vm6, %v987_v44, %v6466_v57  ;;  %v1005_v12 = vsel %vm993_vm6, %v988_v15, %v6467_v56 }
 0x1cd   :  { %v6475_v19 = vpop.permute.xlu1 %6474  ;;  %v1002_v9 = vsel %vm993_vm6, %v985_v3, %v6461_v34 }
 0x1ce   :  { %v6470_v14 = vpop.permute.xlu0 %6469  ;;  %v6477_v1 = vunpack.i.h.bf16 %v6475_v19  ;;  %v6476_v62 = vunpack.i.l.bf16 %v6475_v19 }
 0x1cf   :  { %6764 = vrot.lane.b32.xlu1 %v8988_v30, %s8025_s21  ;;  %v6472_v25 = vunpack.i.h.bf16 %v6470_v14  ;;  %v6471_v17 = vunpack.i.l.bf16 %v6470_v14 }
 0x1d0   :  { %6759 = vrot.lane.b32.xlu0 %v6758_v53, %s8025_s21  ;;  %v1021_v46 = vsel %vm1010_vm7, %v1004_v40, %v6476_v62  ;;  %v1022_v27 = vsel %vm1010_vm7, %v1005_v12, %v6477_v1  ;;  %v7631_v62 = vld [vmem:[#allocation12] sm:$0xff]   ;;  %v9125_v40 = vld [vmem:[#allocation2 + $0x19f] sm:$0xff]  ;;  %v9127_v12 = vld [vmem:[#allocation2 + $0x1b7] sm:$0xff] }
 0x1d1   :  { %v6485_v23 = vpop.permute.xlu1 %6484  ;;  %6090 = vmatprep.subr.bf16.mxu1 %v7631_v62 }
 0x1d2   :  { %v6480_v50 = vpop.permute.xlu0 %6479  ;;  %v6487_v53 = vunpack.i.h.bf16 %v6485_v23  ;;  %v6486_v31 = vunpack.i.l.bf16 %v6485_v23  ;;  %v9063_v23 = vld [vmem:[#allocation2 + $0x16f] sm:$0xff]  ;;  %6091 = vmatpush3.bf16.msra.mxu1 %v7631_v62 }
 0x1d3   :  { %v6482_v0 = vunpack.i.h.bf16 %v6480_v50  ;;  %v6481_v38 = vunpack.i.l.bf16 %v6480_v50  ;;  %6774 = vrot.lane.b32.xlu1 %v6773_v45, %s8033_s12  ;;  %v1019_v45 = vsel %vm1010_vm7, %v1002_v9, %v6471_v17  ;;  %v6803_v2 = vpack.i.bf16 %v9063_v23, %v8973_v5  ;;  %v9104_v17 = vld [vmem:[#allocation2 + $0x171] sm:$0xff] }
 0x1d4   :  { %6769 = vrot.lane.b32.xlu0 %v6768_v7, %s8033_s12  ;;  %v1003_v7 = vsel %vm993_vm6, %v986_v59, %v6462_v61  ;;  %v1038_v20 = vsel %vm1027_vm8, %v1021_v46, %v6486_v31  ;;  %v1039_v41 = vsel %vm1027_vm8, %v1022_v27, %v6487_v53  ;;  %v9111_v31 = vld [vmem:[#allocation2 + $0x188] sm:$0xff]  ;;  %v9151_v46 = vld [vmem:[#allocation2 + $0x1b8] sm:$0xff] }
 0x1d5   :  { %v6495_v39 = vpop.permute.xlu1 %6494  ;;  %v1020_v33 = vsel %vm1010_vm7, %v1003_v7, %v6472_v25  ;;  %v1036_v21 = vsel %vm1027_vm8, %v1019_v45, %v6481_v38  ;;  %v9119_v38 = vld [vmem:[#allocation2 + $0x189] sm:$0xff]  ;;  %v9153_v27 = vld [vmem:[#allocation2 + $0x1b9] sm:$0xff] }
 0x1d6   :  { %v6490_v22 = vpop.permute.xlu0 %6489  ;;  %v6497_v48 = vunpack.i.h.bf16 %v6495_v39  ;;  %v6496_v52 = vunpack.i.l.bf16 %v6495_v39  ;;  %v1037_v11 = vsel %vm1027_vm8, %v1020_v33, %v6482_v0  ;;  %v9113_v0 = vld [vmem:[#allocation2 + $0x1a0] sm:$0xff] }
 0x1d7   :  { %v6492_v19 = vunpack.i.h.bf16 %v6490_v22  ;;  %v6491_v14 = vunpack.i.l.bf16 %v6490_v22  ;;  %6784 = vrot.lane.b32.xlu1 %v6783_v36, %s8034_s23  ;;  %v9121_v39 = vld [vmem:[#allocation2 + $0x1a1] sm:$0xff] }
 0x1d8   :  { %6779 = vrot.lane.b32.xlu0 %v6778_v18, %s8034_s23  ;;  %v1055_v50 = vsel %vm1044_vm9, %v1038_v20, %v6496_v52  ;;  %v1056_v56 = vsel %vm1044_vm9, %v1039_v41, %v6497_v48  ;;  %v9123_v22 = vld [vmem:[#allocation2 + $0x187] sm:$0xff]  ;;  %v9143_v48 = vpack.i.bf16 %v9121_v39, %v9119_v38 }
 0x1d9   :  { %v6505_v37 = vpop.permute.xlu1 %6504  ;;  %v1053_v57 = vsel %vm1044_vm9, %v1036_v21, %v6491_v14  ;;  %v1054_v61 = vsel %vm1044_vm9, %v1037_v11, %v6492_v19  ;;  %v6848_v52 = vpack.i.bf16 %v9123_v22, %v9063_v23  ;;  %v6853_v14 = vpack.i.bf16 %v9127_v12, %v9125_v40 }
 0x1da   :  { %v6500_v16 = vpop.permute.xlu0 %6499  ;;  %v6507_v18 = vunpack.i.h.bf16 %v6505_v37  ;;  %v6506_v54 = vunpack.i.l.bf16 %v6505_v37 }
 0x1db   :  { %v6502_v32 = vunpack.i.h.bf16 %v6500_v16  ;;  %v6501_v43 = vunpack.i.l.bf16 %v6500_v16  ;;  %6794 = vrot.lane.b32.xlu1 %v6793_v42, %s8035_s16  ;;  %v7632_v42 = vld [vmem:[#allocation12 + $0x8] sm:$0xff]  }
 0x1dc   :  { %6789 = vrot.lane.b32.xlu0 %v6788_v49, %s8035_s16  ;;  %v1071_v36 = vsel %vm210_vm0, %v1055_v50, %v6506_v54  ;;  %v1072_v34 = vsel %vm210_vm0, %v1056_v56, %v6507_v18  ;;  %v9087_v49 = vld [vmem:[#allocation2 + $0x170] sm:$0xff]  ;;  %6092 = vmatprep.subr.bf16.mxu1 %v7632_v42  ;;  %v6878_v50 = vpack.i.bf16 %v9125_v40, %v9123_v22 }
 0x1dd   :  { %v1069_v44 = vsel %vm210_vm0, %v1053_v57, %v6501_v43  ;;  %v1070_v15 = vsel %vm210_vm0, %v1054_v61, %v6502_v32  ;;  %v9077_v3 = vpop.permute.xlu1 %6514  ;;  %v1082_v26 = vpack.c.bf16 %v1072_v34, %v1071_v36  ;;  %v6813_v5 = vpack.i.bf16 %v9087_v49, %v8996_v13  ;;  %6093 = vmatpush3.bf16.msra.mxu1 %v7632_v42  ;;  %v7633_v13 = vld [vmem:[#allocation12 + $0x10] ss:$0 sps:$4 sm:$0x33]  }
 0x1de   :  { %v9079_v59 = vpop.permute.xlu0 %6509  ;;  %v1081_v1 = vpack.c.bf16 %v1070_v15, %v1069_v44  ;;  %6241 = vmatprep.subr.msk.bf16.mxu1 %vm1137_vm3, %v7633_v13  ;;  %v6858_v19 = vpack.i.bf16 %v9111_v31, %v9087_v49  ;;  %v6517_v45 = vunpack.i.h.bf16 %v9077_v3  ;;  %v6516_v33 = vunpack.i.l.bf16 %v9077_v3 }
 0x1df   :  { %6804 = vrot.lane.b32.xlu1 %v6803_v2, %s8036_s26  ;;  %v6512_v20 = vunpack.i.h.bf16 %v9079_v59  ;;  %v6511_v41 = vunpack.i.l.bf16 %v9079_v59  ;;  %v6868_v32 = vpack.i.bf16 %v9119_v38, %v9104_v17  ;;  %v6863_v43 = vpack.i.bf16 %v9151_v46, %v9113_v0 }
 0x1e0   :  { %6082 = vmatprep.mubr.msk.bf16.mxu0 %vm1112_vm10, %v1081_v1  ;;  %6799 = vrot.lane.b32.xlu0 %v6798_v35, %s8036_s26  ;;  %v6873_v56 = vpack.i.bf16 %v9153_v27, %v9121_v39  ;;  %v958_v44 = vsel %vm269_vm2, %v8510_v6, %v6517_v45  ;;  %v957_v15 = vsel %vm269_vm2, %v8520_v10, %v6516_v33 }
 0x1e1   :  { %6083 = vmatmul.mubr.msk.bf16.gmra.mrb[8].mxu0 %vm1112_vm10, %v1082_v26  ;;  %v9095_v25 = vpop.permute.xlu1 %6524  ;;  %v956_v3 = vsel %vm269_vm2, %v8625_v24, %v6512_v20  ;;  %v955_v59 = vsel %vm269_vm2, %v8468_v55, %v6511_v41 }
 0x1e2   :  { %v9097_v28 = vpop.permute.xlu0 %6519  ;;  %v6527_v21 = vunpack.i.h.bf16 %v9095_v25  ;;  %v6526_v11 = vunpack.i.l.bf16 %v9095_v25 }
 0x1e3   :  { %6814 = vrot.lane.b32.xlu1 %v6813_v5, %s8037_s0  ;;  %v6522_v37 = vunpack.i.h.bf16 %v9097_v28  ;;  %v6521_v16 = vunpack.i.l.bf16 %v9097_v28 }
 0x1e4   :  { %6809 = vrot.lane.b32.xlu0 %v8982_v58, %s8037_s0  ;;  %v6828_v58 = vpack.i.bf16 %v9104_v17, %v8998_v60  ;;  %v2114_v60 = vsel %vm1137_vm3, %v7633_v13, 0  ;;  %v974_v1 = vsel %vm959_vm4, %v957_v15, %v6526_v11  ;;  %v975_v26 = vsel %vm959_vm4, %v958_v44, %v6527_v21 }
 0x1e5   :  { %v9106_v35 = vpop.permute.xlu1 %6534  ;;  %6095 = vmatpush3.bf16.msra.mxu1 %v2114_v60  ;;  %v972_v2 = vsel %vm959_vm4, %v955_v59, %v6521_v16  ;;  %v973_v49 = vsel %vm959_vm4, %v956_v3, %v6522_v37 }
 0x1e6   :  { %v9108_v53 = vpop.permute.xlu0 %6529  ;;  %v6537_v57 = vunpack.i.h.bf16 %v9106_v35  ;;  %v6536_v61 = vunpack.i.l.bf16 %v9106_v35 }
 0x1e7   :  { %6824 = vrot.lane.b32.xlu1 %v6813_v5, %s8017_s19  ;;  %v6532_v36 = vunpack.i.h.bf16 %v9108_v53  ;;  %v6531_v34 = vunpack.i.l.bf16 %v9108_v53 }
 0x1e8   :  { %6819 = vrot.lane.b32.xlu0 %v8988_v30, %s8038_s24  ;;  %v9137_v30 = vpack.i.bf16 %v9113_v0, %v9111_v31  ;;  %v991_v28 = vsel %vm976_vm5, %v974_v1, %v6536_v61  ;;  %v992_v5 = vsel %vm976_vm5, %v975_v26, %v6537_v57 }
 0x1e9   :  { %v9130_v9 = vpop.permute.xlu1 %6544  ;;  %v989_v42 = vsel %vm976_vm5, %v972_v2, %v6531_v34  ;;  %v990_v17 = vsel %vm976_vm5, %v973_v49, %v6532_v36  ;;  %v1381_v2 = vld [vmem:[#allocation2 + $0x1cf] sm:$0xff] }
 0x1ea   :  { %v9132_v7 = vpop.permute.xlu0 %6539  ;;  %v6547_v6 = vunpack.i.h.bf16 %v9130_v9  ;;  %v6546_v10 = vunpack.i.l.bf16 %v9130_v9  ;;  %v6883_v0 = vpack.i.bf16 %v1381_v2, %v9127_v12  ;;  %v1270_v12 = vld [vmem:[#allocation2 + $0x7] sm:$0xff] }
 0x1eb   :  { %6834 = vrot.lane.b32.xlu1 %v9137_v30, %s8017_s19  ;;  %v6542_v24 = vunpack.i.h.bf16 %v9132_v7  ;;  %v6541_v55 = vunpack.i.l.bf16 %v9132_v7 }
 0x1ec   :  { %6829 = vrot.lane.b32.xlu0 %v6828_v58, %s8038_s24  ;;  %v1008_v33 = vsel %vm993_vm6, %v991_v28, %v6546_v10  ;;  %v1009_v20 = vsel %vm993_vm6, %v992_v5, %v6547_v6 }
 0x1ed   :  { %v6555_v18 = vpop.permute.xlu1 %6554  ;;  %v1006_v41 = vsel %vm993_vm6, %v989_v42, %v6541_v55 }
 0x1ee   :  { %v6550_v54 = vpop.permute.xlu0 %6549  ;;  %v6557_v35 = vunpack.i.h.bf16 %v6555_v18  ;;  %v6556_v53 = vunpack.i.l.bf16 %v6555_v18 }
 0x1ef   :  { %6844 = vrot.lane.b32.xlu1 %v9143_v48, %s8025_s21  ;;  %v6552_v31 = vunpack.i.h.bf16 %v6550_v54  ;;  %v6551_v13 = vunpack.i.l.bf16 %v6550_v54 }
 0x1f0   :  { %6839 = vrot.lane.b32.xlu0 %v6828_v58, %s8025_s21  ;;  %v1025_v18 = vsel %vm1010_vm7, %v1008_v33, %v6556_v53  ;;  %v1026_v54 = vsel %vm1010_vm7, %v1009_v20, %v6557_v35  ;;  %s8039_s21 = smov 96  }
 0x1f1   :  { %v6565_v62 = vpop.permute.xlu1 %6564 }
 0x1f2   :  { %v6560_v25 = vpop.permute.xlu0 %6559  ;;  %v6567_v58 = vunpack.i.h.bf16 %v6565_v62  ;;  %v6566_v38 = vunpack.i.l.bf16 %v6565_v62 }
 0x1f3   :  { %v6562_v9 = vunpack.i.h.bf16 %v6560_v25  ;;  %v6561_v60 = vunpack.i.l.bf16 %v6560_v25  ;;  %6859 = vrot.lane.b32.xlu1 %v6858_v19, %s8034_s23  ;;  %v1023_v19 = vsel %vm1010_vm7, %v1006_v41, %v6551_v13  ;;  %v1273_v41 = vld [vmem:[#allocation2 + $0x4f] sm:$0xff] }
 0x1f4   :  { %6849 = vrot.lane.b32.xlu0 %v6848_v52, %s8033_s12  ;;  %v1007_v52 = vsel %vm993_vm6, %v990_v17, %v6542_v24  ;;  %v1042_v61 = vsel %vm1027_vm8, %v1025_v18, %v6566_v38  ;;  %v1043_v36 = vsel %vm1027_vm8, %v1026_v54, %v6567_v58  ;;  %v1271_v38 = vld [vmem:[#allocation2 + $0x1f] sm:$0xff] }
 0x1f5   :  { %v6575_v45 = vpop.permute.xlu1 %6574  ;;  %v1024_v57 = vsel %vm1010_vm7, %v1007_v52, %v6552_v31  ;;  %v1040_v34 = vsel %vm1027_vm8, %v1023_v19, %v6561_v60  ;;  %v1413_v31 = vld [vmem:[#allocation2 + $0x1d1] sm:$0xff] }
 0x1f6   :  { %v6570_v7 = vpop.permute.xlu0 %6569  ;;  %v6577_v21 = vunpack.i.h.bf16 %v6575_v45  ;;  %v6576_v11 = vunpack.i.l.bf16 %v6575_v45  ;;  %v1041_v44 = vsel %vm1027_vm8, %v1024_v57, %v6562_v9  ;;  %v6903_v9 = vpack.i.bf16 %v1413_v31, %v9153_v27 }
 0x1f7   :  { %v6572_v37 = vunpack.i.h.bf16 %v6570_v7  ;;  %v6571_v16 = vunpack.i.l.bf16 %v6570_v7  ;;  %6869 = vrot.lane.b32.xlu1 %v6868_v32, %s8035_s16 }
 0x1f8   :  { %6854 = vrot.lane.b32.xlu0 %v6853_v14, %s8033_s12  ;;  %v1059_v49 = vsel %vm1044_vm9, %v1042_v61, %v6576_v11  ;;  %v1060_v62 = vsel %vm1044_vm9, %v1043_v36, %v6577_v21 }
 0x1f9   :  { %v6585_v15 = vpop.permute.xlu1 %6584  ;;  %v1057_v25 = vsel %vm1044_vm9, %v1040_v34, %v6571_v16  ;;  %v1058_v6 = vsel %vm1044_vm9, %v1041_v44, %v6572_v37 }
 0x1fa   :  { %v6580_v3 = vpop.permute.xlu0 %6579  ;;  %v6587_v14 = vunpack.i.h.bf16 %v6585_v15  ;;  %v6586_v59 = vunpack.i.l.bf16 %v6585_v15 }
 0x1fb   :  { %v6582_v1 = vunpack.i.h.bf16 %v6580_v3  ;;  %v6581_v26 = vunpack.i.l.bf16 %v6580_v3  ;;  %6879 = vrot.lane.b32.xlu1 %v6878_v50, %s8036_s26 }
 0x1fc   :  { %6864 = vrot.lane.b32.xlu0 %v6863_v43, %s8034_s23  ;;  %v1075_v32 = vsel %vm210_vm0, %v1059_v49, %v6586_v59  ;;  %v1076_v10 = vsel %vm210_vm0, %v1060_v62, %v6587_v14  ;;  %v1397_v43 = vld [vmem:[#allocation2 + $0x1d0] sm:$0xff] }
 0x1fd   :  { %v1073_v24 = vsel %vm210_vm0, %v1057_v25, %v6581_v26  ;;  %v1074_v55 = vsel %vm210_vm0, %v1058_v6, %v6582_v1  ;;  %v1084_v5 = vpack.c.bf16 %v1076_v10, %v1075_v32  ;;  %v6595_v17 = vpop.permute.xlu1 %6594  ;;  %v6893_v50 = vpack.i.bf16 %v1397_v43, %v9151_v46 }
 0x1fe   :  { %v1083_v28 = vpack.c.bf16 %v1074_v55, %v1073_v24  ;;  %v6590_v42 = vpop.permute.xlu0 %6589  ;;  %v6597_v33 = vunpack.i.h.bf16 %v6595_v17  ;;  %v6596_v20 = vunpack.i.l.bf16 %v6595_v17 }
 0x1ff   :  { %6884 = vrot.lane.b32.xlu1 %v6883_v0, %s8036_s26  ;;  %v6592_v13 = vunpack.i.h.bf16 %v6590_v42  ;;  %v6591_v58 = vunpack.i.l.bf16 %v6590_v42 }
 0x200   :  { %6086 = vmatprep.mubr.msk.bf16.mxu0 %vm1112_vm10, %v1083_v28  ;;  %6874 = vrot.lane.b32.xlu0 %v6873_v56, %s8035_s16  ;;  %v1929_v19 = vsel %vm269_vm2, %v1273_v41, %v6597_v33 }
 0x201   :  { %6087 = vmatmul.mubr.msk.bf16.gmra.mrb[12].mxu0 %vm1112_vm10, %v1084_v5  ;;  %v6605_v53 = vpop.permute.xlu1 %6604  ;;  %v1927_v7 = vsel %vm269_vm2, %v1271_v38, %v6592_v13  ;;  %v1926_v46 = vsel %vm269_vm2, %v1270_v12, %v6591_v58 }
 0x202   :  { %v6600_v35 = vpop.permute.xlu0 %6599  ;;  %v6607_v18 = vunpack.i.h.bf16 %v6605_v53  ;;  %v6606_v54 = vunpack.i.l.bf16 %v6605_v53 }
 0x203   :  { %6894 = vrot.lane.b32.xlu1 %v6893_v50, %s8037_s0  ;;  %v6602_v60 = vunpack.i.h.bf16 %v6600_v35  ;;  %v6601_v45 = vunpack.i.l.bf16 %v6600_v35 }
 0x204   :  { %6889 = vrot.lane.b32.xlu0 %v9137_v30, %s8037_s0  ;;  %v1272_v30 = vld [vmem:[#allocation2 + $0x37] sm:$0xff]  ;;  %v1945_v1 = vsel %vm959_vm4, %v1929_v19, %v6607_v18 }
 0x205   :  { %v6615_v56 = vpop.permute.xlu1 %6614  ;;  %v1942_v27 = vsel %vm959_vm4, %v1926_v46, %v6601_v45  ;;  %v1943_v16 = vsel %vm959_vm4, %v1927_v7, %v6602_v60  ;;  %v1928_v57 = vsel %vm269_vm2, %v1272_v30, %v6596_v20 }
 0x206   :  { %v6610_v39 = vpop.permute.xlu0 %6609  ;;  %v6617_v44 = vunpack.i.h.bf16 %v6615_v56  ;;  %v6616_v15 = vunpack.i.l.bf16 %v6615_v56  ;;  %v1944_v59 = vsel %vm959_vm4, %v1928_v57, %v6606_v54 }
 0x207   :  { %v6612_v52 = vunpack.i.h.bf16 %v6610_v39  ;;  %v6611_v21 = vunpack.i.l.bf16 %v6610_v39  ;;  %6904 = vrot.lane.b32.xlu1 %v6903_v9, %s8038_s24 }
 0x208   :  { %6899 = vrot.lane.b32.xlu0 %v9143_v48, %s8038_s24  ;;  %v1960_v32 = vsel %vm976_vm5, %v1944_v59, %v6616_v15  ;;  %v1961_v10 = vsel %vm976_vm5, %v1945_v1, %v6617_v44 }
 0x209   :  { %v6625_v37 = vpop.permute.xlu1 %6624  ;;  %v1958_v36 = vsel %vm976_vm5, %v1942_v27, %v6611_v21  ;;  %v1959_v34 = vsel %vm976_vm5, %v1943_v16, %v6612_v52 }
 0x20a   :  { %v6620_v11 = vpop.permute.xlu0 %6619  ;;  %v6627_v25 = vunpack.i.h.bf16 %v6625_v37  ;;  %v6626_v6 = vunpack.i.l.bf16 %v6625_v37 }
 0x20b   :  { %v6622_v61 = vunpack.i.h.bf16 %v6620_v11  ;;  %v6621_v48 = vunpack.i.l.bf16 %v6620_v11  ;;  %v7634_v11 = vld [vmem:[#allocation9 + $0x80] sm:$0xff]  }
 0x20c   :  { %v1976_v35 = vsel %vm993_vm6, %v1960_v32, %v6626_v6  ;;  %v1977_v53 = vsel %vm993_vm6, %v1961_v10, %v6627_v25  ;;  %6112 = vmatprep.subr.bf16.mxu1 %v7634_v11 }
 0x20d   :  { %v6635_v14 = vpop.permute.xlu1 %6634  ;;  %v1974_v49 = vsel %vm993_vm6, %v1958_v36, %v6621_v48  ;;  %v1975_v62 = vsel %vm993_vm6, %v1959_v34, %v6622_v61 }
 0x20e   :  { %v6630_v3 = vpop.permute.xlu0 %6629  ;;  %v6637_v17 = vunpack.i.h.bf16 %v6635_v14  ;;  %v6636_v0 = vunpack.i.l.bf16 %v6635_v14  ;;  %v7635_v14 = vld [vmem:[#allocation9 + $0x88] sm:$0xff]  }
 0x20f   :  { %v6632_v26 = vunpack.i.h.bf16 %v6630_v3  ;;  %v6631_v2 = vunpack.i.l.bf16 %v6630_v3 }
 0x210   :  { %v1992_v56 = vsel %vm1010_vm7, %v1976_v35, %v6636_v0  ;;  %v1993_v9 = vsel %vm1010_vm7, %v1977_v53, %v6637_v17 }
 0x211   :  { %v1990_v5 = vsel %vm1010_vm7, %v1974_v49, %v6631_v2  ;;  %v1991_v42 = vsel %vm1010_vm7, %v1975_v62, %v6632_v26  ;;  %v6645_v43 = vpop.permute.xlu1 %6644  ;;  %v1274_v26 = vld [vmem:[#allocation2 + $0x67] sm:$0xff]  ;;  %v1275_v2 = vld [vmem:[#allocation2 + $0x7f] sm:$0xff] }
 0x212   :  { %v6640_v24 = vpop.permute.xlu0 %6639  ;;  %v6647_v50 = vunpack.i.h.bf16 %v6645_v43  ;;  %v6646_v31 = vunpack.i.l.bf16 %v6645_v43 }
 0x213   :  { %v6642_v55 = vunpack.i.h.bf16 %v6640_v24  ;;  %v6641_v28 = vunpack.i.l.bf16 %v6640_v24 }
 0x214   :  { %v2008_v30 = vsel %vm1027_vm8, %v1992_v56, %v6646_v31  ;;  %v2009_v41 = vsel %vm1027_vm8, %v1993_v9, %v6647_v50 }
 0x215   :  { %v2006_v38 = vsel %vm1027_vm8, %v1990_v5, %v6641_v28  ;;  %v2007_v39 = vsel %vm1027_vm8, %v1991_v42, %v6642_v55  ;;  %v6655_v60 = vpop.permute.xlu1 %6654 }
 0x216   :  { %v6650_v13 = vpop.permute.xlu0 %6649  ;;  %v6657_v45 = vunpack.i.h.bf16 %v6655_v60  ;;  %v6656_v7 = vunpack.i.l.bf16 %v6655_v60 }
 0x217   :  { %v6652_v58 = vunpack.i.h.bf16 %v6650_v13  ;;  %v6651_v12 = vunpack.i.l.bf16 %v6650_v13 }
 0x218   :  { %v2024_v18 = vsel %vm1044_vm9, %v2008_v30, %v6656_v7  ;;  %v2025_v54 = vsel %vm1044_vm9, %v2009_v41, %v6657_v45 }
 0x219   :  { %v2022_v33 = vsel %vm1044_vm9, %v2006_v38, %v6651_v12  ;;  %v2023_v20 = vsel %vm1044_vm9, %v2007_v39, %v6652_v58  ;;  %v6665_v37 = vpop.permute.xlu1 %6664 }
 0x21a   :  { %v6660_v46 = vpop.permute.xlu0 %6659  ;;  %v6667_v59 = vunpack.i.h.bf16 %v6665_v37  ;;  %v6666_v1 = vunpack.i.l.bf16 %v6665_v37 }
 0x21b   :  { %v6662_v52 = vunpack.i.h.bf16 %v6660_v46  ;;  %v6661_v21 = vunpack.i.l.bf16 %v6660_v46 }
 0x21c   :  { %v1931_v32 = vsel %vm269_vm2, %v1275_v2, %v6667_v59  ;;  %v1930_v10 = vsel %vm269_vm2, %v1274_v26, %v6666_v1 }
 0x21d   :  { %v2038_v27 = vsel %vm210_vm0, %v2022_v33, %v6661_v21  ;;  %v2039_v16 = vsel %vm210_vm0, %v2023_v20, %v6662_v52  ;;  %v6675_v36 = vpop.permute.xlu1 %6674 }
 0x21e   :  { %v6670_v19 = vpop.permute.xlu0 %6669  ;;  %v2054_v57 = vpack.c.bf16 %v2039_v16, %v2038_v27  ;;  %v6677_v24 = vunpack.i.h.bf16 %v6675_v36  ;;  %v6676_v55 = vunpack.i.l.bf16 %v6675_v36 }
 0x21f   :  { %v6672_v61 = vunpack.i.h.bf16 %v6670_v19  ;;  %v6671_v48 = vunpack.i.l.bf16 %v6670_v19 }
 0x220   :  { %6096 = vmatprep.mubr.msk.bf16.mxu1 %vm1112_vm10, %v2054_v57  ;;  %v1933_v50 = vsel %vm269_vm2, %v8832_v51, %v6677_v24  ;;  %v1932_v31 = vsel %vm269_vm2, %v8830_v4, %v6676_v55 }
 0x221   :  { %v2041_v34 = vsel %vm210_vm0, %v2025_v54, %v6672_v61  ;;  %v2040_v44 = vsel %vm210_vm0, %v2024_v18, %v6671_v48  ;;  %v6685_v49 = vpop.permute.xlu1 %6684 }
 0x222   :  { %v6680_v15 = vpop.permute.xlu0 %6679  ;;  %v2055_v3 = vpack.c.bf16 %v2041_v34, %v2040_v44  ;;  %v6687_v35 = vunpack.i.h.bf16 %v6685_v49  ;;  %v6686_v53 = vunpack.i.l.bf16 %v6685_v49 }
 0x223   :  { %v6682_v62 = vunpack.i.h.bf16 %v6680_v15  ;;  %v6681_v25 = vunpack.i.l.bf16 %v6680_v15 }
 0x224   :  { %6097 = vmatmul.mubr.msk.bf16.vlgmr.msra.gmra.mrb[0].mxu1 %vm1112_vm10, %v2055_v3  ;;  %v1948_v45 = vsel %vm959_vm4, %v1932_v31, %v6686_v53  ;;  %v1949_v7 = vsel %vm959_vm4, %v1933_v50, %v6687_v35 }
 0x225   :  { %6113 = vmatpush3.bf16.msra.mxu1 %v7634_v11  ;;  %v6695_v28 = vpop.permute.xlu1 %6694  ;;  %v1947_v17 = vsel %vm959_vm4, %v1931_v32, %v6682_v62  ;;  %v1946_v0 = vsel %vm959_vm4, %v1930_v10, %v6681_v25 }
 0x226   :  { %v6690_v6 = vpop.permute.xlu0 %6689  ;;  %6114 = vmatprep.subr.bf16.mxu1 %v7635_v14  ;;  %v6697_v56 = vunpack.i.h.bf16 %v6695_v28  ;;  %v6696_v9 = vunpack.i.l.bf16 %v6695_v28 }
 0x227   :  { %v6692_v5 = vunpack.i.h.bf16 %v6690_v6  ;;  %v6691_v42 = vunpack.i.l.bf16 %v6690_v6 }
 0x228   :  { %v1964_v52 = vsel %vm976_vm5, %v1948_v45, %v6696_v9  ;;  %v1965_v21 = vsel %vm976_vm5, %v1949_v7, %v6697_v56 }
 0x229   :  { %6115 = vmatpush3.bf16.msra.mxu1 %v7635_v14  ;;  %v6705_v12 = vpop.permute.xlu1 %6704  ;;  %v1962_v38 = vsel %vm976_vm5, %v1946_v0, %v6691_v42  ;;  %v1963_v39 = vsel %vm976_vm5, %v1947_v17, %v6692_v5 }
 0x22a   :  { %v6700_v43 = vpop.permute.xlu0 %6699  ;;  %v6707_v30 = vunpack.i.h.bf16 %v6705_v12  ;;  %v6706_v41 = vunpack.i.l.bf16 %v6705_v12 }
 0x22b   :  { %v6702_v13 = vunpack.i.h.bf16 %v6700_v43  ;;  %v6701_v58 = vunpack.i.l.bf16 %v6700_v43 }
 0x22c   :  { %v1980_v61 = vsel %vm993_vm6, %v1964_v52, %v6706_v41  ;;  %v1981_v48 = vsel %vm993_vm6, %v1965_v21, %v6707_v30 }
 0x22d   :  { %v1978_v51 = vsel %vm993_vm6, %v1962_v38, %v6701_v58  ;;  %v1979_v4 = vsel %vm993_vm6, %v1963_v39, %v6702_v13  ;;  %v6715_v20 = vpop.permute.xlu1 %6714 }
 0x22e   :  { %v6710_v60 = vpop.permute.xlu0 %6709  ;;  %v6717_v54 = vunpack.i.h.bf16 %v6715_v20  ;;  %v6716_v19 = vunpack.i.l.bf16 %v6715_v20 }
 0x22f   :  { %v6712_v46 = vunpack.i.h.bf16 %v6710_v60  ;;  %v6711_v33 = vunpack.i.l.bf16 %v6710_v60 }
 0x230   :  { %v1996_v1 = vsel %vm1010_vm7, %v1980_v61, %v6716_v19  ;;  %v1997_v26 = vsel %vm1010_vm7, %v1981_v48, %v6717_v54 }
 0x231   :  { %v1994_v37 = vsel %vm1010_vm7, %v1978_v51, %v6711_v33  ;;  %v1995_v27 = vsel %vm1010_vm7, %v1979_v4, %v6712_v46  ;;  %v6725_v57 = vpop.permute.xlu1 %6724 }
 0x232   :  { %v6720_v11 = vpop.permute.xlu0 %6719  ;;  %v6727_v15 = vunpack.i.h.bf16 %v6725_v57  ;;  %v6726_v3 = vunpack.i.l.bf16 %v6725_v57 }
 0x233   :  { %v6722_v16 = vunpack.i.h.bf16 %v6720_v11  ;;  %v6721_v18 = vunpack.i.l.bf16 %v6720_v11 }
 0x234   :  { %v2012_v10 = vsel %vm1027_vm8, %v1996_v1, %v6726_v3  ;;  %v2013_v24 = vsel %vm1027_vm8, %v1997_v26, %v6727_v15 }
 0x235   :  { %v2010_v36 = vsel %vm1027_vm8, %v1994_v37, %v6721_v18  ;;  %v2011_v34 = vsel %vm1027_vm8, %v1995_v27, %v6722_v16  ;;  %v6735_v2 = vpop.permute.xlu1 %6734 }
 0x236   :  { %v6730_v44 = vpop.permute.xlu0 %6729  ;;  %v6737_v25 = vunpack.i.h.bf16 %v6735_v2  ;;  %v6736_v6 = vunpack.i.l.bf16 %v6735_v2 }
 0x237   :  { %v6732_v14 = vunpack.i.h.bf16 %v6730_v44  ;;  %v6731_v59 = vunpack.i.l.bf16 %v6730_v44 }
 0x238   :  { %v2028_v0 = vsel %vm1044_vm9, %v2012_v10, %v6736_v6  ;;  %v2029_v43 = vsel %vm1044_vm9, %v2013_v24, %v6737_v25 }
 0x239   :  { %v2026_v49 = vsel %vm1044_vm9, %v2010_v36, %v6731_v59  ;;  %v2027_v62 = vsel %vm1044_vm9, %v2011_v34, %v6732_v14  ;;  %v6745_v5 = vpop.permute.xlu1 %6744 }
 0x23a   :  { %v6740_v32 = vpop.permute.xlu0 %6739  ;;  %v6747_v56 = vunpack.i.h.bf16 %v6745_v5  ;;  %v6746_v9 = vunpack.i.l.bf16 %v6745_v5 }
 0x23b   :  { %v6742_v55 = vunpack.i.h.bf16 %v6740_v32  ;;  %v6741_v28 = vunpack.i.l.bf16 %v6740_v32 }
 0x23c   :  { %v1935_v33 = vsel %vm269_vm2, %v8967_v63, %v6747_v56  ;;  %v1934_v51 = vsel %vm269_vm2, %v9004_v47, %v6746_v9 }
 0x23d   :  { %v2042_v42 = vsel %vm210_vm0, %v2026_v49, %v6741_v28  ;;  %v2043_v17 = vsel %vm210_vm0, %v2027_v62, %v6742_v55  ;;  %v6755_v13 = vpop.permute.xlu1 %6754 }
 0x23e   :  { %v6750_v35 = vpop.permute.xlu0 %6749  ;;  %v2056_v53 = vpack.c.bf16 %v2043_v17, %v2042_v42  ;;  %v6757_v4 = vunpack.i.h.bf16 %v6755_v13  ;;  %v6756_v20 = vunpack.i.l.bf16 %v6755_v13 }
 0x23f   :  { %v6752_v50 = vunpack.i.h.bf16 %v6750_v35  ;;  %v6751_v31 = vunpack.i.l.bf16 %v6750_v35 }
 0x240   :  { %6100 = vmatprep.mubr.msk.bf16.mxu1 %vm1112_vm10, %v2056_v53  ;;  %v1937_v18 = vsel %vm269_vm2, %v8971_v8, %v6757_v4  ;;  %v1936_v63 = vsel %vm269_vm2, %v8969_v29, %v6756_v20 }
 0x241   :  { %v2045_v58 = vsel %vm210_vm0, %v2029_v43, %v6752_v50  ;;  %v2044_v12 = vsel %vm210_vm0, %v2028_v0, %v6751_v31  ;;  %v6765_v60 = vpop.permute.xlu1 %6764 }
 0x242   :  { %v6760_v38 = vpop.permute.xlu0 %6759  ;;  %v2057_v39 = vpack.c.bf16 %v2045_v58, %v2044_v12  ;;  %v6767_v27 = vunpack.i.h.bf16 %v6765_v60  ;;  %v6766_v16 = vunpack.i.l.bf16 %v6765_v60 }
 0x243   :  { %v6762_v45 = vunpack.i.h.bf16 %v6760_v38  ;;  %v6761_v7 = vunpack.i.l.bf16 %v6760_v38 }
 0x244   :  { %6101 = vmatmul.mubr.msk.bf16.gmra.mrb[4].mxu1 %vm1112_vm10, %v2057_v39  ;;  %v1952_v44 = vsel %vm959_vm4, %v1936_v63, %v6766_v16  ;;  %v1953_v15 = vsel %vm959_vm4, %v1937_v18, %v6767_v27 }
 0x245   :  { %v6775_v30 = vpop.permute.xlu1 %6774  ;;  %v1951_v21 = vsel %vm959_vm4, %v1935_v33, %v6762_v45  ;;  %v1950_v11 = vsel %vm959_vm4, %v1934_v51, %v6761_v7 }
 0x246   :  { %v6770_v46 = vpop.permute.xlu0 %6769  ;;  %v6777_v48 = vunpack.i.h.bf16 %v6775_v30  ;;  %v6776_v36 = vunpack.i.l.bf16 %v6775_v30 }
 0x247   :  { %v6772_v41 = vunpack.i.h.bf16 %v6770_v46  ;;  %v6771_v52 = vunpack.i.l.bf16 %v6770_v46 }
 0x248   :  { %v1968_v2 = vsel %vm976_vm5, %v1952_v44, %v6776_v36  ;;  %v1969_v49 = vsel %vm976_vm5, %v1953_v15, %v6777_v48  ;;  %v7690_v36 = vld [vmem:[#allocation2 + $0x157] sm:$0xff] }
 0x249   :  { %v6785_v19 = vpop.permute.xlu1 %6784  ;;  %v1966_v57 = vsel %vm976_vm5, %v1950_v11, %v6771_v52  ;;  %v1967_v61 = vsel %vm976_vm5, %v1951_v21, %v6772_v41 }
 0x24a   :  { %v6780_v37 = vpop.permute.xlu0 %6779  ;;  %v6787_v1 = vunpack.i.h.bf16 %v6785_v19  ;;  %v6786_v26 = vunpack.i.l.bf16 %v6785_v19 }
 0x24b   :  { %v6782_v54 = vunpack.i.h.bf16 %v6780_v37  ;;  %v6781_v47 = vunpack.i.l.bf16 %v6780_v37 }
 0x24c   :  { %v1984_v5 = vsel %vm993_vm6, %v1968_v2, %v6786_v26  ;;  %v1985_v42 = vsel %vm993_vm6, %v1969_v49, %v6787_v1  ;;  %v7636_v49 = vld [vmem:[#allocation9 + $0x40] sm:$0xff]  }
 0x24d   :  { %v1982_v8 = vsel %vm993_vm6, %v1966_v57, %v6781_v47  ;;  %v1983_v29 = vsel %vm993_vm6, %v1967_v61, %v6782_v54  ;;  %v6795_v59 = vpop.permute.xlu1 %6794  ;;  %5836 = vmatprep.subr.bf16.mxu0 %v7636_v49 }
 0x24e   :  { %v6790_v34 = vpop.permute.xlu0 %6789  ;;  %v6797_v24 = vunpack.i.h.bf16 %v6795_v59  ;;  %v6796_v55 = vunpack.i.l.bf16 %v6795_v59 }
 0x24f   :  { %v6792_v3 = vunpack.i.h.bf16 %v6790_v34  ;;  %v6791_v14 = vunpack.i.l.bf16 %v6790_v34 }
 0x250   :  { %v2000_v13 = vsel %vm1010_vm7, %v1984_v5, %v6796_v55  ;;  %v2001_v58 = vsel %vm1010_vm7, %v1985_v42, %v6797_v24 }
 0x251   :  { %v1998_v25 = vsel %vm1010_vm7, %v1982_v8, %v6791_v14  ;;  %v1999_v6 = vsel %vm1010_vm7, %v1983_v29, %v6792_v3  ;;  %v6805_v28 = vpop.permute.xlu1 %6804 }
 0x252   :  { %v6800_v62 = vpop.permute.xlu0 %6799  ;;  %v6807_v35 = vunpack.i.h.bf16 %v6805_v28  ;;  %v6806_v53 = vunpack.i.l.bf16 %v6805_v28 }
 0x253   :  { %v6802_v32 = vunpack.i.h.bf16 %v6800_v62  ;;  %v6801_v10 = vunpack.i.l.bf16 %v6800_v62  ;;  %v7637_v62 = vld [vmem:[#allocation9] sm:$0xff]  }
 0x254   :  { %v2016_v45 = vsel %vm1027_vm8, %v2000_v13, %v6806_v53  ;;  %v2017_v7 = vsel %vm1027_vm8, %v2001_v58, %v6807_v35  ;;  %5837 = vmatpush3.bf16.msra.mxu0 %v7637_v62 }
 0x255   :  { %v2014_v17 = vsel %vm1027_vm8, %v1998_v25, %v6801_v10  ;;  %v2015_v0 = vsel %vm1027_vm8, %v1999_v6, %v6802_v32  ;;  %v6815_v12 = vpop.permute.xlu1 %6814 }
 0x256   :  { %v6810_v43 = vpop.permute.xlu0 %6809  ;;  %v6817_v56 = vunpack.i.h.bf16 %v6815_v12  ;;  %v6816_v9 = vunpack.i.l.bf16 %v6815_v12 }
 0x257   :  { %v6812_v50 = vunpack.i.h.bf16 %v6810_v43  ;;  %v6811_v31 = vunpack.i.l.bf16 %v6810_v43  ;;  %v7639_v43 = vld [vmem:[#allocation9 + $0x8] sm:$0xff]  }
 0x258   :  { %v2032_v30 = vsel %vm1044_vm9, %v2016_v45, %v6816_v9  ;;  %v2033_v41 = vsel %vm1044_vm9, %v2017_v7, %v6817_v56  ;;  %v7640_v9 = vld [vmem:[#allocation9 + $0x50] sm:$0xff]  }
 0x259   :  { %v2030_v38 = vsel %vm1044_vm9, %v2014_v17, %v6811_v31  ;;  %v2031_v39 = vsel %vm1044_vm9, %v2015_v0, %v6812_v50  ;;  %v6825_v51 = vpop.permute.xlu1 %6824  ;;  %v7638_v0 = vld [vmem:[#allocation9 + $0x48] sm:$0xff]  }
 0x25a   :  { %v6820_v60 = vpop.permute.xlu0 %6819  ;;  %v6826_v63 = vunpack.i.l.bf16 %v6825_v51  ;;  %v6827_v19 = vunpack.i.h.bf16 %v6825_v51  ;;  %5838 = vmatprep.subr.bf16.mxu0 %v7638_v0 }
 0x25b   :  { %v6822_v46 = vunpack.i.h.bf16 %v6820_v60  ;;  %v6821_v33 = vunpack.i.l.bf16 %v6820_v60  ;;  %5839 = vmatpush3.bf16.msra.mxu0 %v7639_v43  ;;  %v7641_v60 = vld [vmem:[#allocation9 + $0x10] sm:$0xff]  }
 0x25c   :  { %v1938_v34 = vsel %vm269_vm2, %v7690_v36, %v6826_v63  ;;  %v1939_v14 = vsel %vm269_vm2, %v9063_v23, %v6827_v19  ;;  %5840 = vmatprep.subr.bf16.mxu0 %v7640_v9  ;;  %v7642_v63 = vld [vmem:[#allocation9 + $0x58] sm:$0xff]  }
 0x25d   :  { %v2046_v4 = vsel %vm210_vm0, %v2030_v38, %v6821_v33  ;;  %v2047_v20 = vsel %vm210_vm0, %v2031_v39, %v6822_v46  ;;  %v6835_v27 = vpop.permute.xlu1 %6834  ;;  %v9375_v33 = vld [vmem:[#allocation8] ss:$0 sm:$0xff] }
 0x25e   :  { %v6830_v52 = vpop.permute.xlu0 %6829  ;;  %v2058_v21 = vpack.c.bf16 %v2047_v20, %v2046_v4  ;;  %v6837_v61 = vunpack.i.h.bf16 %v6835_v27  ;;  %v6836_v44 = vunpack.i.l.bf16 %v6835_v27 }
 0x25f   :  { %v6832_v11 = vunpack.i.h.bf16 %v6830_v52  ;;  %v6831_v37 = vunpack.i.l.bf16 %v6830_v52  ;;  %5841 = vmatpush3.bf16.msra.mxu0 %v7641_v60 }
 0x260   :  { %6104 = vmatprep.mubr.msk.bf16.mxu1 %vm1112_vm10, %v2058_v21  ;;  %v1941_v1 = vsel %vm269_vm2, %v9125_v40, %v6837_v61  ;;  %v1940_v25 = vsel %vm269_vm2, %v9123_v22, %v6836_v44  ;;  %5842 = vmatprep.subr.bf16.mxu0 %v7642_v63 }
 0x261   :  { %v2049_v16 = vsel %vm210_vm0, %v2033_v41, %v6832_v11  ;;  %v2048_v18 = vsel %vm210_vm0, %v2032_v30, %v6831_v37  ;;  %v6845_v57 = vpop.permute.xlu1 %6844 }
 0x262   :  { %v6840_v54 = vpop.permute.xlu0 %6839  ;;  %v2059_v47 = vpack.c.bf16 %v2049_v16, %v2048_v18  ;;  %v6847_v8 = vunpack.i.h.bf16 %v6845_v57  ;;  %v6846_v2 = vunpack.i.l.bf16 %v6845_v57 }
 0x263   :  { %v6841_v48 = vunpack.i.l.bf16 %v6840_v54  ;;  %v6842_v3 = vunpack.i.h.bf16 %v6840_v54 }
 0x264   :  { %6105 = vmatmul.mubr.msk.bf16.gmra.mrb[8].mxu1 %vm1112_vm10, %v2059_v47  ;;  %v1957_v55 = vsel %vm959_vm4, %v1941_v1, %v6847_v8  ;;  %v1956_v42 = vsel %vm959_vm4, %v1940_v25, %v6846_v2 }
 0x265   :  { %v6860_v59 = vpop.permute.xlu1 %6859  ;;  %v1954_v26 = vsel %vm959_vm4, %v1938_v34, %v6841_v48  ;;  %v1955_v10 = vsel %vm959_vm4, %v1939_v14, %v6842_v3  ;;  %v7643_v14 = vld [vmem:[#allocation9 + $0x18] sm:$0xff]  }
 0x266   :  { %v6850_v15 = vpop.permute.xlu0 %6849  ;;  %v6861_v24 = vunpack.i.l.bf16 %v6860_v59  ;;  %v6862_v17 = vunpack.i.h.bf16 %v6860_v59  ;;  %5843 = vmatpush3.bf16.msra.mxu0 %v7643_v14 }
 0x267   :  { %v6851_v29 = vunpack.i.l.bf16 %v6850_v15  ;;  %v6852_v6 = vunpack.i.h.bf16 %v6850_v15 }
 0x269   :  { %v1970_v28 = vsel %vm976_vm5, %v1954_v26, %v6851_v29  ;;  %v6870_v5 = vpop.permute.xlu1 %6869  ;;  %v1971_v22 = vsel %vm976_vm5, %v1955_v10, %v6852_v6  ;;  %v7644_v6 = vld [vmem:[#allocation9 + $0x60] sm:$0xff]  }
 0x26a   :  { %v6855_v32 = vpop.permute.xlu0 %6854  ;;  %v6871_v35 = vunpack.i.l.bf16 %v6870_v5  ;;  %v1986_v50 = vsel %vm993_vm6, %v1970_v28, %v6861_v24  ;;  %v6872_v38 = vunpack.i.h.bf16 %v6870_v5  ;;  %v1987_v56 = vsel %vm993_vm6, %v1971_v22, %v6862_v17  ;;  %5844 = vmatprep.subr.bf16.mxu0 %v7644_v6 }
 0x26b   :  { %v6857_v23 = vunpack.i.h.bf16 %v6855_v32  ;;  %v6856_v40 = vunpack.i.l.bf16 %v6855_v32 }
 0x26c   :  { %v2002_v45 = vsel %vm1010_vm7, %v1986_v50, %v6871_v35  ;;  %v2003_v52 = vsel %vm1010_vm7, %v1987_v56, %v6872_v38  ;;  %v7646_v50 = vld [vmem:[#allocation9 + $0x68] sm:$0xff]  }
 0x26d   :  { %v1973_v31 = vsel %vm976_vm5, %v1957_v55, %v6857_v23  ;;  %v1972_v12 = vsel %vm976_vm5, %v1956_v42, %v6856_v40  ;;  %v6880_v39 = vpop.permute.xlu1 %6879  ;;  %v7645_v40 = vld [vmem:[#allocation9 + $0x20] sm:$0xff]  }
 0x26e   :  { %v6865_v53 = vpop.permute.xlu0 %6864  ;;  %v6881_v46 = vunpack.i.l.bf16 %v6880_v39  ;;  %v6882_v20 = vunpack.i.h.bf16 %v6880_v39  ;;  %5845 = vmatpush3.bf16.msra.mxu0 %v7645_v40 }
 0x26f   :  { %v6867_v13 = vunpack.i.h.bf16 %v6865_v53  ;;  %v6866_v58 = vunpack.i.l.bf16 %v6865_v53  ;;  %5846 = vmatprep.subr.bf16.mxu0 %v7646_v50  ;;  %v2332_v50 = vld [vmem:[#allocation2 + $0xdf] sm:$0xff] }
 0x270   :  { %v2018_v54 = vsel %vm1027_vm8, %v2002_v45, %v6881_v46  ;;  %v2019_v36 = vsel %vm1027_vm8, %v2003_v52, %v6882_v20  ;;  %v2261_v45 = vld [vmem:[#allocation2 + $0x9] sm:$0xff] }
 0x271   :  { %v1989_v7 = vsel %vm993_vm6, %v1973_v31, %v6867_v13  ;;  %v1988_v4 = vsel %vm993_vm6, %v1972_v12, %v6866_v58  ;;  %v6885_v11 = vpop.permute.xlu1 %6884  ;;  %v2245_v58 = vld [vmem:[#allocation2 + $0x8] sm:$0xff]  ;;  %v7647_v12 = vld [vmem:[#allocation9 + $0x28] sm:$0xff]  }
 0x272   :  { %v6875_v51 = vpop.permute.xlu0 %6874  ;;  %v6887_v18 = vunpack.i.h.bf16 %v6885_v11  ;;  %v6886_v61 = vunpack.i.l.bf16 %v6885_v11  ;;  %5847 = vmatpush3.bf16.msra.mxu0 %v7647_v12 }
 0x273   :  { %v6877_v30 = vunpack.i.h.bf16 %v6875_v51  ;;  %v6876_v41 = vunpack.i.l.bf16 %v6875_v51 }
 0x274   :  { %v6076_v21 = vpop.f32.mrb[0].mxu0 }
 0x275   :  { %v1184_v37 = vadd.f32 %v6076_v21, %v9375_v33  ;;  %v1175_v27 = vpop.f32.mrb[1].mxu0  ;;  %v2005_v16 = vsel %vm1010_vm7, %v1989_v7, %v6877_v30  ;;  %v2004_v19 = vsel %vm1010_vm7, %v1988_v4, %v6876_v41  ;;  %v6895_v26 = vpop.permute.xlu1 %6894  ;;  %v7648_v30 = vld [vmem:[#allocation9 + $0x70] sm:$0xff]   ;;  %v7650_v21 = vld [vmem:[#allocation9 + $0x78] sm:$0xff]  }
 0x276   :  { %v1176_v47 = vadd.f32 %v9375_v33, %v1175_v27  ;;  %v6077_v57 = vpop.f32.mrb[2].mxu0  ;;  %v6890_v48 = vpop.permute.xlu0 %6889  ;;  %v2021_v29 = vsel %vm1027_vm8, %v2005_v16, %v6887_v18  ;;  %v2020_v49 = vsel %vm1027_vm8, %v2004_v19, %v6886_v61  ;;  %v6897_v62 = vunpack.i.h.bf16 %v6895_v26  ;;  %v7649_v41 = vld [vmem:[#allocation9 + $0x30] sm:$0xff]   ;;  %5848 = vmatprep.subr.bf16.mxu0 %v7648_v30  ;;  %v7651_v27 = vld [vmem:[#allocation9 + $0x38] sm:$0xff]  }
 0x277   :  { %v1240_v34 = vmax.f32 %v1184_v37, 0.0  ;;  %v1187_v44 = vadd.f32 %v6077_v57, %v9375_v33  ;;  %v1178_v15 = vpop.f32.mrb[3].mxu0  ;;  %v6892_v3 = vunpack.i.h.bf16 %v6890_v48  ;;  %v6891_v1 = vunpack.i.l.bf16 %v6890_v48  ;;  %5849 = vmatpush3.bf16.msra.mxu0 %v7649_v41 }
 0x278   :  { %v1238_v8 = vmax.f32 %v1176_v47, 0.0  ;;  %v1179_v59 = vadd.f32 %v9375_v33, %v1178_v15  ;;  %v6896_v25 = vunpack.i.l.bf16 %v6895_v26  ;;  %v2037_v42 = vsel %vm1044_vm9, %v2021_v29, %v6897_v62  ;;  %5850 = vmatprep.subr.bf16.mxu0 %v7650_v21 }
 0x279   :  { %2215 = vst.msk [vmem:[#allocation2 + $0x50] sm:$0xff] %vm210_vm0, %v1240_v34  ;;  %v1241_v2 = vmax.f32 %v1187_v44, 0.0  ;;  %v2034_v10 = vsel %vm1044_vm9, %v2018_v54, %v6891_v1  ;;  %v2035_v24 = vsel %vm1044_vm9, %v2019_v36, %v6892_v3  ;;  %v6905_v17 = vpop.permute.xlu1 %6904 }
 0x27a   :  { %2213 = vst.msk [vmem:[#allocation2 + $0x20] sm:$0xff] %vm210_vm0, %v1238_v8  ;;  %v1239_v32 = vmax.f32 %v1179_v59, 0.0  ;;  %v6900_v23 = vpop.permute.xlu0 %6899  ;;  %v2036_v5 = vsel %vm1044_vm9, %v2020_v49, %v6896_v25  ;;  %v6907_v22 = vunpack.i.h.bf16 %v6905_v17  ;;  %v6906_v35 = vunpack.i.l.bf16 %v6905_v17 }
 0x27b   :  { %2216 = vst.msk [vmem:[#allocation2 + $0x68] sm:$0xff] %vm210_vm0, %v1241_v2  ;;  %v6902_v55 = vunpack.i.h.bf16 %v6900_v23  ;;  %v6901_v28 = vunpack.i.l.bf16 %v6900_v23  ;;  %5851 = vmatpush3.bf16.msra.mxu0 %v7651_v27 }
 0x27c   :  { %2214 = vst.msk [vmem:[#allocation2 + $0x38] sm:$0xff] %vm210_vm0, %v1239_v32  ;;  %v2052_v31 = vsel %vm210_vm0, %v2036_v5, %v6906_v35  ;;  %v2053_v13 = vsel %vm210_vm0, %v2037_v42, %v6907_v22  ;;  %v2364_v42 = vld [vmem:[#allocation2 + $0xe1] sm:$0xff] }
 0x27d   :  { %v2050_v0 = vsel %vm210_vm0, %v2034_v10, %v6901_v28  ;;  %v2051_v43 = vsel %vm210_vm0, %v2035_v24, %v6902_v55  ;;  %v2061_v38 = vpack.c.bf16 %v2053_v13, %v2052_v31 }
 0x27e   :  { %v2060_v53 = vpack.c.bf16 %v2051_v43, %v2050_v0 }
 0x280   :  { %6108 = vmatprep.mubr.msk.bf16.mxu1 %vm1112_vm10, %v2060_v53  ;;  %v9406_v9 = vld [vmem:[#allocation2 + $0x4f] sm:$0xff] }
 0x281   :  { %v9402_v39 = vld [vmem:[#allocation2 + $0x20] sm:$0xff]  ;;  %6109 = vmatmul.mubr.msk.bf16.gmra.mrb[12].mxu1 %vm1112_vm10, %v2061_v38  ;;  %v2358_v51 = vld [vmem:[#allocation2 + $0x51] sm:$0xff] }
 0x282   :  { %v6908_v56 = vpack.i.bf16 %v9402_v39, %v2245_v58  ;;  %v9408_v60 = vld [vmem:[#allocation2 + $0x67] sm:$0xff]  ;;  %v9425_v47 = vld [vmem:[#allocation2 + $0x1f] sm:$0xff]  ;;  %v9429_v57 = vld [vmem:[#allocation2 + $0x50] sm:$0xff] }
 0x283   :  { %v6923_v7 = vpack.i.bf16 %v9408_v60, %v9406_v9  ;;  %v2357_v46 = vld [vmem:[#allocation2 + $0x39] sm:$0xff]  ;;  %v2262_v4 = vld [vmem:[#allocation2 + $0x21] sm:$0xff]  ;;  %v2312_v37 = vld [vmem:[#allocation2 + $0x69] sm:$0xff] }
 0x284   :  { %6909 = vrot.lane.b32.xlu0 %v6908_v56, %s8038_s24  ;;  %v2857_v20 = vpack.c.bf16 %v2358_v51, %v2357_v46  ;;  %v6913_v52 = vpack.i.bf16 %v2262_v4, %v2261_v45  ;;  %v6928_v11 = vpack.i.bf16 %v2357_v46, %v2262_v4  ;;  %v9416_v16 = vld [vmem:[#allocation2 + $0x37] sm:$0xff]  ;;  %v6918_v18 = vpack.i.bf16 %v2312_v37, %v2358_v51  ;;  %v9445_v49 = vld [vmem:[#allocation2 + $0x68] sm:$0xff]  ;;  %v2348_v38 = vld [vmem:[#allocation2 + $0xe0] sm:$0xff] }
 0x285   :  { %6924 = vrot.lane.b32.xlu1 %v6923_v7, %s8039_s21  ;;  %v6933_v63 = vpack.i.bf16 %v9406_v9, %v9416_v16  ;;  %v9422_v54 = vld [vmem:[#allocation2 + $0x38] sm:$0xff]  ;;  %v6943_v19 = vpack.i.bf16 %v9416_v16, %v9425_v47  ;;  %v6953_v29 = vpack.i.bf16 %v2358_v51, %v2357_v46 }
 0x286   :  { %6116 = vmatprep.mubr.msk.bf16.mxu1 %vm210_vm0, %v2857_v20  ;;  %v6938_v61 = vpack.i.bf16 %v9429_v57, %v9422_v54 }
 0x288   :  { %6914 = vrot.lane.b32.xlu0 %v6913_v52, %s8016_s18 }
 0x289   :  { %6929 = vrot.lane.b32.xlu1 %v6928_v11, %s8038_s24 }
 0x28c   :  { %6919 = vrot.lane.b32.xlu0 %v6918_v18, %s8038_s24 }
 0x28d   :  { %6934 = vrot.lane.b32.xlu1 %v6933_v63, %s8016_s18 }
 0x290   :  { %6944 = vrot.lane.b32.xlu0 %v6943_v19, %s8039_s21 }
 0x291   :  { %6939 = vrot.lane.b32.xlu1 %v6938_v61, %s8039_s21 }
 0x294   :  { %v6080_v48 = vpop.f32.mrb[4].mxu0 }
 0x295   :  { %v1200_v36 = vadd.f32 %v6080_v48, %v9375_v33  ;;  %v1191_v34 = vpop.f32.mrb[5].mxu0  ;;  %6949 = vrot.lane.b32.xlu1 %v6938_v61, %s8038_s24  ;;  %v2253_v48 = vld [vmem:[#allocation2 + $0xf8] sm:$0xff] }
 0x296   :  { %v1192_v44 = vadd.f32 %v9375_v33, %v1191_v34  ;;  %v6081_v15 = vpop.f32.mrb[6].mxu0 }
 0x297   :  { %v1244_v3 = vmax.f32 %v1200_v36, 0.0  ;;  %v1203_v14 = vadd.f32 %v6081_v15, %v9375_v33  ;;  %v1194_v8 = vpop.f32.mrb[7].mxu0 }
 0x298   :  { %v1242_v59 = vmax.f32 %v1192_v44, 0.0  ;;  %v1195_v1 = vadd.f32 %v9375_v33, %v1194_v8  ;;  %v2269_v8 = vld [vmem:[#allocation2 + $0xf9] sm:$0xff] }
 0x299   :  { %2219 = vst.msk [vmem:[#allocation2 + $0xb0] sm:$0xff] %vm210_vm0, %v1244_v3  ;;  %v1245_v26 = vmax.f32 %v1203_v14, 0.0  ;;  %6954 = vrot.lane.b32.xlu1 %v6953_v29, %s8016_s18 }
 0x29a   :  { %2217 = vst.msk [vmem:[#allocation2 + $0x80] sm:$0xff] %vm210_vm0, %v1242_v59  ;;  %v1243_v2 = vmax.f32 %v1195_v1, 0.0 }
 0x29b   :  { %2220 = vst.msk [vmem:[#allocation2 + $0xc8] sm:$0xff] %vm210_vm0, %v1245_v26 }
 0x29c   :  { %2218 = vst.msk [vmem:[#allocation2 + $0x98] sm:$0xff] %vm210_vm0, %v1243_v2 }
 0x2a0   :  { %v2362_v55 = vld [vmem:[#allocation2 + $0xb1] sm:$0xff] }
 0x2a1   :  { %v2360_v62 = vld [vmem:[#allocation2 + $0x81] sm:$0xff]  ;;  %v9461_v0 = vld [vmem:[#allocation2 + $0xaf] sm:$0xff] }
 0x2a2   :  { %v9447_v25 = vld [vmem:[#allocation2 + $0x80] sm:$0xff]  ;;  %v2860_v32 = vpack.c.bf16 %v2360_v62, %v2312_v37  ;;  %v6973_v40 = vpack.i.bf16 %v2360_v62, %v2312_v37  ;;  %v2363_v5 = vld [vmem:[#allocation2 + $0xc9] sm:$0xff] }
 0x2a3   :  { %v9449_v6 = vld [vmem:[#allocation2 + $0x7f] sm:$0xff]  ;;  %v6968_v10 = vpack.i.bf16 %v9447_v25, %v9445_v49  ;;  %v2284_v17 = vld [vmem:[#allocation2 + $0xc7] sm:$0xff]  ;;  %v2866_v43 = vpack.c.bf16 %v2364_v42, %v2363_v5  ;;  %v6978_v35 = vpack.i.bf16 %v2363_v5, %v2362_v55  ;;  %v9464_v53 = vld [vmem:[#allocation2 + $0x97] sm:$0xff] }
 0x2a4   :  { %v6958_v24 = vpack.i.bf16 %v9449_v6, %v9408_v60  ;;  %v2361_v23 = vld [vmem:[#allocation2 + $0x99] sm:$0xff]  ;;  %6117 = vmatmul.mubr.msk.bf16.vlgmr.msra.gmra.mrb[0].mxu1 %vm210_vm0, %v2860_v32  ;;  %v6993_v22 = vpack.i.bf16 %v2284_v17, %v9461_v0  ;;  %v7013_v31 = vpack.i.bf16 %v9464_v53, %v9449_v6  ;;  %v6983_v13 = vpack.i.bf16 %v2332_v50, %v2284_v17  ;;  %v9474_v12 = vld [vmem:[#allocation2 + $0xc8] sm:$0xff]  ;;  %v9477_v56 = vld [vmem:[#allocation2 + $0xb0] sm:$0xff] }
 0x2a5   :  { %6969 = vrot.lane.b32.xlu1 %v6968_v10, %s8038_s24  ;;  %v2863_v28 = vpack.c.bf16 %v2362_v55, %v2361_v23  ;;  %v9471_v58 = vld [vmem:[#allocation2 + $0x98] sm:$0xff]  ;;  %v6988_v7 = vpack.i.bf16 %v2348_v38, %v9474_v12  ;;  %v7023_v41 = vpack.i.bf16 %v2362_v55, %v2361_v23  ;;  %v6998_v37 = vpack.i.bf16 %v2361_v23, %v2360_v62 }
 0x2a6   :  { %6959 = vrot.lane.b32.xlu0 %v6958_v24, %s8016_s18  ;;  %v7018_v45 = vpack.i.bf16 %v9477_v56, %v9471_v58  ;;  %v7003_v61 = vpack.i.bf16 %v9461_v0, %v9464_v53 }
 0x2a7   :  { %6120 = vmatprep.mubr.msk.bf16.mxu1 %vm210_vm0, %v2863_v28 }
 0x2a9   :  { %6974 = vrot.lane.b32.xlu1 %v6973_v40, %s8016_s18 }
 0x2aa   :  { %6964 = vrot.lane.b32.xlu0 %v6968_v10, %s8039_s21 }
 0x2ac   :  { %6121 = vmatmul.mubr.msk.bf16.gmra.mrb[4].mxu1 %vm210_vm0, %v2866_v43 }
 0x2ad   :  { %6994 = vrot.lane.b32.xlu1 %v6993_v22, %s8039_s21 }
 0x2ae   :  { %6979 = vrot.lane.b32.xlu0 %v6978_v35, %s8038_s24 }
 0x2b1   :  { %7014 = vrot.lane.b32.xlu1 %v7013_v31, %s8039_s21 }
 0x2b2   :  { %6984 = vrot.lane.b32.xlu0 %v6983_v13, %s8016_s18 }
 0x2b4   :  { %v6084_v46 = vpop.f32.mrb[8].mxu0 }
 0x2b5   :  { %7019 = vrot.lane.b32.xlu1 %v7018_v45, %s8038_s24  ;;  %v1216_v51 = vadd.f32 %v6084_v46, %v9375_v33  ;;  %v1207_v4 = vpop.f32.mrb[9].mxu0 }
 0x2b6   :  { %6989 = vrot.lane.b32.xlu0 %v6988_v7, %s8039_s21  ;;  %v1208_v20 = vadd.f32 %v9375_v33, %v1207_v4  ;;  %v6085_v30 = vpop.f32.mrb[10].mxu0 }
 0x2b7   :  { %v1248_v52 = vmax.f32 %v1216_v51, 0.0  ;;  %v1219_v21 = vadd.f32 %v6085_v30, %v9375_v33  ;;  %v1210_v11 = vpop.f32.mrb[11].mxu0 }
 0x2b8   :  { %v1246_v27 = vmax.f32 %v1208_v20, 0.0  ;;  %v1211_v18 = vadd.f32 %v9375_v33, %v1210_v11 }
 0x2b9   :  { %7024 = vrot.lane.b32.xlu1 %v7023_v41, %s8016_s18  ;;  %2223 = vst.msk [vmem:[#allocation2 + $0x140] sm:$0xff] %vm210_vm0, %v1248_v52  ;;  %v1249_v63 = vmax.f32 %v1219_v21, 0.0 }
 0x2ba   :  { %6999 = vrot.lane.b32.xlu0 %v6998_v37, %s8038_s24  ;;  %2221 = vst.msk [vmem:[#allocation2 + $0x110] sm:$0xff] %vm210_vm0, %v1246_v27  ;;  %v1247_v19 = vmax.f32 %v1211_v18, 0.0 }
 0x2bb   :  { %2224 = vst.msk [vmem:[#allocation2 + $0x158] sm:$0xff] %vm210_vm0, %v1249_v63 }
 0x2bc   :  { %2222 = vst.msk [vmem:[#allocation2 + $0x128] sm:$0xff] %vm210_vm0, %v1247_v19  ;;  %v2372_v19 = vld [vmem:[#allocation2 + $0x1d1] sm:$0xff] }
 0x2be   :  { %7004 = vrot.lane.b32.xlu0 %v7003_v61, %s8016_s18 }
 0x2c0   :  { %v2319_v44 = vld [vmem:[#allocation2 + $0x141] sm:$0xff] }
 0x2c1   :  { %v9498_v36 = vld [vmem:[#allocation2 + $0x110] sm:$0xff]  ;;  %v9513_v32 = vld [vmem:[#allocation2 + $0x13f] sm:$0xff] }
 0x2c2   :  { %7009 = vrot.lane.b32.xlu0 %v7018_v45, %s8039_s21  ;;  %v7028_v34 = vpack.i.bf16 %v9498_v36, %v2253_v48  ;;  %v9501_v15 = vld [vmem:[#allocation2 + $0x159] sm:$0xff]  ;;  %v2270_v29 = vld [vmem:[#allocation2 + $0x111] sm:$0xff] }
 0x2c3   :  { %v7038_v3 = vpack.i.bf16 %v9501_v15, %v2319_v44  ;;  %v2365_v14 = vld [vmem:[#allocation2 + $0x129] sm:$0xff]  ;;  %v7033_v1 = vpack.i.bf16 %v2270_v29, %v2269_v8  ;;  %v9507_v2 = vld [vmem:[#allocation2 + $0x157] sm:$0xff]  ;;  %v9527_v40 = vld [vmem:[#allocation2 + $0x140] sm:$0xff] }
 0x2c4   :  { %7029 = vrot.lane.b32.xlu1 %v7028_v34, %s8038_s24  ;;  %v2869_v59 = vpack.c.bf16 %v2319_v44, %v2365_v14  ;;  %v7048_v26 = vpack.i.bf16 %v2365_v14, %v2270_v29  ;;  %v9510_v62 = vld [vmem:[#allocation2 + $0x127] sm:$0xff]  ;;  %v7043_v10 = vpack.i.bf16 %v9507_v2, %v9513_v32  ;;  %v9523_v55 = vld [vmem:[#allocation2 + $0x10f] sm:$0xff]  ;;  %v7073_v50 = vpack.i.bf16 %v2319_v44, %v2365_v14  ;;  %v9543_v4 = vld [vmem:[#allocation2 + $0x158] sm:$0xff] }
 0x2c5   :  { %v7053_v24 = vpack.i.bf16 %v9513_v32, %v9510_v62  ;;  %v9520_v23 = vld [vmem:[#allocation2 + $0x128] sm:$0xff]  ;;  %v7063_v28 = vpack.i.bf16 %v9510_v62, %v9523_v55 }
 0x2c6   :  { %7039 = vrot.lane.b32.xlu0 %v7038_v3, %s8038_s24  ;;  %6124 = vmatprep.mubr.msk.bf16.mxu1 %vm210_vm0, %v2869_v59  ;;  %v7058_v5 = vpack.i.bf16 %v9527_v40, %v9520_v23 }
 0x2c8   :  { %7034 = vrot.lane.b32.xlu1 %v7033_v1, %s8016_s18 }
 0x2ca   :  { %7049 = vrot.lane.b32.xlu0 %v7048_v26, %s8038_s24 }
 0x2cc   :  { %7044 = vrot.lane.b32.xlu1 %v7043_v10, %s8039_s21 }
 0x2ce   :  { %7054 = vrot.lane.b32.xlu0 %v7053_v24, %s8016_s18 }
 0x2d0   :  { %7064 = vrot.lane.b32.xlu1 %v7063_v28, %s8039_s21 }
 0x2d2   :  { %7059 = vrot.lane.b32.xlu0 %v7058_v5, %s8039_s21 }
 0x2d4   :  { %v6088_v42 = vpop.f32.mrb[12].mxu0  ;;  %7069 = vrot.lane.b32.xlu1 %v7058_v5, %s8038_s24  ;;  %v2340_v5 = vld [vmem:[#allocation2 + $0x1cf] sm:$0xff] }
 0x2d5   :  { %v1232_v17 = vadd.f32 %v6088_v42, %v9375_v33  ;;  %v1223_v43 = vpop.f32.mrb[13].mxu0 }
 0x2d6   :  { %v1224_v22 = vadd.f32 %v9375_v33, %v1223_v43  ;;  %v6089_v35 = vpop.f32.mrb[14].mxu0 }
 0x2d7   :  { %v1252_v31 = vmax.f32 %v1232_v17, 0.0  ;;  %v1235_v13 = vadd.f32 %v6089_v35, %v9375_v33  ;;  %v1226_v38 = vpop.f32.mrb[15].mxu0  ;;  %v2356_v35 = vld [vmem:[#allocation2 + $0x1d0] sm:$0xff] }
 0x2d8   :  { %v1250_v45 = vmax.f32 %v1224_v22, 0.0  ;;  %v1227_v7 = vadd.f32 %v9375_v33, %v1226_v38  ;;  %7074 = vrot.lane.b32.xlu1 %v7073_v50, %s8016_s18  ;;  %v2229_v38 = vld [vmem:[#allocation2 + $0x7] sm:$0xff] }
 0x2d9   :  { %2227 = vst.msk [vmem:[#allocation2 + $0x1a0] sm:$0xff] %vm210_vm0, %v1252_v31  ;;  %v1253_v46 = vmax.f32 %v1235_v13, 0.0 }
 0x2da   :  { %2225 = vst.msk [vmem:[#allocation2 + $0x170] sm:$0xff] %vm210_vm0, %v1250_v45  ;;  %v1251_v51 = vmax.f32 %v1227_v7, 0.0 }
 0x2db   :  { %2228 = vst.msk [vmem:[#allocation2 + $0x1b8] sm:$0xff] %vm210_vm0, %v1253_v46 }
 0x2dc   :  { %2226 = vst.msk [vmem:[#allocation2 + $0x188] sm:$0xff] %vm210_vm0, %v1251_v51 }
 0x2e0   :  { %v2370_v37 = vld [vmem:[#allocation2 + $0x1a1] sm:$0xff] }
 0x2e1   :  { %v2368_v20 = vld [vmem:[#allocation2 + $0x171] sm:$0xff]  ;;  %v9576_v59 = vld [vmem:[#allocation2 + $0x19f] sm:$0xff] }
 0x2e2   :  { %v9545_v30 = vld [vmem:[#allocation2 + $0x170] sm:$0xff]  ;;  %v2872_v33 = vpack.c.bf16 %v2368_v20, %v9501_v15  ;;  %v7093_v18 = vpack.i.bf16 %v2368_v20, %v9501_v15  ;;  %v2371_v63 = vld [vmem:[#allocation2 + $0x1b9] sm:$0xff] }
 0x2e3   :  { %v9547_v41 = vld [vmem:[#allocation2 + $0x16f] sm:$0xff]  ;;  %v7088_v52 = vpack.i.bf16 %v9545_v30, %v9543_v4  ;;  %v9559_v61 = vld [vmem:[#allocation2 + $0x187] sm:$0xff]  ;;  %v2878_v48 = vpack.c.bf16 %v2372_v19, %v2371_v63  ;;  %v7098_v44 = vpack.i.bf16 %v2371_v63, %v2370_v37  ;;  %v2292_v26 = vld [vmem:[#allocation2 + $0x1b7] sm:$0xff] }
 0x2e4   :  { %v7078_v21 = vpack.i.bf16 %v9547_v41, %v9507_v2  ;;  %v2369_v11 = vld [vmem:[#allocation2 + $0x189] sm:$0xff]  ;;  %6125 = vmatmul.mubr.msk.bf16.gmra.mrb[8].mxu1 %vm210_vm0, %v2872_v33  ;;  %v7128_v34 = vpack.i.bf16 %v9559_v61, %v9547_v41  ;;  %v9570_v15 = vld [vmem:[#allocation2 + $0x1a0] sm:$0xff]  ;;  %v7108_v1 = vpack.i.bf16 %v9576_v59, %v9559_v61  ;;  %v7143_v24 = vpack.i.bf16 %v2292_v26, %v9576_v59  ;;  %v9587_v22 = vld [vmem:[#allocation2 + $0x1b8] sm:$0xff] }
 0x2e5   :  { %7089 = vrot.lane.b32.xlu1 %v7088_v52, %s8038_s24  ;;  %v2875_v27 = vpack.c.bf16 %v2370_v37, %v2369_v11  ;;  %v9565_v3 = vld [vmem:[#allocation2 + $0x188] sm:$0xff]  ;;  %v7103_v8 = vpack.i.bf16 %v2369_v11, %v2368_v20  ;;  %v7138_v29 = vpack.i.bf16 %v2370_v37, %v2369_v11  ;;  %v7118_v43 = vpack.i.bf16 %v2340_v5, %v2292_v26 }
 0x2e6   :  { %7079 = vrot.lane.b32.xlu0 %v7078_v21, %s8016_s18  ;;  %v7133_v14 = vpack.i.bf16 %v9570_v15, %v9565_v3  ;;  %v7123_v51 = vpack.i.bf16 %v2356_v35, %v9587_v22 }
 0x2e7   :  { %6128 = vmatprep.mubr.msk.bf16.mxu1 %vm210_vm0, %v2875_v27 }
 0x2e9   :  { %7094 = vrot.lane.b32.xlu1 %v7093_v18, %s8016_s18 }
 0x2ea   :  { %7084 = vrot.lane.b32.xlu0 %v7088_v52, %s8039_s21 }
 0x2ec   :  { %6129 = vmatmul.mubr.msk.bf16.gmra.mrb[12].mxu1 %vm210_vm0, %v2878_v48 }
 0x2ed   :  { %7129 = vrot.lane.b32.xlu1 %v7128_v34, %s8039_s21 }
 0x2ee   :  { %7099 = vrot.lane.b32.xlu0 %v7098_v44, %s8038_s24 }
 0x2f1   :  { %7134 = vrot.lane.b32.xlu1 %v7133_v14, %s8038_s24 }
 0x2f2   :  { %7104 = vrot.lane.b32.xlu0 %v7103_v8, %s8038_s24 }
 0x2f5   :  { %7139 = vrot.lane.b32.xlu1 %v7138_v29, %s8016_s18 }
 0x2f6   :  { %7109 = vrot.lane.b32.xlu0 %v7108_v1, %s8016_s18  ;;  %v6910_v10 = vpop.permute.xlu0 %6909 }
 0x2f7   :  { %v9583_v28 = vpop.permute.xlu1 %6924  ;;  %v6912_v50 = vunpack.i.h.bf16 %v6910_v10  ;;  %v6911_v31 = vunpack.i.l.bf16 %v6910_v10 }
 0x2f9   :  { %7144 = vrot.lane.b32.xlu1 %v7143_v24, %s8039_s21  ;;  %v2757_v11 = vsel %vm210_vm0, %v2229_v38, %v6911_v31  ;;  %v2758_v37 = vsel %vm210_vm0, %v9425_v47, %v6912_v50 }
 0x2fa   :  { %7114 = vrot.lane.b32.xlu0 %v7133_v14, %s8039_s21  ;;  %v6915_v42 = vpop.permute.xlu0 %6914 }
 0x2fb   :  { %v6930_v17 = vpop.permute.xlu1 %6929  ;;  %v6917_v45 = vunpack.i.h.bf16 %v6915_v42  ;;  %v6916_v7 = vunpack.i.l.bf16 %v6915_v42 }
 0x2fc   :  { %v6932_v20 = vunpack.i.h.bf16 %v6930_v17  ;;  %v6931_v33 = vunpack.i.l.bf16 %v6930_v17 }
 0x2fd   :  { %v2774_v18 = vsel %vm2773_vm11, %v2757_v11, %v6916_v7  ;;  %v2775_v63 = vsel %vm2773_vm11, %v2758_v37, %v6917_v45 }
 0x2fe   :  { %7119 = vrot.lane.b32.xlu0 %v7118_v43, %s8016_s18  ;;  %v6920_v13 = vpop.permute.xlu0 %6919  ;;  %v2808_v44 = vsel %vm210_vm0, %v9422_v54, %v6932_v20  ;;  %v2807_v14 = vsel %vm210_vm0, %v9402_v39, %v6931_v33 }
 0x2ff   :  { %v6935_v46 = vpop.permute.xlu1 %6934  ;;  %v6922_v7 = vunpack.i.h.bf16 %v6920_v13 }
 0x300   :  { %v6937_v52 = vunpack.i.h.bf16 %v6935_v46  ;;  %v6936_v21 = vunpack.i.l.bf16 %v6935_v46  ;;  %v6921_v46 = vunpack.i.l.bf16 %v6920_v13 }
 0x301   :  { %v2810_v13 = vsel %vm210_vm0, %v9445_v49, %v6922_v7 }
 0x302   :  { %7124 = vrot.lane.b32.xlu0 %v7123_v51, %s8039_s21  ;;  %v6945_v27 = vpop.permute.xlu0 %6944  ;;  %v2823_v26 = vsel %vm2773_vm11, %v2807_v14, %v6936_v21  ;;  %v2824_v10 = vsel %vm2773_vm11, %v2808_v44, %v6937_v52 }
 0x303   :  { %v6947_v19 = vunpack.i.h.bf16 %v6945_v27  ;;  %v6946_v48 = vunpack.i.l.bf16 %v6945_v27  ;;  %v6940_v34 = vpop.permute.xlu1 %6939  ;;  %v6927_v27 = vunpack.i.h.bf16 %v9583_v28 }
 0x304   :  { %v6942_v8 = vunpack.i.h.bf16 %v6940_v34  ;;  %v6941_v29 = vunpack.i.l.bf16 %v6940_v34 }
 0x305   :  { %v2791_v1 = vsel %vm2790_vm12, %v2774_v18, %v6946_v48  ;;  %v2792_v47 = vsel %vm2790_vm12, %v2775_v63, %v6947_v19  ;;  %v6926_v18 = vunpack.i.l.bf16 %v9583_v28 }
 0x306   :  { %v2839_v24 = vsel %vm2790_vm12, %v2823_v26, %v6941_v29  ;;  %v2840_v5 = vsel %vm2790_vm12, %v2824_v10, %v6942_v8  ;;  %v2855_v17 = vpack.c.bf16 %v2792_v47, %v2791_v1 }
 0x307   :  { %v2856_v42 = vpack.c.bf16 %v2840_v5, %v2839_v24  ;;  %v6950_v54 = vpop.permute.xlu1 %6949 }
 0x308   :  { %v6952_v43 = vunpack.i.h.bf16 %v6950_v54  ;;  %v6951_v35 = vunpack.i.l.bf16 %v6950_v54 }
 0x309   :  { %3086 = vmatprep.mubr.bf16.mxu0 %v2856_v42 }
 0x30a   :  { %3087 = vmatmul.mubr.bf16.vlgmr.msra.gmra.mrb[16].mxu0 %v2855_v17  ;;  %v2760_v51 = vsel %vm210_vm0, %v9406_v9, %v6952_v43  ;;  %v2759_v20 = vsel %vm210_vm0, %v9416_v16, %v6951_v35  ;;  %v2809_v9 = vsel %vm210_vm0, %v9429_v57, %v6921_v46 }
 0x30b   :  { %v6955_v39 = vpop.permute.xlu1 %6954 }
 0x30c   :  { %v6957_v50 = vunpack.i.h.bf16 %v6955_v39  ;;  %v6956_v31 = vunpack.i.l.bf16 %v6955_v39 }
 0x30e   :  { %v2776_v11 = vsel %vm2773_vm11, %v2759_v20, %v6956_v31  ;;  %v2777_v37 = vsel %vm2773_vm11, %v2760_v51, %v6957_v50 }
 0x30f   :  { %v2793_v44 = vsel %vm2790_vm12, %v2776_v11, %v6926_v18  ;;  %v2794_v14 = vsel %vm2790_vm12, %v2777_v37, %v6927_v27 }
 0x310   :  { %v2858_v47 = vpack.c.bf16 %v2794_v14, %v2793_v44 }
 0x317   :  { %v6970_v38 = vpop.permute.xlu1 %6969 }
 0x318   :  { %v6960_v45 = vpop.permute.xlu0 %6959  ;;  %v6972_v24 = vunpack.i.h.bf16 %v6970_v38  ;;  %v6971_v5 = vunpack.i.l.bf16 %v6970_v38 }
 0x319   :  { %v6962_v33 = vunpack.i.h.bf16 %v6960_v45  ;;  %v6961_v52 = vunpack.i.l.bf16 %v6960_v45 }
 0x31a   :  { %v2762_v45 = vsel %vm210_vm0, %v9449_v6, %v6972_v24  ;;  %v2761_v7 = vsel %vm210_vm0, %v9408_v60, %v6971_v5 }
 0x31b   :  { %v6975_v21 = vpop.permute.xlu1 %6974  ;;  %v2825_v48 = vsel %vm2773_vm11, %v2809_v9, %v6961_v52  ;;  %v2826_v34 = vsel %vm2773_vm11, %v2810_v13, %v6962_v33 }
 0x31c   :  { %v6965_v63 = vpop.permute.xlu0 %6964  ;;  %v6977_v17 = vunpack.i.h.bf16 %v6975_v21  ;;  %v6976_v54 = vunpack.i.l.bf16 %v6975_v21 }
 0x31d   :  { %v6967_v19 = vunpack.i.h.bf16 %v6965_v63  ;;  %v6966_v16 = vunpack.i.l.bf16 %v6965_v63 }
 0x31e   :  { %v2778_v38 = vsel %vm2773_vm11, %v2761_v7, %v6976_v54  ;;  %v2779_v21 = vsel %vm2773_vm11, %v2762_v45, %v6977_v17 }
 0x31f   :  { %v2841_v8 = vsel %vm2790_vm12, %v2825_v48, %v6966_v16  ;;  %v2842_v28 = vsel %vm2790_vm12, %v2826_v34, %v6967_v19  ;;  %v9625_v49 = vpop.permute.xlu1 %6994 }
 0x320   :  { %v6980_v29 = vpop.permute.xlu0 %6979  ;;  %v2859_v1 = vpack.c.bf16 %v2842_v28, %v2841_v8  ;;  %v6996_v45 = vunpack.i.l.bf16 %v9625_v49 }
 0x321   :  { %v6982_v43 = vunpack.i.h.bf16 %v6980_v29  ;;  %v6981_v35 = vunpack.i.l.bf16 %v6980_v29 }
 0x322   :  { %3094 = vmatprep.mubr.bf16.mxu0 %v2859_v1 }
 0x323   :  { %3095 = vmatmul.mubr.bf16.gmra.mrb[20].mxu0 %v2858_v47  ;;  %v7015_v26 = vpop.permute.xlu1 %7014  ;;  %v2814_v63 = vsel %vm210_vm0, %v9474_v12, %v6982_v43  ;;  %v2813_v6 = vsel %vm210_vm0, %v9477_v56, %v6981_v35 }
 0x324   :  { %v6985_v57 = vpop.permute.xlu0 %6984  ;;  %v7017_v50 = vunpack.i.h.bf16 %v7015_v26  ;;  %v7016_v31 = vunpack.i.l.bf16 %v7015_v26 }
 0x325   :  { %v6987_v46 = vunpack.i.h.bf16 %v6985_v57  ;;  %v6986_v51 = vunpack.i.l.bf16 %v6985_v57 }
 0x326   :  { %v2795_v13 = vsel %vm2790_vm12, %v2778_v38, %v7016_v31  ;;  %v2796_v9 = vsel %vm2790_vm12, %v2779_v21, %v7017_v50  ;;  %v6997_v31 = vunpack.i.h.bf16 %v9625_v49 }
 0x327   :  { %v7020_v39 = vpop.permute.xlu1 %7019  ;;  %v2829_v34 = vsel %vm2773_vm11, %v2813_v6, %v6986_v51  ;;  %v2830_v44 = vsel %vm2773_vm11, %v2814_v63, %v6987_v46 }
 0x328   :  { %v6990_v10 = vpop.permute.xlu0 %6989  ;;  %v7022_v19 = vunpack.i.h.bf16 %v7020_v39  ;;  %v7021_v16 = vunpack.i.l.bf16 %v7020_v39 }
 0x329   :  { %v6992_v11 = vunpack.i.h.bf16 %v6990_v10  ;;  %v6991_v37 = vunpack.i.l.bf16 %v6990_v10 }
 0x32a   :  { %v2764_v17 = vsel %vm210_vm0, %v9461_v0, %v7022_v19  ;;  %v2763_v54 = vsel %vm210_vm0, %v9464_v53, %v7021_v16 }
 0x32b   :  { %v7025_v60 = vpop.permute.xlu1 %7024  ;;  %v2845_v1 = vsel %vm2790_vm12, %v2829_v34, %v6991_v37  ;;  %v2846_v47 = vsel %vm2790_vm12, %v2830_v44, %v6992_v11 }
 0x32c   :  { %v7000_v42 = vpop.permute.xlu0 %6999  ;;  %v7027_v57 = vunpack.i.h.bf16 %v7025_v60  ;;  %v7026_v26 = vunpack.i.l.bf16 %v7025_v60  ;;  %v2865_v39 = vpack.c.bf16 %v2846_v47, %v2845_v1 }
 0x32d   :  { %v7002_v33 = vunpack.i.h.bf16 %v7000_v42  ;;  %v7001_v52 = vunpack.i.l.bf16 %v7000_v42  ;;  %v2861_v42 = vpack.c.bf16 %v2796_v9, %v2795_v13 }
 0x32e   :  { %v2780_v35 = vsel %vm2773_vm11, %v2763_v54, %v7026_v26  ;;  %v2781_v50 = vsel %vm2773_vm11, %v2764_v17, %v7027_v57 }
 0x32f   :  { %v2812_v14 = vsel %vm210_vm0, %v9471_v58, %v7002_v33  ;;  %v2811_v12 = vsel %vm210_vm0, %v9447_v25, %v7001_v52  ;;  %v2797_v46 = vsel %vm2790_vm12, %v2780_v35, %v6996_v45  ;;  %v2798_v0 = vsel %vm2790_vm12, %v2781_v50, %v6997_v31  ;;  %v2237_v33 = vld [vmem:[#allocation2 + $0xf7] sm:$0xff] }
 0x330   :  { %v7005_v20 = vpop.permute.xlu0 %7004 }
 0x331   :  { %v7007_v27 = vunpack.i.h.bf16 %v7005_v20  ;;  %v7006_v18 = vunpack.i.l.bf16 %v7005_v20 }
 0x333   :  { %v2827_v28 = vsel %vm2773_vm11, %v2811_v12, %v7006_v18  ;;  %v2828_v29 = vsel %vm2773_vm11, %v2812_v14, %v7007_v27  ;;  %v2864_v27 = vpack.c.bf16 %v2798_v0, %v2797_v46 }
 0x334   :  { %v7010_v48 = vpop.permute.xlu0 %7009 }
 0x335   :  { %v7012_v8 = vunpack.i.h.bf16 %v7010_v48  ;;  %v7011_v56 = vunpack.i.l.bf16 %v7010_v48 }
 0x336   :  { %v7030_v10 = vpop.permute.xlu1 %7029 }
 0x337   :  { %v2843_v24 = vsel %vm2790_vm12, %v2827_v28, %v7011_v56  ;;  %v2844_v58 = vsel %vm2790_vm12, %v2828_v29, %v7012_v8  ;;  %v7032_v51 = vunpack.i.h.bf16 %v7030_v10  ;;  %v7031_v53 = vunpack.i.l.bf16 %v7030_v10 }
 0x338   :  { %v9651_v5 = vpop.permute.xlu0 %7039  ;;  %v2862_v25 = vpack.c.bf16 %v2844_v58, %v2843_v24 }
 0x339   :  { %v2766_v49 = vsel %vm210_vm0, %v9523_v55, %v7032_v51  ;;  %v2765_v6 = vsel %vm210_vm0, %v2237_v33, %v7031_v53  ;;  %v7042_v17 = vunpack.i.h.bf16 %v9651_v5  ;;  %v7041_v54 = vunpack.i.l.bf16 %v9651_v5 }
 0x33a   :  { %3102 = vmatprep.mubr.bf16.mxu0 %v2862_v25  ;;  %v7035_v43 = vpop.permute.xlu1 %7034 }
 0x33b   :  { %3103 = vmatmul.mubr.bf16.gmra.mrb[24].mxu0 %v2861_v42  ;;  %v7037_v52 = vunpack.i.h.bf16 %v7035_v43  ;;  %v7036_v38 = vunpack.i.l.bf16 %v7035_v43  ;;  %v2818_v53 = vsel %vm210_vm0, %v9543_v4, %v7042_v17  ;;  %v2817_v5 = vsel %vm210_vm0, %v9527_v40, %v7041_v54 }
 0x33c   :  { %3110 = vmatprep.mubr.bf16.mxu0 %v2865_v39  ;;  %v7050_v7 = vpop.permute.xlu0 %7049 }
 0x33d   :  { %v7052_v11 = vunpack.i.h.bf16 %v7050_v7  ;;  %v7051_v37 = vunpack.i.l.bf16 %v7050_v7  ;;  %v2782_v16 = vsel %vm2773_vm11, %v2765_v6, %v7036_v38  ;;  %v2783_v48 = vsel %vm2773_vm11, %v2766_v49, %v7037_v52 }
 0x33e   :  { %v7045_v20 = vpop.permute.xlu1 %7044 }
 0x33f   :  { %v2816_v34 = vsel %vm210_vm0, %v9520_v23, %v7052_v11  ;;  %v2815_v44 = vsel %vm210_vm0, %v9498_v36, %v7051_v37  ;;  %v7047_v46 = vunpack.i.h.bf16 %v7045_v20  ;;  %v7046_v0 = vunpack.i.l.bf16 %v7045_v20 }
 0x340   :  { %v7055_v21 = vpop.permute.xlu0 %7054 }
 0x341   :  { %v7057_v18 = vunpack.i.h.bf16 %v7055_v21  ;;  %v7056_v63 = vunpack.i.l.bf16 %v7055_v21 }
 0x342   :  { %v7065_v60 = vpop.permute.xlu1 %7064 }
 0x343   :  { %3111 = vmatmul.mubr.bf16.gmra.mrb[28].mxu0 %v2864_v27  ;;  %v7067_v13 = vunpack.i.h.bf16 %v7065_v60  ;;  %v7066_v9 = vunpack.i.l.bf16 %v7065_v60  ;;  %v2831_v55 = vsel %vm2773_vm11, %v2815_v44, %v7056_v63  ;;  %v2832_v8 = vsel %vm2773_vm11, %v2816_v34, %v7057_v18 }
 0x344   :  { %v7060_v19 = vpop.permute.xlu0 %7059 }
 0x345   :  { %v7062_v14 = vunpack.i.h.bf16 %v7060_v19  ;;  %v7061_v12 = vunpack.i.l.bf16 %v7060_v19  ;;  %v2799_v56 = vsel %vm2790_vm12, %v2782_v16, %v7066_v9  ;;  %v2800_v28 = vsel %vm2790_vm12, %v2783_v48, %v7067_v13 }
 0x346   :  { %v2867_v57 = vpack.c.bf16 %v2800_v28, %v2799_v56  ;;  %v7070_v23 = vpop.permute.xlu1 %7069 }
 0x347   :  { %v2847_v29 = vsel %vm2790_vm12, %v2831_v55, %v7061_v12  ;;  %v2848_v1 = vsel %vm2790_vm12, %v2832_v8, %v7062_v14  ;;  %v7072_v26 = vunpack.i.h.bf16 %v7070_v23  ;;  %v7071_v10 = vunpack.i.l.bf16 %v7070_v23 }
 0x348   :  { %v2868_v47 = vpack.c.bf16 %v2848_v1, %v2847_v29 }
 0x349   :  { %v2768_v39 = vsel %vm210_vm0, %v9513_v32, %v7072_v26  ;;  %v2767_v43 = vsel %vm210_vm0, %v9510_v62, %v7071_v10 }
 0x34a   :  { %3118 = vmatprep.mubr.bf16.mxu0 %v2868_v47  ;;  %v7075_v36 = vpop.permute.xlu1 %7074 }
 0x34b   :  { %3119 = vmatmul.mubr.bf16.gmra.mrb[32].mxu0 %v2867_v57  ;;  %v7077_v24 = vunpack.i.h.bf16 %v7075_v36  ;;  %v7076_v58 = vunpack.i.l.bf16 %v7075_v36 }
 0x34d   :  { %v2784_v45 = vsel %vm2773_vm11, %v2767_v43, %v7076_v58  ;;  %v2785_v7 = vsel %vm2773_vm11, %v2768_v39, %v7077_v24 }
 0x34e   :  { %v2801_v38 = vsel %vm2790_vm12, %v2784_v45, %v7046_v0  ;;  %v2802_v21 = vsel %vm2790_vm12, %v2785_v7, %v7047_v46 }
 0x34f   :  { %v2870_v18 = vpack.c.bf16 %v2802_v21, %v2801_v38 }
 0x357   :  { %v7090_v25 = vpop.permute.xlu1 %7089 }
 0x358   :  { %v7080_v42 = vpop.permute.xlu0 %7079  ;;  %v7092_v49 = vunpack.i.h.bf16 %v7090_v25  ;;  %v7091_v6 = vunpack.i.l.bf16 %v7090_v25 }
 0x359   :  { %v7082_v35 = vunpack.i.h.bf16 %v7080_v42  ;;  %v7081_v50 = vunpack.i.l.bf16 %v7080_v42 }
 0x35a   :  { %v2770_v55 = vsel %vm210_vm0, %v9547_v41, %v7092_v49  ;;  %v2769_v8 = vsel %vm210_vm0, %v9507_v2, %v7091_v6 }
 0x35b   :  { %v7095_v31 = vpop.permute.xlu1 %7094  ;;  %v2833_v62 = vsel %vm2773_vm11, %v2817_v5, %v7081_v50  ;;  %v2834_v52 = vsel %vm2773_vm11, %v2818_v53, %v7082_v35 }
 0x35c   :  { %v7085_v51 = vpop.permute.xlu0 %7084  ;;  %v7097_v60 = vunpack.i.h.bf16 %v7095_v31  ;;  %v7096_v13 = vunpack.i.l.bf16 %v7095_v31 }
 0x35d   :  { %v7087_v32 = vunpack.i.h.bf16 %v7085_v51  ;;  %v7086_v33 = vunpack.i.l.bf16 %v7085_v51 }
 0x35e   :  { %v2786_v28 = vsel %vm2773_vm11, %v2769_v8, %v7096_v13  ;;  %v2787_v29 = vsel %vm2773_vm11, %v2770_v55, %v7097_v60  ;;  %v7652_v60 = vld [vmem:[#allocation15 + $0x80] sm:$0xff]   ;;  %v7653_v13 = vld [vmem:[#allocation15 + $0x88] sm:$0xff]  }
 0x35f   :  { %v7130_v11 = vpop.permute.xlu1 %7129  ;;  %v2849_v20 = vsel %vm2790_vm12, %v2833_v62, %v7086_v33  ;;  %v2850_v37 = vsel %vm2790_vm12, %v2834_v52, %v7087_v32  ;;  %6132 = vmatprep.subr.bf16.mxu0 %v7652_v60  ;;  %v9756_v8 = vld [vmem:[#allocation11] ss:$0 sm:$0xff] }
 0x360   :  { %v7100_v27 = vpop.permute.xlu0 %7099  ;;  %v2871_v4 = vpack.c.bf16 %v2850_v37, %v2849_v20  ;;  %v7132_v34 = vunpack.i.h.bf16 %v7130_v11  ;;  %v7131_v44 = vunpack.i.l.bf16 %v7130_v11  ;;  %6133 = vmatpush3.bf16.msra.mxu0 %v7652_v60 }
 0x361   :  { %v7102_v10 = vunpack.i.h.bf16 %v7100_v27  ;;  %6134 = vmatprep.subr.bf16.mxu0 %v7653_v13 }
 0x362   :  { %3126 = vmatprep.mubr.bf16.mxu0 %v2871_v4  ;;  %v2803_v26 = vsel %vm2790_vm12, %v2786_v28, %v7131_v44  ;;  %v2804_v2 = vsel %vm2790_vm12, %v2787_v29, %v7132_v34 }
 0x363   :  { %3127 = vmatmul.mubr.bf16.gmra.mrb[36].mxu0 %v2870_v18  ;;  %v7135_v40 = vpop.permute.xlu1 %7134  ;;  %v2873_v35 = vpack.c.bf16 %v2804_v2, %v2803_v26  ;;  %v2822_v46 = vsel %vm210_vm0, %v9587_v22, %v7102_v10 }
 0x364   :  { %v7105_v63 = vpop.permute.xlu0 %7104  ;;  %v7137_v42 = vunpack.i.h.bf16 %v7135_v40  ;;  %v7136_v17 = vunpack.i.l.bf16 %v7135_v40  ;;  %6135 = vmatpush3.bf16.msra.mxu0 %v7653_v13 }
 0x365   :  { %v7107_v19 = vunpack.i.h.bf16 %v7105_v63  ;;  %v7106_v16 = vunpack.i.l.bf16 %v7105_v63 }
 0x366   :  { %v2772_v51 = vsel %vm210_vm0, %v9576_v59, %v7137_v42  ;;  %v2771_v53 = vsel %vm210_vm0, %v9559_v61, %v7136_v17  ;;  %v7656_v42 = vld [vmem:[#allocation15 + $0x48] sm:$0xff]  }
 0x367   :  { %v7140_v48 = vpop.permute.xlu1 %7139  ;;  %v2820_v1 = vsel %vm210_vm0, %v9565_v3, %v7107_v19  ;;  %v2819_v47 = vsel %vm210_vm0, %v9545_v30, %v7106_v16  ;;  %v7101_v3 = vunpack.i.l.bf16 %v7100_v27  ;;  %v7657_v17 = vld [vmem:[#allocation15 + $0x8] sm:$0xff]  }
 0x368   :  { %v7110_v9 = vpop.permute.xlu0 %7109  ;;  %v7142_v39 = vunpack.i.h.bf16 %v7140_v48  ;;  %v7141_v43 = vunpack.i.l.bf16 %v7140_v48 }
 0x369   :  { %v7112_v14 = vunpack.i.h.bf16 %v7110_v9  ;;  %v7111_v12 = vunpack.i.l.bf16 %v7110_v9  ;;  %v2821_v0 = vsel %vm210_vm0, %v9570_v15, %v7101_v3 }
 0x36a   :  { %v2788_v62 = vsel %vm2773_vm11, %v2771_v53, %v7141_v43  ;;  %v2789_v52 = vsel %vm2773_vm11, %v2772_v51, %v7142_v39 }
 0x36b   :  { %v2835_v36 = vsel %vm2773_vm11, %v2819_v47, %v7111_v12  ;;  %v2836_v41 = vsel %vm2773_vm11, %v2820_v1, %v7112_v14  ;;  %v7145_v24 = vpop.permute.xlu1 %7144  ;;  %v9758_v1 = vld [vmem:[#allocation14] ss:$0 sm:$0xff] }
 0x36c   :  { %v7115_v56 = vpop.permute.xlu0 %7114  ;;  %v7147_v50 = vunpack.i.h.bf16 %v7145_v24  ;;  %v7146_v31 = vunpack.i.l.bf16 %v7145_v24 }
 0x36d   :  { %v7117_v57 = vunpack.i.h.bf16 %v7115_v56  ;;  %v7116_v23 = vunpack.i.l.bf16 %v7115_v56 }
 0x36e   :  { %v2805_v21 = vsel %vm2790_vm12, %v2788_v62, %v7146_v31  ;;  %v2806_v15 = vsel %vm2790_vm12, %v2789_v52, %v7147_v50  ;;  %v7662_v52 = vld [vmem:[#allocation15 + $0x60] sm:$0xff]  }
 0x36f   :  { %v2851_v58 = vsel %vm2790_vm12, %v2835_v36, %v7116_v23  ;;  %v2852_v25 = vsel %vm2790_vm12, %v2836_v41, %v7117_v57  ;;  %v2876_v27 = vpack.c.bf16 %v2806_v15, %v2805_v21  ;;  %v7664_v15 = vld [vmem:[#allocation15 + $0x68] sm:$0xff]  }
 0x370   :  { %v7120_v30 = vpop.permute.xlu0 %7119  ;;  %v2874_v54 = vpack.c.bf16 %v2852_v25, %v2851_v58  ;;  %v7654_v58 = vld [vmem:[#allocation15 + $0x40] sm:$0xff]  }
 0x371   :  { %v7122_v45 = vunpack.i.h.bf16 %v7120_v30  ;;  %v7121_v7 = vunpack.i.l.bf16 %v7120_v30  ;;  %v7655_v25 = vld [vmem:[#allocation15] sm:$0xff]   ;;  %5910 = vmatprep.subr.bf16.mxu1 %v7654_v58  ;;  %v3312_v30 = vld [vmem:[#allocation2 + $0x8] sm:$0xff] }
 0x372   :  { %3134 = vmatprep.mubr.bf16.mxu0 %v2874_v54  ;;  %5911 = vmatpush3.bf16.msra.mxu1 %v7655_v25  ;;  %v7658_v54 = vld [vmem:[#allocation15 + $0x50] sm:$0xff]  }
 0x373   :  { %3135 = vmatmul.mubr.bf16.gmra.mrb[40].mxu0 %v2873_v35  ;;  %v2837_v38 = vsel %vm2773_vm11, %v2821_v0, %v7121_v7  ;;  %v2838_v22 = vsel %vm2773_vm11, %v2822_v46, %v7122_v45  ;;  %5912 = vmatprep.subr.bf16.mxu1 %v7656_v42  ;;  %v7659_v35 = vld [vmem:[#allocation15 + $0x10] sm:$0xff]   ;;  %v7660_v46 = vld [vmem:[#allocation15 + $0x58] sm:$0xff]  }
 0x374   :  { %v7125_v5 = vpop.permute.xlu0 %7124  ;;  %v3328_v45 = vld [vmem:[#allocation2 + $0x9] sm:$0xff]  ;;  %v7661_v0 = vld [vmem:[#allocation15 + $0x18] sm:$0xff]  }
 0x375   :  { %v7127_v32 = vunpack.i.h.bf16 %v7125_v5  ;;  %v7126_v33 = vunpack.i.l.bf16 %v7125_v5 }
 0x376   :  { %5913 = vmatpush3.bf16.msra.mxu1 %v7657_v17 }
 0x377   :  { %v2853_v59 = vsel %vm2790_vm12, %v2837_v38, %v7126_v33  ;;  %v2854_v11 = vsel %vm2790_vm12, %v2838_v22, %v7127_v32  ;;  %v9728_v61 = vpop.f32.mrb[0].mxu1  ;;  %5914 = vmatprep.subr.bf16.mxu1 %v7658_v54  ;;  %v7663_v38 = vld [vmem:[#allocation15 + $0x20] sm:$0xff]  }
 0x378   :  { %v2877_v20 = vpack.c.bf16 %v2854_v11, %v2853_v59  ;;  %v3185_v37 = vpop.f32.mrb[1].mxu1 }
 0x379   :  { %v9730_v4 = vpop.f32.mrb[2].mxu1 }
 0x37a   :  { %3142 = vmatprep.mubr.bf16.mxu0 %v2877_v20  ;;  %v3188_v18 = vpop.f32.mrb[3].mxu1  ;;  %5915 = vmatpush3.bf16.msra.mxu1 %v7659_v35 }
 0x37b   :  { %3143 = vmatmul.mubr.bf16.gmra.mrb[44].mxu0 %v2876_v27  ;;  %5916 = vmatprep.subr.bf16.mxu1 %v7660_v46 }
 0x37e   :  { %5917 = vmatpush3.bf16.msra.mxu1 %v7661_v0 }
 0x37f   :  { %v9732_v40 = vpop.f32.mrb[4].mxu1  ;;  %5918 = vmatprep.subr.bf16.mxu1 %v7662_v52 }
 0x380   :  { %v9734_v63 = vpop.f32.mrb[5].mxu1 }
 0x381   :  { %v9736_v49 = vpop.f32.mrb[6].mxu1 }
 0x382   :  { %v9738_v6 = vpop.f32.mrb[7].mxu1  ;;  %5919 = vmatpush3.bf16.msra.mxu1 %v7663_v38 }
 0x383   :  { %5920 = vmatprep.subr.bf16.mxu1 %v7664_v15 }
 0x3b7   :  { %v9740_v9 = vpop.f32.mrb[8].mxu1 }
 0x3b8   :  { %v9742_v19 = vpop.f32.mrb[9].mxu1 }
 0x3b9   :  { %v9744_v16 = vpop.f32.mrb[10].mxu1 }
 0x3ba   :  { %v9746_v48 = vpop.f32.mrb[11].mxu1 }
 0x3bf   :  { %v9748_v34 = vpop.f32.mrb[12].mxu1 }
 0x3c0   :  { %v9750_v44 = vpop.f32.mrb[13].mxu1 }
 0x3c1   :  { %v9752_v14 = vpop.f32.mrb[14].mxu1 }
 0x3c2   :  { %v9754_v12 = vpop.f32.mrb[15].mxu1 }
 0x3dd   :  { %v5852_v55 = vpop.f32.mrb[16].mxu0 }
 0x3de   :  { %v5853_v56 = vpop.f32.mrb[17].mxu0 }
 0x3df   :  { %v5854_v28 = vadd.f32 %v5853_v56, %v5852_v55  ;;  %v5855_v29 = vpop.f32.mrb[18].mxu0 }
 0x3e0   :  { %v5856_v47 = vpop.f32.mrb[19].mxu0 }
 0x3e1   :  { %v3089_v57 = vadd.f32 %v5854_v28, %v9756_v8  ;;  %v5857_v23 = vadd.f32 %v5856_v47, %v5855_v29  ;;  %v7666_v28 = vld [vmem:[#allocation15 + $0x70] sm:$0xff]  }
 0x3e2   :  { %v7667_v29 = vld [vmem:[#allocation15 + $0x30] sm:$0xff]  }
 0x3e3   :  { %v6194_v36 = vadd.f32 %v9758_v1, %v3089_v57  ;;  %v3092_v41 = vadd.f32 %v5857_v23, %v9756_v8  ;;  %v7669_v57 = vld [vmem:[#allocation15 + $0x38] sm:$0xff]  }
 0x3e5   :  { %v9763_v26 = vadd.f32 %v6194_v36, %v3185_v37  ;;  %v6198_v2 = vadd.f32 %v9758_v1, %v3092_v41 }
 0x3e7   :  { %v10727_v10 = vmax.f32 %v9763_v26, 0.0  ;;  %v9767_v24 = vadd.f32 %v6198_v2, %v3188_v18  ;;  %v7665_v18 = vld [vmem:[#allocation15 + $0x28] sm:$0xff]  }
 0x3e8   :  { %5921 = vmatpush3.bf16.msra.mxu1 %v7665_v18 }
 0x3e9   :  { %3280 = vst.msk [vmem:[#allocation2 + $0x20] sm:$0xff] %vm210_vm0, %v10727_v10  ;;  %v10726_v3 = vmax.f32 %v9767_v24, 0.0  ;;  %5922 = vmatprep.subr.bf16.mxu1 %v7666_v28 }
 0x3eb   :  { %3281 = vst.msk [vmem:[#allocation2 + $0x38] sm:$0xff] %vm210_vm0, %v10726_v3 }
 0x3ec   :  { %5923 = vmatpush3.bf16.msra.mxu1 %v7667_v29 }
 0x3f0   :  { %v9776_v39 = vld [vmem:[#allocation2 + $0x20] sm:$0xff] }
 0x3f1   :  { %v7148_v43 = vpack.i.bf16 %v9776_v39, %v3312_v30  ;;  %v3376_v50 = vld [vmem:[#allocation2 + $0x21] sm:$0xff] }
 0x3f2   :  { %v9779_v31 = vld [vmem:[#allocation2 + $0x39] sm:$0xff]  ;;  %v7153_v53 = vpack.i.bf16 %v3376_v50, %v3328_v45 }
 0x3f3   :  { %7149 = vrot.lane.b32.xlu1 %v7148_v43, %s8038_s24  ;;  %v7158_v7 = vpack.i.bf16 %v9779_v31, %v3376_v50  ;;  %v9784_v32 = vld [vmem:[#allocation2 + $0x37] sm:$0xff]  ;;  %v9787_v21 = vld [vmem:[#allocation2 + $0x1f] sm:$0xff] }
 0x3f4   :  { %v7163_v20 = vpack.i.bf16 %v9784_v32, %v9787_v21 }
 0x3f5   :  { %7159 = vrot.lane.b32.xlu0 %v7158_v7, %s8038_s24 }
 0x3f6   :  { %v5858_v51 = vpop.f32.mrb[20].mxu0 }
 0x3f7   :  { %v5859_v5 = vpop.f32.mrb[21].mxu0  ;;  %7154 = vrot.lane.b32.xlu1 %v7153_v53, %s8016_s18 }
 0x3f8   :  { %v5860_v33 = vadd.f32 %v5859_v5, %v5858_v51  ;;  %v5861_v62 = vpop.f32.mrb[22].mxu0 }
 0x3f9   :  { %v5862_v22 = vpop.f32.mrb[23].mxu0 }
 0x3fa   :  { %v3097_v59 = vadd.f32 %v5860_v33, %v9756_v8  ;;  %v5863_v11 = vadd.f32 %v5862_v22, %v5861_v62 }
 0x3fb   :  { %7164 = vrot.lane.b32.xlu1 %v7163_v20, %s8039_s21 }
 0x3fc   :  { %v6192_v37 = vadd.f32 %v9758_v1, %v3097_v59  ;;  %v3100_v27 = vadd.f32 %v5863_v11, %v9756_v8 }
 0x3fe   :  { %v9796_v60 = vadd.f32 %v6192_v37, %v9728_v61  ;;  %v6196_v13 = vadd.f32 %v9758_v1, %v3100_v27  ;;  %v7668_v61 = vld [vmem:[#allocation15 + $0x78] sm:$0xff]  }
 0x3ff   :  { %5924 = vmatprep.subr.bf16.mxu1 %v7668_v61 }
 0x400   :  { %v10725_v55 = vmax.f32 %v9796_v60, 0.0  ;;  %v9801_v56 = vadd.f32 %v6196_v13, %v9730_v4  ;;  %v9810_v4 = vld [vmem:[#allocation2 + $0x38] sm:$0xff]  ;;  %5925 = vmatpush3.bf16.msra.mxu1 %v7669_v57 }
 0x402   :  { %3282 = vst.msk [vmem:[#allocation2 + $0x50] sm:$0xff] %vm210_vm0, %v10725_v55  ;;  %v10724_v47 = vmax.f32 %v9801_v56, 0.0  ;;  %v3296_v55 = vld [vmem:[#allocation2 + $0x7] sm:$0xff] }
 0x404   :  { %3283 = vst.msk [vmem:[#allocation2 + $0x68] sm:$0xff] %vm210_vm0, %v10724_v47 }
 0x409   :  { %v3425_v23 = vld [vmem:[#allocation2 + $0x51] sm:$0xff] }
 0x40a   :  { %v9812_v36 = vld [vmem:[#allocation2 + $0x4f] sm:$0xff]  ;;  %v3922_v2 = vpack.c.bf16 %v3425_v23, %v9779_v31  ;;  %v7183_v30 = vpack.i.bf16 %v3425_v23, %v9779_v31 }
 0x40b   :  { %v9814_v41 = vld [vmem:[#allocation2 + $0x50] sm:$0xff]  ;;  %v7168_v58 = vpack.i.bf16 %v9812_v36, %v9784_v32  ;;  %v9828_v50 = vld [vmem:[#allocation2 + $0x67] sm:$0xff] }
 0x40c   :  { %v7178_v25 = vpack.i.bf16 %v9814_v41, %v9810_v4  ;;  %6136 = vmatprep.mubr.msk.bf16.mxu0 %vm210_vm0, %v3922_v2  ;;  %v9825_v54 = vld [vmem:[#allocation2 + $0x69] sm:$0xff]  ;;  %v7193_v51 = vpack.i.bf16 %v9828_v50, %v9812_v36 }
 0x40d   :  { %7169 = vrot.lane.b32.xlu0 %v7168_v58, %s8016_s18  ;;  %v7188_v0 = vpack.i.bf16 %v9825_v54, %v3425_v23 }
 0x40e   :  { %7179 = vrot.lane.b32.xlu1 %v7178_v25, %s8038_s24  ;;  %v5864_v42 = vpop.f32.mrb[24].mxu0 }
 0x40f   :  { %v5865_v17 = vpop.f32.mrb[25].mxu0 }
 0x410   :  { %v5866_v43 = vadd.f32 %v5865_v17, %v5864_v42  ;;  %v5867_v35 = vpop.f32.mrb[26].mxu0 }
 0x411   :  { %7174 = vrot.lane.b32.xlu0 %v7178_v25, %s8039_s21  ;;  %v5868_v45 = vpop.f32.mrb[27].mxu0 }
 0x412   :  { %7184 = vrot.lane.b32.xlu1 %v7183_v30, %s8016_s18  ;;  %v3105_v7 = vadd.f32 %v5866_v43, %v9756_v8  ;;  %v5869_v46 = vadd.f32 %v5868_v45, %v5867_v35  ;;  %v9875_v35 = vld [vmem:[#allocation2 + $0x68] sm:$0xff] }
 0x414   :  { %v6202_v31 = vadd.f32 %v9758_v1, %v3105_v7  ;;  %v3108_v53 = vadd.f32 %v5869_v46, %v9756_v8 }
 0x415   :  { %7189 = vrot.lane.b32.xlu0 %v7188_v0, %s8038_s24 }
 0x416   :  { %7194 = vrot.lane.b32.xlu1 %v7193_v51, %s8039_s21  ;;  %v9840_v5 = vadd.f32 %v6202_v31, %v9734_v63  ;;  %v6206_v33 = vadd.f32 %v9758_v1, %v3108_v53  ;;  %v5870_v62 = vpop.f32.mrb[28].mxu0 }
 0x417   :  { %v5871_v52 = vpop.f32.mrb[29].mxu0 }
 0x418   :  { %v10723_v38 = vmax.f32 %v9840_v5, 0.0  ;;  %v9845_v22 = vadd.f32 %v6206_v33, %v9738_v6  ;;  %v5872_v15 = vadd.f32 %v5871_v52, %v5870_v62  ;;  %v5873_v59 = vpop.f32.mrb[30].mxu0 }
 0x419   :  { %v5874_v11 = vpop.f32.mrb[31].mxu0 }
 0x41a   :  { %3284 = vst.msk [vmem:[#allocation2 + $0x80] sm:$0xff] %vm210_vm0, %v10723_v38  ;;  %v10722_v20 = vmax.f32 %v9845_v22, 0.0  ;;  %v3113_v63 = vadd.f32 %v5872_v15, %v9756_v8  ;;  %v5875_v37 = vadd.f32 %v5874_v11, %v5873_v59  ;;  %v3431_v11 = vld [vmem:[#allocation2 + $0xe1] sm:$0xff] }
 0x41c   :  { %3285 = vst.msk [vmem:[#allocation2 + $0x98] sm:$0xff] %vm210_vm0, %v10722_v20  ;;  %v6200_v27 = vadd.f32 %v9758_v1, %v3113_v63  ;;  %v3116_v6 = vadd.f32 %v5875_v37, %v9756_v8 }
 0x41e   :  { %v9858_v18 = vadd.f32 %v6200_v27, %v9732_v40  ;;  %v6204_v13 = vadd.f32 %v9758_v1, %v3116_v6  ;;  %v5876_v28 = vpop.f32.mrb[32].mxu0 }
 0x41f   :  { %v5877_v29 = vpop.f32.mrb[33].mxu0 }
 0x420   :  { %v10721_v61 = vmax.f32 %v9858_v18, 0.0  ;;  %v9863_v57 = vadd.f32 %v6204_v13, %v9736_v49  ;;  %v5878_v23 = vadd.f32 %v5877_v29, %v5876_v28  ;;  %v5879_v2 = vpop.f32.mrb[34].mxu0 }
 0x421   :  { %v5880_v58 = vpop.f32.mrb[35].mxu0  ;;  %v3427_v25 = vld [vmem:[#allocation2 + $0x81] sm:$0xff] }
 0x422   :  { %v9865_v42 = vld [vmem:[#allocation2 + $0x7f] sm:$0xff]  ;;  %3286 = vst.msk [vmem:[#allocation2 + $0xb0] sm:$0xff] %vm210_vm0, %v10721_v61  ;;  %v10720_v40 = vmax.f32 %v9863_v57, 0.0  ;;  %v3121_v30 = vadd.f32 %v5878_v23, %v9756_v8  ;;  %v5881_v43 = vadd.f32 %v5880_v58, %v5879_v2  ;;  %v3925_v49 = vpack.c.bf16 %v3427_v25, %v9825_v54 }
 0x423   :  { %v9867_v17 = vld [vmem:[#allocation2 + $0x80] sm:$0xff]  ;;  %v7198_v45 = vpack.i.bf16 %v9865_v42, %v9828_v50  ;;  %v7213_v53 = vpack.i.bf16 %v3427_v25, %v9825_v54  ;;  %v9898_v15 = vld [vmem:[#allocation2 + $0x97] sm:$0xff] }
 0x424   :  { %v7208_v7 = vpack.i.bf16 %v9867_v17, %v9875_v35  ;;  %3287 = vst.msk [vmem:[#allocation2 + $0xc8] sm:$0xff] %vm210_vm0, %v10720_v40  ;;  %v6210_v46 = vadd.f32 %v9758_v1, %v3121_v30  ;;  %v3124_v0 = vadd.f32 %v5881_v43, %v9756_v8  ;;  %6137 = vmatmul.mubr.msk.bf16.vlgmr.msra.gmra.mrb[48].mxu0 %vm210_vm0, %v3925_v49  ;;  %v3428_v52 = vld [vmem:[#allocation2 + $0x99] sm:$0xff] }
 0x425   :  { %7199 = vrot.lane.b32.xlu0 %v7198_v45, %s8016_s18  ;;  %v7218_v63 = vpack.i.bf16 %v3428_v52, %v3427_v25  ;;  %v9919_v28 = vld [vmem:[#allocation2 + $0x98] sm:$0xff] }
 0x426   :  { %7209 = vrot.lane.b32.xlu1 %v7208_v7, %s8038_s24  ;;  %v9890_v51 = vadd.f32 %v6210_v46, %v9742_v19  ;;  %v6214_v31 = vadd.f32 %v9758_v1, %v3124_v0  ;;  %v3399_v46 = vld [vmem:[#allocation2 + $0xdf] sm:$0xff] }
 0x427   :  { %v3320_v0 = vld [vmem:[#allocation2 + $0xf8] sm:$0xff] }
 0x428   :  { %v10719_v33 = vmax.f32 %v9890_v51, 0.0  ;;  %v9896_v62 = vadd.f32 %v6214_v31, %v9746_v48  ;;  %v7223_v48 = vpack.i.bf16 %v9898_v15, %v9865_v42 }
 0x429   :  { %7204 = vrot.lane.b32.xlu0 %v7208_v7, %s8039_s21  ;;  %v3429_v59 = vld [vmem:[#allocation2 + $0xb1] sm:$0xff] }
 0x42a   :  { %7214 = vrot.lane.b32.xlu1 %v7213_v53, %s8016_s18  ;;  %3288 = vst.msk [vmem:[#allocation2 + $0x110] sm:$0xff] %vm210_vm0, %v10719_v33  ;;  %v10714_v19 = vmax.f32 %v9896_v62, 0.0  ;;  %v3928_v54 = vpack.c.bf16 %v3429_v59, %v3428_v52  ;;  %v9912_v6 = vld [vmem:[#allocation2 + $0xaf] sm:$0xff]  ;;  %v7243_v2 = vpack.i.bf16 %v3429_v59, %v3428_v52 }
 0x42b   :  { %v3430_v37 = vld [vmem:[#allocation2 + $0xc9] sm:$0xff]  ;;  %v7228_v29 = vpack.i.bf16 %v9912_v6, %v9898_v15 }
 0x42c   :  { %3289 = vst.msk [vmem:[#allocation2 + $0x128] sm:$0xff] %vm210_vm0, %v10714_v19  ;;  %6140 = vmatprep.mubr.msk.bf16.mxu0 %vm210_vm0, %v3928_v54  ;;  %v3931_v27 = vpack.c.bf16 %v3431_v11, %v3430_v37  ;;  %v9914_v13 = vld [vmem:[#allocation2 + $0xb0] sm:$0xff]  ;;  %v3351_v58 = vld [vmem:[#allocation2 + $0xc7] sm:$0xff]  ;;  %v7248_v43 = vpack.i.bf16 %v3430_v37, %v3429_v59 }
 0x42d   :  { %7219 = vrot.lane.b32.xlu0 %v7218_v63, %s8038_s24  ;;  %v7238_v23 = vpack.i.bf16 %v9914_v13, %v9919_v28  ;;  %v7263_v49 = vpack.i.bf16 %v3351_v58, %v9912_v6  ;;  %v7253_v54 = vpack.i.bf16 %v3399_v46, %v3351_v58  ;;  %v3415_v59 = vld [vmem:[#allocation2 + $0xe0] sm:$0xff] }
 0x42e   :  { %7224 = vrot.lane.b32.xlu1 %v7223_v48, %s8039_s21  ;;  %6141 = vmatmul.mubr.msk.bf16.gmra.mrb[52].mxu0 %vm210_vm0, %v3931_v27  ;;  %v9938_v27 = vld [vmem:[#allocation2 + $0xc8] sm:$0xff] }
 0x431   :  { %7229 = vrot.lane.b32.xlu0 %v7228_v29, %s8016_s18  ;;  %v9930_v31 = vld [vmem:[#allocation2 + $0x110] sm:$0xff]  ;;  %v3336_v29 = vld [vmem:[#allocation2 + $0xf9] sm:$0xff] }
 0x432   :  { %7239 = vrot.lane.b32.xlu1 %v7238_v23, %s8038_s24  ;;  %v7268_v63 = vpack.i.bf16 %v9930_v31, %v3320_v0  ;;  %v9959_v46 = vld [vmem:[#allocation2 + $0x10f] sm:$0xff] }
 0x435   :  { %7234 = vrot.lane.b32.xlu0 %v7238_v23, %s8039_s21  ;;  %v3337_v23 = vld [vmem:[#allocation2 + $0x111] sm:$0xff] }
 0x436   :  { %7244 = vrot.lane.b32.xlu1 %v7243_v2, %s8016_s18  ;;  %v5882_v25 = vpop.f32.mrb[36].mxu0 }
 0x437   :  { %v5883_v30 = vpop.f32.mrb[37].mxu0 }
 0x438   :  { %v5884_v45 = vadd.f32 %v5883_v30, %v5882_v25  ;;  %v5885_v7 = vpop.f32.mrb[38].mxu0  ;;  %v7258_v25 = vpack.i.bf16 %v3415_v59, %v9938_v27  ;;  %v7273_v30 = vpack.i.bf16 %v3337_v23, %v3336_v29 }
 0x439   :  { %7249 = vrot.lane.b32.xlu0 %v7248_v43, %s8038_s24  ;;  %v5886_v53 = vpop.f32.mrb[39].mxu0 }
 0x43a   :  { %7264 = vrot.lane.b32.xlu1 %v7263_v49, %s8039_s21  ;;  %v3129_v52 = vadd.f32 %v5884_v45, %v9756_v8  ;;  %v5887_v11 = vadd.f32 %v5886_v53, %v5885_v7  ;;  %v3385_v45 = vld [vmem:[#allocation2 + $0x129] sm:$0xff] }
 0x43b   :  { %v9951_v7 = vld [vmem:[#allocation2 + $0x127] sm:$0xff]  ;;  %v7278_v0 = vpack.i.bf16 %v3385_v45, %v3337_v23 }
 0x43c   :  { %v6208_v48 = vadd.f32 %v9758_v1, %v3129_v52  ;;  %v3132_v37 = vadd.f32 %v5887_v11, %v9756_v8 }
 0x43d   :  { %7254 = vrot.lane.b32.xlu0 %v7253_v54, %s8016_s18 }
 0x43e   :  { %7269 = vrot.lane.b32.xlu1 %v7268_v63, %s8038_s24  ;;  %v9943_v2 = vadd.f32 %v6208_v48, %v9740_v9  ;;  %v6212_v58 = vadd.f32 %v9758_v1, %v3132_v37 }
 0x440   :  { %v10713_v43 = vmax.f32 %v9943_v2, 0.0  ;;  %v9949_v49 = vadd.f32 %v6212_v58, %v9744_v16  ;;  %v7283_v16 = vpack.i.bf16 %v9951_v7, %v9959_v46 }
 0x441   :  { %7259 = vrot.lane.b32.xlu0 %v7258_v25, %s8039_s21 }
 0x442   :  { %10733 = vst [vmem:[#allocation33_spill] sm:$0xff] %v9949_v49  ;;  %7274 = vrot.lane.b32.xlu1 %v7273_v30, %s8016_s18  ;;  %3290 = vst.msk [vmem:[#allocation2 + $0x140] sm:$0xff] %vm210_vm0, %v10713_v43  ;;  %v10712_v9 = vmax.f32 %v9949_v49, 0.0  ;;  %v9975_v30 = vld [vmem:[#allocation2 + $0x128] sm:$0xff] }
 0x444   :  { %3291 = vst.msk [vmem:[#allocation2 + $0x158] sm:$0xff] %vm210_vm0, %v10712_v9 }
 0x445   :  { %7279 = vrot.lane.b32.xlu0 %v7278_v0, %s8038_s24 }
 0x446   :  { %7284 = vrot.lane.b32.xlu1 %v7283_v16, %s8039_s21  ;;  %v5888_v53 = vpop.f32.mrb[40].mxu0 }
 0x447   :  { %v5889_v52 = vpop.f32.mrb[41].mxu0 }
 0x448   :  { %v5890_v11 = vadd.f32 %v5889_v52, %v5888_v53  ;;  %v5891_v54 = vpop.f32.mrb[42].mxu0 }
 0x449   :  { %v5892_v63 = vpop.f32.mrb[43].mxu0  ;;  %v3433_v59 = vld [vmem:[#allocation2 + $0x141] sm:$0xff] }
 0x44a   :  { %v9968_v48 = vld [vmem:[#allocation2 + $0x13f] sm:$0xff]  ;;  %v3137_v29 = vadd.f32 %v5890_v11, %v9756_v8  ;;  %v5893_v23 = vadd.f32 %v5892_v63, %v5891_v54  ;;  %v3934_v58 = vpack.c.bf16 %v3433_v59, %v3385_v45  ;;  %v7303_v9 = vpack.i.bf16 %v3433_v59, %v3385_v45 }
 0x44b   :  { %v9970_v37 = vld [vmem:[#allocation2 + $0x140] sm:$0xff]  ;;  %v7288_v25 = vpack.i.bf16 %v9968_v48, %v9951_v7 }
 0x44c   :  { %v7298_v0 = vpack.i.bf16 %v9970_v37, %v9975_v30  ;;  %v6218_v16 = vadd.f32 %v9758_v1, %v3137_v29  ;;  %v3140_v53 = vadd.f32 %v5893_v23, %v9756_v8  ;;  %6144 = vmatprep.mubr.msk.bf16.mxu0 %vm210_vm0, %v3934_v58  ;;  %v3387_v43 = vld [vmem:[#allocation2 + $0x159] sm:$0xff] }
 0x44d   :  { %7289 = vrot.lane.b32.xlu0 %v7288_v25, %s8016_s18  ;;  %v9993_v25 = vld [vmem:[#allocation2 + $0x157] sm:$0xff] }
 0x44e   :  { %7299 = vrot.lane.b32.xlu1 %v7298_v0, %s8038_s24  ;;  %v9985_v52 = vadd.f32 %v6218_v16, %v9750_v44  ;;  %v6222_v11 = vadd.f32 %v9758_v1, %v3140_v53  ;;  %v5894_v54 = vpop.f32.mrb[44].mxu0 }
 0x44f   :  { %v5895_v63 = vpop.f32.mrb[45].mxu0 }
 0x450   :  { %10734 = vst [vmem:[#allocation34_spill] sm:$0xff] %v9985_v52  ;;  %v10718_v19 = vmax.f32 %v9985_v52, 0.0  ;;  %v9990_v29 = vadd.f32 %v6222_v11, %v9754_v12  ;;  %v5896_v23 = vadd.f32 %v5895_v63, %v5894_v54  ;;  %v5897_v58 = vpop.f32.mrb[46].mxu0  ;;  %v7308_v12 = vpack.i.bf16 %v3387_v43, %v3433_v59 }
 0x451   :  { %7294 = vrot.lane.b32.xlu0 %v7298_v0, %s8039_s21  ;;  %v5898_v44 = vpop.f32.mrb[47].mxu0  ;;  %v7313_v11 = vpack.i.bf16 %v9993_v25, %v9968_v48 }
 0x452   :  { %10735 = vst [vmem:[#allocation35_spill] sm:$0xff] %v9990_v29  ;;  %7304 = vrot.lane.b32.xlu1 %v7303_v9, %s8016_s18  ;;  %3292 = vst.msk [vmem:[#allocation2 + $0x170] sm:$0xff] %vm210_vm0, %v10718_v19  ;;  %v10716_v45 = vmax.f32 %v9990_v29, 0.0  ;;  %v3145_v16 = vadd.f32 %v5896_v23, %v9756_v8  ;;  %v5899_v53 = vadd.f32 %v5898_v44, %v5897_v58  ;;  %v10018_v58 = vld [vmem:[#allocation2 + $0x158] sm:$0xff] }
 0x454   :  { %3293 = vst.msk [vmem:[#allocation2 + $0x188] sm:$0xff] %vm210_vm0, %v10716_v45  ;;  %v6216_v9 = vadd.f32 %v9758_v1, %v3145_v16  ;;  %v3148_v0 = vadd.f32 %v5899_v53, %v9756_v8 }
 0x455   :  { %7309 = vrot.lane.b32.xlu0 %v7308_v12, %s8038_s24 }
 0x456   :  { %7314 = vrot.lane.b32.xlu1 %v7313_v11, %s8039_s21  ;;  %v10011_v54 = vadd.f32 %v6216_v9, %v9748_v34  ;;  %v6220_v59 = vadd.f32 %v9758_v1, %v3148_v0 }
 0x458   :  { %10736 = vst [vmem:[#allocation36_spill] sm:$0xff] %v10011_v54  ;;  %v10715_v63 = vmax.f32 %v10011_v54, 0.0  ;;  %v10016_v23 = vadd.f32 %v6220_v59, %v9752_v14  ;;  %v3439_v59 = vld [vmem:[#allocation2 + $0x1d1] sm:$0xff] }
 0x459   :  { %v3435_v44 = vld [vmem:[#allocation2 + $0x171] sm:$0xff] }
 0x45a   :  { %10737 = vst [vmem:[#allocation37_spill] sm:$0xff] %v10016_v23  ;;  %v10020_v16 = vld [vmem:[#allocation2 + $0x16f] sm:$0xff]  ;;  %3294 = vst.msk [vmem:[#allocation2 + $0x1a0] sm:$0xff] %vm210_vm0, %v10715_v63  ;;  %v10717_v34 = vmax.f32 %v10016_v23, 0.0  ;;  %v3937_v53 = vpack.c.bf16 %v3435_v44, %v3387_v43  ;;  %v7333_v12 = vpack.i.bf16 %v3435_v44, %v3387_v43 }
 0x45b   :  { %v10022_v8 = vld [vmem:[#allocation2 + $0x170] sm:$0xff]  ;;  %v7318_v1 = vpack.i.bf16 %v10020_v16, %v9993_v25  ;;  %v10039_v9 = vld [vmem:[#allocation2 + $0x187] sm:$0xff] }
 0x45c   :  { %v7328_v14 = vpack.i.bf16 %v10022_v8, %v10018_v58  ;;  %3295 = vst.msk [vmem:[#allocation2 + $0x1b8] sm:$0xff] %vm210_vm0, %v10717_v34  ;;  %6145 = vmatmul.mubr.msk.bf16.gmra.mrb[56].mxu0 %vm210_vm0, %v3937_v53  ;;  %v3436_v11 = vld [vmem:[#allocation2 + $0x189] sm:$0xff]  ;;  %v7343_v34 = vpack.i.bf16 %v10039_v9, %v10020_v16 }
 0x45d   :  { %7319 = vrot.lane.b32.xlu0 %v7318_v1, %s8016_s18  ;;  %v7338_v45 = vpack.i.bf16 %v3436_v11, %v3435_v44 }
 0x45e   :  { %7329 = vrot.lane.b32.xlu1 %v7328_v14, %s8038_s24 }
 0x461   :  { %7324 = vrot.lane.b32.xlu0 %v7328_v14, %s8039_s21  ;;  %v3437_v0 = vld [vmem:[#allocation2 + $0x1a1] sm:$0xff] }
 0x462   :  { %7334 = vrot.lane.b32.xlu1 %v7333_v12, %s8016_s18  ;;  %v3940_v63 = vpack.c.bf16 %v3437_v0, %v3436_v11  ;;  %v10044_v19 = vld [vmem:[#allocation2 + $0x19f] sm:$0xff]  ;;  %v10054_v14 = vld [vmem:[#allocation2 + $0x188] sm:$0xff] }
 0x463   :  { %v3438_v53 = vld [vmem:[#allocation2 + $0x1b9] sm:$0xff]  ;;  %v7348_v44 = vpack.i.bf16 %v10044_v19, %v10039_v9 }
 0x464   :  { %6148 = vmatprep.mubr.msk.bf16.mxu0 %vm210_vm0, %v3940_v63  ;;  %v3943_v43 = vpack.c.bf16 %v3439_v59, %v3438_v53  ;;  %v10048_v1 = vld [vmem:[#allocation2 + $0x1a0] sm:$0xff]  ;;  %v3359_v63 = vld [vmem:[#allocation2 + $0x1b7] sm:$0xff] }
 0x465   :  { %7339 = vrot.lane.b32.xlu0 %v7338_v45, %s8038_s24  ;;  %v7358_v12 = vpack.i.bf16 %v10048_v1, %v10054_v14  ;;  %v7363_v45 = vpack.i.bf16 %v3437_v0, %v3436_v11  ;;  %v7383_v59 = vpack.i.bf16 %v3359_v63, %v10044_v19  ;;  %v7150_v33 = vpop.permute.xlu1 %7149  ;;  %v10065_v61 = vld [vmem:[#allocation2 + $0x1b8] sm:$0xff] }
 0x466   :  { %7344 = vrot.lane.b32.xlu1 %v7343_v34, %s8039_s21  ;;  %6149 = vmatmul.mubr.msk.bf16.gmra.mrb[60].mxu0 %vm210_vm0, %v3943_v43  ;;  %v7368_v34 = vpack.i.bf16 %v3438_v53, %v3437_v0  ;;  %v3407_v43 = vld [vmem:[#allocation2 + $0x1cf] sm:$0xff]  ;;  %v7151_v20 = vunpack.i.l.bf16 %v7150_v33 }
 0x467   :  { %v7373_v40 = vpack.i.bf16 %v3407_v43, %v3359_v63  ;;  %v7160_v0 = vpop.permute.xlu0 %7159 }
 0x468   :  { %v7162_v38 = vunpack.i.h.bf16 %v7160_v0 }
 0x469   :  { %7349 = vrot.lane.b32.xlu0 %v7348_v44, %s8016_s18  ;;  %v3423_v44 = vld [vmem:[#allocation2 + $0x1d0] sm:$0xff] }
 0x46a   :  { %7359 = vrot.lane.b32.xlu1 %v7358_v12, %s8038_s24  ;;  %v7378_v11 = vpack.i.bf16 %v3423_v44, %v10065_v61 }
 0x46d   :  { %7354 = vrot.lane.b32.xlu0 %v7358_v12, %s8039_s21  ;;  %v7155_v12 = vpop.permute.xlu1 %7154 }
 0x46e   :  { %7364 = vrot.lane.b32.xlu1 %v7363_v45, %s8016_s18  ;;  %v7152_v45 = vunpack.i.h.bf16 %v7150_v33  ;;  %v7156_v63 = vunpack.i.l.bf16 %v7155_v12 }
 0x470   :  { %v3825_v44 = vsel %vm210_vm0, %v9787_v21, %v7152_v45 }
 0x471   :  { %7369 = vrot.lane.b32.xlu0 %v7368_v34, %s8038_s24  ;;  %v7165_v53 = vpop.permute.xlu1 %7164  ;;  %v7161_v34 = vunpack.i.l.bf16 %v7160_v0 }
 0x472   :  { %7384 = vrot.lane.b32.xlu1 %v7383_v59, %s8039_s21  ;;  %v7157_v59 = vunpack.i.h.bf16 %v7155_v12  ;;  %v7167_v43 = vunpack.i.h.bf16 %v7165_v53  ;;  %v7166_v3 = vunpack.i.l.bf16 %v7165_v53 }
 0x473   :  { %v3872_v33 = vsel %vm210_vm0, %v9776_v39, %v7161_v34 }
 0x474   :  { %v3841_v12 = vsel %vm2773_vm11, %v3825_v44, %v7157_v59 }
 0x475   :  { %7374 = vrot.lane.b32.xlu0 %v7373_v40, %s8016_s18  ;;  %v3824_v40 = vsel %vm210_vm0, %v3296_v55, %v7151_v20  ;;  %v3857_v55 = vsel %vm2790_vm12, %v3841_v12, %v7167_v43 }
 0x476   :  { %v3840_v54 = vsel %vm2773_vm11, %v3824_v40, %v7156_v63 }
 0x479   :  { %7379 = vrot.lane.b32.xlu0 %v7378_v11, %s8039_s21  ;;  %v3873_v11 = vsel %vm210_vm0, %v9810_v4, %v7162_v38 }
 0x47f   :  { %v7170_v47 = vpop.permute.xlu0 %7169 }
 0x480   :  { %v7172_v10 = vunpack.i.h.bf16 %v7170_v47  ;;  %v7171_v23 = vunpack.i.l.bf16 %v7170_v47  ;;  %v3856_v47 = vsel %vm2790_vm12, %v3840_v54, %v7166_v3  ;;  %v7180_v34 = vpop.permute.xlu1 %7179 }
 0x481   :  { %v3920_v45 = vpack.c.bf16 %v3857_v55, %v3856_v47  ;;  %v7182_v44 = vunpack.i.h.bf16 %v7180_v34  ;;  %v7181_v3 = vunpack.i.l.bf16 %v7180_v34 }
 0x482   :  { %v3888_v20 = vsel %vm2773_vm11, %v3872_v33, %v7171_v23  ;;  %v3889_v21 = vsel %vm2773_vm11, %v3873_v11, %v7172_v10 }
 0x483   :  { %v7175_v0 = vpop.permute.xlu0 %7174  ;;  %v3827_v47 = vsel %vm210_vm0, %v9812_v36, %v7182_v44  ;;  %v3826_v55 = vsel %vm210_vm0, %v9784_v32, %v7181_v3 }
 0x484   :  { %v7177_v29 = vunpack.i.h.bf16 %v7175_v0  ;;  %v7176_v53 = vunpack.i.l.bf16 %v7175_v0  ;;  %v7185_v59 = vpop.permute.xlu1 %7184 }
 0x485   :  { %v7187_v54 = vunpack.i.h.bf16 %v7185_v59  ;;  %v7186_v43 = vunpack.i.l.bf16 %v7185_v59 }
 0x486   :  { %v3904_v4 = vsel %vm2790_vm12, %v3888_v20, %v7176_v53  ;;  %v3905_v38 = vsel %vm2790_vm12, %v3889_v21, %v7177_v29 }
 0x487   :  { %v3921_v39 = vpack.c.bf16 %v3905_v38, %v3904_v4  ;;  %v7190_v63 = vpop.permute.xlu0 %7189  ;;  %v3842_v20 = vsel %vm2773_vm11, %v3826_v55, %v7186_v43  ;;  %v3843_v21 = vsel %vm2773_vm11, %v3827_v47, %v7187_v54 }
 0x488   :  { %v7195_v40 = vpop.permute.xlu1 %7194  ;;  %v7192_v33 = vunpack.i.h.bf16 %v7190_v63  ;;  %v7191_v10 = vunpack.i.l.bf16 %v7190_v63 }
 0x489   :  { %4151 = vmatprep.mubr.bf16.mxu1 %v3921_v39  ;;  %v7197_v11 = vunpack.i.h.bf16 %v7195_v40  ;;  %v7196_v12 = vunpack.i.l.bf16 %v7195_v40 }
 0x48a   :  { %4152 = vmatmul.mubr.bf16.vlgmr.msra.gmra.mrb[16].mxu1 %v3920_v45  ;;  %v3875_v39 = vsel %vm210_vm0, %v9875_v35, %v7192_v33  ;;  %v3874_v45 = vsel %vm210_vm0, %v9814_v41, %v7191_v10 }
 0x48b   :  { %v3858_v32 = vsel %vm2790_vm12, %v3842_v20, %v7196_v12  ;;  %v3859_v40 = vsel %vm2790_vm12, %v3843_v21, %v7197_v11 }
 0x497   :  { %v7200_v0 = vpop.permute.xlu0 %7199 }
 0x498   :  { %v7210_v23 = vpop.permute.xlu1 %7209  ;;  %v7202_v53 = vunpack.i.h.bf16 %v7200_v0  ;;  %v7201_v29 = vunpack.i.l.bf16 %v7200_v0  ;;  %v3923_v0 = vpack.c.bf16 %v3859_v40, %v3858_v32 }
 0x499   :  { %v7212_v41 = vunpack.i.h.bf16 %v7210_v23  ;;  %v7211_v33 = vunpack.i.l.bf16 %v7210_v23 }
 0x49a   :  { %v3890_v63 = vsel %vm2773_vm11, %v3874_v45, %v7201_v29  ;;  %v3891_v36 = vsel %vm2773_vm11, %v3875_v39, %v7202_v53 }
 0x49b   :  { %v7205_v4 = vpop.permute.xlu0 %7204  ;;  %v3829_v39 = vsel %vm210_vm0, %v9865_v42, %v7212_v41  ;;  %v3828_v45 = vsel %vm210_vm0, %v9828_v50, %v7211_v33 }
 0x49c   :  { %v7215_v38 = vpop.permute.xlu1 %7214  ;;  %v7207_v34 = vunpack.i.h.bf16 %v7205_v4  ;;  %v7206_v59 = vunpack.i.l.bf16 %v7205_v4 }
 0x49d   :  { %v7217_v10 = vunpack.i.h.bf16 %v7215_v38  ;;  %v7216_v29 = vunpack.i.l.bf16 %v7215_v38 }
 0x49e   :  { %v3906_v44 = vsel %vm2790_vm12, %v3890_v63, %v7206_v59  ;;  %v3907_v3 = vsel %vm2790_vm12, %v3891_v36, %v7207_v34 }
 0x49f   :  { %v7220_v54 = vpop.permute.xlu0 %7219  ;;  %v3924_v35 = vpack.c.bf16 %v3907_v3, %v3906_v44  ;;  %v3844_v34 = vsel %vm2773_vm11, %v3828_v45, %v7216_v29  ;;  %v3845_v23 = vsel %vm2773_vm11, %v3829_v39, %v7217_v10 }
 0x4a0   :  { %v7225_v43 = vpop.permute.xlu1 %7224  ;;  %v7222_v55 = vunpack.i.h.bf16 %v7220_v54  ;;  %v7221_v12 = vunpack.i.l.bf16 %v7220_v54 }
 0x4a1   :  { %4159 = vmatprep.mubr.bf16.mxu1 %v3924_v35  ;;  %v7227_v20 = vunpack.i.h.bf16 %v7225_v43  ;;  %v7226_v11 = vunpack.i.l.bf16 %v7225_v43 }
 0x4a2   :  { %4160 = vmatmul.mubr.bf16.gmra.mrb[20].mxu1 %v3923_v0  ;;  %v3877_v63 = vsel %vm210_vm0, %v9919_v28, %v7222_v55  ;;  %v3876_v36 = vsel %vm210_vm0, %v9867_v17, %v7221_v12 }
 0x4a3   :  { %v7230_v47 = vpop.permute.xlu0 %7229  ;;  %v3860_v50 = vsel %vm2790_vm12, %v3844_v34, %v7226_v11  ;;  %v3861_v3 = vsel %vm2790_vm12, %v3845_v23, %v7227_v20 }
 0x4a4   :  { %v7240_v53 = vpop.permute.xlu1 %7239  ;;  %v7232_v21 = vunpack.i.h.bf16 %v7230_v47  ;;  %v7231_v4 = vunpack.i.l.bf16 %v7230_v47  ;;  %v3926_v41 = vpack.c.bf16 %v3861_v3, %v3860_v50 }
 0x4a5   :  { %v7242_v17 = vunpack.i.h.bf16 %v7240_v53  ;;  %v7241_v33 = vunpack.i.l.bf16 %v7240_v53 }
 0x4a6   :  { %v3892_v44 = vsel %vm2773_vm11, %v3876_v36, %v7231_v4  ;;  %v3893_v42 = vsel %vm2773_vm11, %v3877_v63, %v7232_v21 }
 0x4a7   :  { %v7235_v59 = vpop.permute.xlu0 %7234  ;;  %v3831_v45 = vsel %vm210_vm0, %v9912_v6, %v7242_v17  ;;  %v3830_v34 = vsel %vm210_vm0, %v9898_v15, %v7241_v33 }
 0x4a8   :  { %v7245_v38 = vpop.permute.xlu1 %7244  ;;  %v7237_v32 = vunpack.i.h.bf16 %v7235_v59  ;;  %v7236_v40 = vunpack.i.l.bf16 %v7235_v59 }
 0x4a9   :  { %v7247_v10 = vunpack.i.h.bf16 %v7245_v38  ;;  %v7246_v29 = vunpack.i.l.bf16 %v7245_v38 }
 0x4aa   :  { %v3908_v54 = vsel %vm2790_vm12, %v3892_v44, %v7236_v40  ;;  %v3909_v43 = vsel %vm2790_vm12, %v3893_v42, %v7237_v32 }
 0x4ab   :  { %v7250_v35 = vpop.permute.xlu0 %7249  ;;  %v3927_v28 = vpack.c.bf16 %v3909_v43, %v3908_v54  ;;  %v3846_v23 = vsel %vm2773_vm11, %v3830_v34, %v7246_v29  ;;  %v3847_v53 = vsel %vm2773_vm11, %v3831_v45, %v7247_v10 }
 0x4ac   :  { %v7265_v0 = vpop.permute.xlu1 %7264  ;;  %v7252_v12 = vunpack.i.h.bf16 %v7250_v35  ;;  %v7251_v11 = vunpack.i.l.bf16 %v7250_v35 }
 0x4ad   :  { %4167 = vmatprep.mubr.bf16.mxu1 %v3927_v28  ;;  %v7267_v21 = vunpack.i.h.bf16 %v7265_v0  ;;  %v7266_v20 = vunpack.i.l.bf16 %v7265_v0  ;;  %v3304_v28 = vld [vmem:[#allocation2 + $0xf7] sm:$0xff] }
 0x4ae   :  { %4168 = vmatmul.mubr.bf16.gmra.mrb[24].mxu1 %v3926_v41  ;;  %v3879_v38 = vsel %vm210_vm0, %v9938_v27, %v7252_v12  ;;  %v3878_v63 = vsel %vm210_vm0, %v9914_v13, %v7251_v11 }
 0x4af   :  { %v7255_v47 = vpop.permute.xlu0 %7254  ;;  %v3862_v15 = vsel %vm2790_vm12, %v3846_v23, %v7266_v20  ;;  %v3863_v42 = vsel %vm2790_vm12, %v3847_v53, %v7267_v21 }
 0x4b0   :  { %v7270_v55 = vpop.permute.xlu1 %7269  ;;  %v7257_v4 = vunpack.i.h.bf16 %v7255_v47  ;;  %v7256_v39 = vunpack.i.l.bf16 %v7255_v47  ;;  %v3929_v27 = vpack.c.bf16 %v3863_v42, %v3862_v15 }
 0x4b1   :  { %v7272_v35 = vunpack.i.h.bf16 %v7270_v55  ;;  %v7271_v0 = vunpack.i.l.bf16 %v7270_v55 }
 0x4b2   :  { %v3894_v40 = vsel %vm2773_vm11, %v3878_v63, %v7256_v39  ;;  %v3895_v6 = vsel %vm2773_vm11, %v3879_v38, %v7257_v4 }
 0x4b3   :  { %v7260_v59 = vpop.permute.xlu0 %7259  ;;  %v3833_v4 = vsel %vm210_vm0, %v9959_v46, %v7272_v35  ;;  %v3832_v39 = vsel %vm210_vm0, %v3304_v28, %v7271_v0 }
 0x4b4   :  { %v7262_v36 = vunpack.i.h.bf16 %v7260_v59  ;;  %v7261_v32 = vunpack.i.l.bf16 %v7260_v59  ;;  %v7275_v44 = vpop.permute.xlu1 %7274 }
 0x4b5   :  { %v7277_v41 = vunpack.i.h.bf16 %v7275_v44  ;;  %v7276_v17 = vunpack.i.l.bf16 %v7275_v44 }
 0x4b6   :  { %v3910_v50 = vsel %vm2790_vm12, %v3894_v40, %v7261_v32  ;;  %v3911_v3 = vsel %vm2790_vm12, %v3895_v6, %v7262_v36 }
 0x4b7   :  { %v3930_v54 = vpack.c.bf16 %v3911_v3, %v3910_v50  ;;  %v7280_v43 = vpop.permute.xlu0 %7279  ;;  %v3848_v45 = vsel %vm2773_vm11, %v3832_v39, %v7276_v17  ;;  %v3849_v55 = vsel %vm2773_vm11, %v3833_v4, %v7277_v41 }
 0x4b8   :  { %v7285_v13 = vpop.permute.xlu1 %7284  ;;  %v7282_v10 = vunpack.i.h.bf16 %v7280_v43  ;;  %v7281_v29 = vunpack.i.l.bf16 %v7280_v43 }
 0x4b9   :  { %4175 = vmatprep.mubr.bf16.mxu1 %v3930_v54  ;;  %v7287_v12 = vunpack.i.h.bf16 %v7285_v13  ;;  %v7286_v11 = vunpack.i.l.bf16 %v7285_v13 }
 0x4ba   :  { %4176 = vmatmul.mubr.bf16.gmra.mrb[28].mxu1 %v3929_v27  ;;  %v3881_v23 = vsel %vm210_vm0, %v9975_v30, %v7282_v10  ;;  %v3880_v53 = vsel %vm210_vm0, %v9930_v31, %v7281_v29 }
 0x4bb   :  { %v3864_v46 = vsel %vm2790_vm12, %v3848_v45, %v7286_v11  ;;  %v3865_v32 = vsel %vm2790_vm12, %v3849_v55, %v7287_v12 }
 0x4bc   :  { %v3932_v30 = vpack.c.bf16 %v3865_v32, %v3864_v46 }
 0x4bf   :  { %v7290_v33 = vpop.permute.xlu0 %7289 }
 0x4c0   :  { %v7300_v47 = vpop.permute.xlu1 %7299  ;;  %v7292_v21 = vunpack.i.h.bf16 %v7290_v33  ;;  %v7291_v20 = vunpack.i.l.bf16 %v7290_v33 }
 0x4c1   :  { %v7302_v50 = vunpack.i.h.bf16 %v7300_v47  ;;  %v7301_v3 = vunpack.i.l.bf16 %v7300_v47 }
 0x4c2   :  { %v3896_v63 = vsel %vm2773_vm11, %v3880_v53, %v7291_v20  ;;  %v3897_v36 = vsel %vm2773_vm11, %v3881_v23, %v7292_v21 }
 0x4c3   :  { %v7295_v34 = vpop.permute.xlu0 %7294  ;;  %v3835_v10 = vsel %vm210_vm0, %v9968_v48, %v7302_v50  ;;  %v3834_v29 = vsel %vm210_vm0, %v9951_v7, %v7301_v3 }
 0x4c4   :  { %v7297_v59 = vunpack.i.h.bf16 %v7295_v34  ;;  %v7296_v38 = vunpack.i.l.bf16 %v7295_v34  ;;  %v7305_v40 = vpop.permute.xlu1 %7304 }
 0x4c5   :  { %v7307_v54 = vunpack.i.h.bf16 %v7305_v40  ;;  %v7306_v27 = vunpack.i.l.bf16 %v7305_v40 }
 0x4c6   :  { %v3912_v6 = vsel %vm2790_vm12, %v3896_v63, %v7296_v38  ;;  %v3913_v44 = vsel %vm2790_vm12, %v3897_v36, %v7297_v59 }
 0x4c7   :  { %v3933_v15 = vpack.c.bf16 %v3913_v44, %v3912_v6  ;;  %v7310_v31 = vpop.permute.xlu0 %7309  ;;  %v3850_v12 = vsel %vm2773_vm11, %v3834_v29, %v7306_v27  ;;  %v3851_v47 = vsel %vm2773_vm11, %v3835_v10, %v7307_v54 }
 0x4c8   :  { %v7315_v42 = vpop.permute.xlu1 %7314  ;;  %v7312_v13 = vunpack.i.h.bf16 %v7310_v31  ;;  %v7311_v35 = vunpack.i.l.bf16 %v7310_v31 }
 0x4c9   :  { %4183 = vmatprep.mubr.bf16.mxu1 %v3933_v15  ;;  %v7317_v28 = vunpack.i.h.bf16 %v7315_v42  ;;  %v7316_v41 = vunpack.i.l.bf16 %v7315_v42 }
 0x4ca   :  { %4184 = vmatmul.mubr.bf16.gmra.mrb[32].mxu1 %v3932_v30  ;;  %v3883_v21 = vsel %vm210_vm0, %v10018_v58, %v7312_v13  ;;  %v3882_v20 = vsel %vm210_vm0, %v9970_v37, %v7311_v35 }
 0x4cb   :  { %v3866_v7 = vsel %vm2790_vm12, %v3850_v12, %v7316_v41  ;;  %v3867_v34 = vsel %vm2790_vm12, %v3851_v47, %v7317_v28 }
 0x4cc   :  { %v3935_v63 = vpack.c.bf16 %v3867_v34, %v3866_v7 }
 0x4cf   :  { %v7320_v43 = vpop.permute.xlu0 %7319 }
 0x4d0   :  { %v7330_v0 = vpop.permute.xlu1 %7329  ;;  %v7322_v17 = vunpack.i.h.bf16 %v7320_v43  ;;  %v7321_v33 = vunpack.i.l.bf16 %v7320_v43 }
 0x4d1   :  { %v7332_v37 = vunpack.i.h.bf16 %v7330_v0  ;;  %v7331_v36 = vunpack.i.l.bf16 %v7330_v0 }
 0x4d2   :  { %v3898_v55 = vsel %vm2773_vm11, %v3882_v20, %v7321_v33  ;;  %v3899_v48 = vsel %vm2773_vm11, %v3883_v21, %v7322_v17 }
 0x4d3   :  { %v7325_v11 = vpop.permute.xlu0 %7324  ;;  %v3837_v3 = vsel %vm210_vm0, %v10020_v16, %v7332_v37  ;;  %v3836_v54 = vsel %vm210_vm0, %v9993_v25, %v7331_v36 }
 0x4d4   :  { %v7327_v4 = vunpack.i.h.bf16 %v7325_v11  ;;  %v7326_v39 = vunpack.i.l.bf16 %v7325_v11  ;;  %v7335_v45 = vpop.permute.xlu1 %7334 }
 0x4d5   :  { %v7337_v46 = vunpack.i.h.bf16 %v7335_v45  ;;  %v7336_v32 = vunpack.i.l.bf16 %v7335_v45 }
 0x4d6   :  { %v3914_v23 = vsel %vm2790_vm12, %v3898_v55, %v7326_v39  ;;  %v3915_v53 = vsel %vm2790_vm12, %v3899_v48, %v7327_v4 }
 0x4d7   :  { %v7340_v59 = vpop.permute.xlu0 %7339  ;;  %v3936_v58 = vpack.c.bf16 %v3915_v53, %v3914_v23  ;;  %v3852_v27 = vsel %vm2773_vm11, %v3836_v54, %v7336_v32  ;;  %v3853_v43 = vsel %vm2773_vm11, %v3837_v3, %v7337_v46 }
 0x4d8   :  { %v7345_v38 = vpop.permute.xlu1 %7344  ;;  %v7342_v6 = vunpack.i.h.bf16 %v7340_v59  ;;  %v7341_v44 = vunpack.i.l.bf16 %v7340_v59 }
 0x4d9   :  { %4191 = vmatprep.mubr.bf16.mxu1 %v3936_v58  ;;  %v7347_v30 = vunpack.i.h.bf16 %v7345_v38  ;;  %v7346_v31 = vunpack.i.l.bf16 %v7345_v38 }
 0x4da   :  { %4192 = vmatmul.mubr.bf16.gmra.mrb[36].mxu1 %v3935_v63  ;;  %v3885_v35 = vsel %vm210_vm0, %v10054_v14, %v7342_v6  ;;  %v3884_v0 = vsel %vm210_vm0, %v10022_v8, %v7341_v44 }
 0x4db   :  { %v7350_v40 = vpop.permute.xlu0 %7349  ;;  %v3868_v25 = vsel %vm2790_vm12, %v3852_v27, %v7346_v31  ;;  %v3869_v10 = vsel %vm2790_vm12, %v3853_v43, %v7347_v30 }
 0x4dc   :  { %v7360_v15 = vpop.permute.xlu1 %7359  ;;  %v7352_v42 = vunpack.i.h.bf16 %v7350_v40  ;;  %v7351_v50 = vunpack.i.l.bf16 %v7350_v40  ;;  %v3938_v11 = vpack.c.bf16 %v3869_v10, %v3868_v25 }
 0x4dd   :  { %v7362_v8 = vunpack.i.h.bf16 %v7360_v15  ;;  %v7361_v21 = vunpack.i.l.bf16 %v7360_v15 }
 0x4de   :  { %v3900_v33 = vsel %vm2773_vm11, %v3884_v0, %v7351_v50  ;;  %v3901_v16 = vsel %vm2773_vm11, %v3885_v35, %v7352_v42  ;;  %v7670_v35 = vld [vmem:[#allocation18 + $0x80] sm:$0xff]   ;;  %v7671_v0 = vld [vmem:[#allocation18 + $0x88] sm:$0xff]  }
 0x4df   :  { %v7355_v13 = vpop.permute.xlu0 %7354  ;;  %v3839_v59 = vsel %vm210_vm0, %v10044_v19, %v7362_v8  ;;  %v3838_v58 = vsel %vm210_vm0, %v10039_v9, %v7361_v21  ;;  %6152 = vmatprep.subr.bf16.mxu1 %v7670_v35 }
 0x4e0   :  { %v7357_v28 = vunpack.i.h.bf16 %v7355_v13  ;;  %v7356_v41 = vunpack.i.l.bf16 %v7355_v13  ;;  %v7365_v17 = vpop.permute.xlu1 %7364  ;;  %6153 = vmatpush3.bf16.msra.mxu1 %v7670_v35 }
 0x4e1   :  { %v7367_v4 = vunpack.i.h.bf16 %v7365_v17  ;;  %v7366_v39 = vunpack.i.l.bf16 %v7365_v17  ;;  %6154 = vmatprep.subr.bf16.mxu1 %v7671_v0 }
 0x4e2   :  { %v3916_v29 = vsel %vm2790_vm12, %v3900_v33, %v7356_v41  ;;  %v3917_v12 = vsel %vm2790_vm12, %v3901_v16, %v7357_v28 }
 0x4e3   :  { %v7370_v47 = vpop.permute.xlu0 %7369  ;;  %v3939_v14 = vpack.c.bf16 %v3917_v12, %v3916_v29  ;;  %v3854_v38 = vsel %vm2773_vm11, %v3838_v58, %v7366_v39  ;;  %v3855_v63 = vsel %vm2773_vm11, %v3839_v59, %v7367_v4  ;;  %v7675_v59 = vld [vmem:[#allocation18 + $0x8] sm:$0xff]   ;;  %v4361_v58 = vld [vmem:[#allocation2 + $0x8] sm:$0xff] }
 0x4e4   :  { %v7385_v20 = vpop.permute.xlu1 %7384  ;;  %v7372_v55 = vunpack.i.h.bf16 %v7370_v47  ;;  %v7371_v48 = vunpack.i.l.bf16 %v7370_v47  ;;  %6155 = vmatpush3.bf16.msra.mxu1 %v7671_v0  ;;  %v10224_v47 = vld [vmem:[#allocation17] ss:$0 sm:$0xff]  ;;  %v7682_v0 = vld [vmem:[#allocation18 + $0x68] sm:$0xff]  }
 0x4e5   :  { %4199 = vmatprep.mubr.bf16.mxu1 %v3939_v14  ;;  %v7387_v7 = vunpack.i.h.bf16 %v7385_v20  ;;  %v7386_v34 = vunpack.i.l.bf16 %v7385_v20 }
 0x4e6   :  { %4200 = vmatmul.mubr.bf16.gmra.mrb[40].mxu1 %v3938_v11  ;;  %v3887_v36 = vsel %vm210_vm0, %v10065_v61, %v7372_v55  ;;  %v3886_v46 = vsel %vm210_vm0, %v10048_v1, %v7371_v48 }
 0x4e7   :  { %v7375_v45 = vpop.permute.xlu0 %7374  ;;  %v3870_v44 = vsel %vm2790_vm12, %v3854_v38, %v7386_v34  ;;  %v3871_v9 = vsel %vm2790_vm12, %v3855_v63, %v7387_v7  ;;  %v7672_v7 = vld [vmem:[#allocation18 + $0x40] sm:$0xff]  }
 0x4e8   :  { %v7377_v23 = vunpack.i.h.bf16 %v7375_v45  ;;  %v7376_v53 = vunpack.i.l.bf16 %v7375_v45  ;;  %v3941_v42 = vpack.c.bf16 %v3871_v9, %v3870_v44  ;;  %5984 = vmatprep.subr.bf16.mxu0 %v7672_v7  ;;  %v7679_v44 = vld [vmem:[#allocation18 + $0x18] sm:$0xff]   ;;  %v7685_v7 = vld [vmem:[#allocation18 + $0x30] sm:$0xff]  }
 0x4ea   :  { %v3902_v6 = vsel %vm2773_vm11, %v3886_v46, %v7376_v53  ;;  %v3903_v19 = vsel %vm2773_vm11, %v3887_v36, %v7377_v23  ;;  %v7673_v23 = vld [vmem:[#allocation18] sm:$0xff]   ;;  %v7674_v53 = vld [vmem:[#allocation18 + $0x48] sm:$0xff]   ;;  %v7677_v36 = vld [vmem:[#allocation18 + $0x10] sm:$0xff]  }
 0x4eb   :  { %v7380_v37 = vpop.permute.xlu0 %7379  ;;  %5985 = vmatpush3.bf16.msra.mxu0 %v7673_v23  ;;  %v7678_v46 = vld [vmem:[#allocation18 + $0x58] sm:$0xff]  }
 0x4ec   :  { %v7382_v32 = vunpack.i.h.bf16 %v7380_v37  ;;  %v7381_v40 = vunpack.i.l.bf16 %v7380_v37  ;;  %5986 = vmatprep.subr.bf16.mxu0 %v7674_v53  ;;  %v7676_v37 = vld [vmem:[#allocation18 + $0x50] sm:$0xff]   ;;  %v7686_v53 = vld [vmem:[#allocation18 + $0x78] sm:$0xff]  }
 0x4ee   :  { %v3918_v15 = vsel %vm2790_vm12, %v3902_v6, %v7381_v40  ;;  %v3919_v30 = vsel %vm2790_vm12, %v3903_v19, %v7382_v32  ;;  %v4377_v6 = vld [vmem:[#allocation2 + $0x9] sm:$0xff] }
 0x4ef   :  { %v3942_v31 = vpack.c.bf16 %v3919_v30, %v3918_v15  ;;  %5987 = vmatpush3.bf16.msra.mxu0 %v7675_v59  ;;  %v7680_v15 = vld [vmem:[#allocation18 + $0x60] sm:$0xff]  }
 0x4f0   :  { %5988 = vmatprep.subr.bf16.mxu0 %v7676_v37 }
 0x4f1   :  { %4207 = vmatprep.mubr.bf16.mxu1 %v3942_v31 }
 0x4f2   :  { %4208 = vmatmul.mubr.bf16.gmra.mrb[44].mxu1 %v3941_v42 }
 0x4f3   :  { %5989 = vmatpush3.bf16.msra.mxu0 %v7677_v36 }
 0x4f4   :  { %5990 = vmatprep.subr.bf16.mxu0 %v7678_v46 }
 0x4f7   :  { %v10196_v61 = vpop.f32.mrb[48].mxu0  ;;  %5991 = vmatpush3.bf16.msra.mxu0 %v7679_v44 }
 0x4f8   :  { %v4250_v1 = vpop.f32.mrb[49].mxu0  ;;  %5992 = vmatprep.subr.bf16.mxu0 %v7680_v15 }
 0x4f9   :  { %v10198_v50 = vpop.f32.mrb[50].mxu0 }
 0x4fa   :  { %v4253_v3 = vpop.f32.mrb[51].mxu0 }
 0x501   :  { %v10200_v54 = vpop.f32.mrb[52].mxu0 }
 0x502   :  { %v10202_v27 = vpop.f32.mrb[53].mxu0 }
 0x503   :  { %v10204_v43 = vpop.f32.mrb[54].mxu0 }
 0x504   :  { %v10206_v13 = vpop.f32.mrb[55].mxu0 }
 0x52f   :  { %v10208_v28 = vpop.f32.mrb[56].mxu0 }
 0x530   :  { %v10210_v41 = vpop.f32.mrb[57].mxu0 }
 0x531   :  { %v10212_v17 = vpop.f32.mrb[58].mxu0 }
 0x532   :  { %v10214_v33 = vpop.f32.mrb[59].mxu0 }
 0x539   :  { %v10216_v16 = vpop.f32.mrb[60].mxu0 }
 0x53a   :  { %v10218_v25 = vpop.f32.mrb[61].mxu0 }
 0x53b   :  { %v10220_v10 = vpop.f32.mrb[62].mxu0 }
 0x53c   :  { %v10222_v29 = vpop.f32.mrb[63].mxu0 }
 0x55d   :  { %v5926_v12 = vpop.f32.mrb[16].mxu1 }
 0x55e   :  { %v5927_v14 = vpop.f32.mrb[17].mxu1 }
 0x55f   :  { %v5928_v11 = vadd.f32 %v5927_v14, %v5926_v12  ;;  %v5929_v8 = vpop.f32.mrb[18].mxu1 }
 0x560   :  { %v5930_v21 = vpop.f32.mrb[19].mxu1 }
 0x561   :  { %v4154_v20 = vadd.f32 %v5928_v11, %v10224_v47  ;;  %v5931_v4 = vadd.f32 %v5930_v21, %v5929_v8 }
 0x563   :  { %v4251_v39 = vadd.f32 %v4250_v1, %v4154_v20  ;;  %v4157_v45 = vadd.f32 %v5931_v4, %v10224_v47  ;;  %v7681_v1 = vld [vmem:[#allocation18 + $0x20] sm:$0xff]   ;;  %v7683_v20 = vld [vmem:[#allocation18 + $0x28] sm:$0xff]  }
 0x564   :  { %5993 = vmatpush3.bf16.msra.mxu0 %v7681_v1 }
 0x565   :  { %v4313_v55 = vmax.f32 %v4251_v39, 0.0  ;;  %v4254_v48 = vadd.f32 %v4253_v3, %v4157_v45  ;;  %5994 = vmatprep.subr.bf16.mxu0 %v7682_v0 }
 0x567   :  { %4329 = vst.msk [vmem:[#allocation2 + $0x20] sm:$0xff] %vm210_vm0, %v4313_v55  ;;  %v4314_v34 = vmax.f32 %v4254_v48, 0.0  ;;  %v7684_v48 = vld [vmem:[#allocation18 + $0x70] sm:$0xff]  }
 0x568   :  { %5995 = vmatpush3.bf16.msra.mxu0 %v7683_v20 }
 0x569   :  { %4330 = vst.msk [vmem:[#allocation2 + $0x38] sm:$0xff] %vm210_vm0, %v4314_v34  ;;  %5996 = vmatprep.subr.bf16.mxu0 %v7684_v48 }
 0x56c   :  { %5997 = vmatpush3.bf16.msra.mxu0 %v7685_v7 }
 0x56d   :  { %5998 = vmatprep.subr.bf16.mxu0 %v7686_v53 }
 0x56e   :  { %v10230_v38 = vld [vmem:[#allocation2 + $0x20] sm:$0xff] }
 0x56f   :  { %v7388_v63 = vpack.i.bf16 %v10230_v38, %v4361_v58  ;;  %v4425_v32 = vld [vmem:[#allocation2 + $0x21] sm:$0xff] }
 0x570   :  { %v10233_v40 = vld [vmem:[#allocation2 + $0x39] sm:$0xff]  ;;  %v7393_v9 = vpack.i.bf16 %v4425_v32, %v4377_v6  ;;  %v7687_v58 = vld [vmem:[#allocation18 + $0x38] sm:$0xff]  }
 0x571   :  { %7389 = vrot.lane.b32.xlu1 %v7388_v63, %s8038_s24  ;;  %v7398_v19 = vpack.i.bf16 %v10233_v40, %v4425_v32  ;;  %v10238_v30 = vld [vmem:[#allocation2 + $0x37] sm:$0xff]  ;;  %v10241_v42 = vld [vmem:[#allocation2 + $0x1f] sm:$0xff]  ;;  %5999 = vmatpush3.bf16.msra.mxu0 %v7687_v58 }
 0x572   :  { %v7403_v35 = vpack.i.bf16 %v10238_v30, %v10241_v42 }
 0x573   :  { %7399 = vrot.lane.b32.xlu0 %v7398_v19, %s8038_s24 }
 0x575   :  { %7394 = vrot.lane.b32.xlu1 %v7393_v9, %s8016_s18  ;;  %v5932_v31 = vpop.f32.mrb[20].mxu1 }
 0x576   :  { %v5933_v3 = vpop.f32.mrb[21].mxu1 }
 0x577   :  { %v5934_v12 = vadd.f32 %v5933_v3, %v5932_v31  ;;  %v5935_v14 = vpop.f32.mrb[22].mxu1  ;;  %v10262_v31 = vld [vmem:[#allocation2 + $0x38] sm:$0xff] }
 0x578   :  { %v5936_v11 = vpop.f32.mrb[23].mxu1 }
 0x579   :  { %7404 = vrot.lane.b32.xlu1 %v7403_v35, %s8039_s21  ;;  %v4162_v8 = vadd.f32 %v5934_v12, %v10224_v47  ;;  %v5937_v21 = vadd.f32 %v5936_v11, %v5935_v14 }
 0x57b   :  { %v4259_v4 = vadd.f32 %v10196_v61, %v4162_v8  ;;  %v4165_v39 = vadd.f32 %v5937_v21, %v10224_v47 }
 0x57d   :  { %v4315_v45 = vmax.f32 %v4259_v4, 0.0  ;;  %v4262_v55 = vadd.f32 %v10198_v50, %v4165_v39 }
 0x57f   :  { %4331 = vst.msk [vmem:[#allocation2 + $0x50] sm:$0xff] %vm210_vm0, %v4315_v45  ;;  %v4316_v34 = vmax.f32 %v4262_v55, 0.0 }
 0x581   :  { %4332 = vst.msk [vmem:[#allocation2 + $0x68] sm:$0xff] %vm210_vm0, %v4316_v34  ;;  %v5938_v23 = vpop.f32.mrb[24].mxu1 }
 0x582   :  { %v5939_v59 = vpop.f32.mrb[25].mxu1 }
 0x583   :  { %v5940_v61 = vadd.f32 %v5939_v59, %v5938_v23  ;;  %v5941_v63 = vpop.f32.mrb[26].mxu1 }
 0x584   :  { %v5942_v37 = vpop.f32.mrb[27].mxu1 }
 0x585   :  { %v4170_v50 = vadd.f32 %v5940_v61, %v10224_v47  ;;  %v5943_v36 = vadd.f32 %v5942_v37, %v5941_v63 }
 0x586   :  { %v4474_v46 = vld [vmem:[#allocation2 + $0x51] sm:$0xff] }
 0x587   :  { %v10253_v32 = vld [vmem:[#allocation2 + $0x4f] sm:$0xff]  ;;  %v4267_v19 = vadd.f32 %v10202_v27, %v4170_v50  ;;  %v4173_v44 = vadd.f32 %v5943_v36, %v10224_v47  ;;  %v4971_v9 = vpack.c.bf16 %v4474_v46, %v10233_v40  ;;  %v7423_v0 = vpack.i.bf16 %v4474_v46, %v10233_v40 }
 0x588   :  { %v10255_v6 = vld [vmem:[#allocation2 + $0x50] sm:$0xff]  ;;  %v7408_v15 = vpack.i.bf16 %v10253_v32, %v10238_v30  ;;  %v10274_v11 = vld [vmem:[#allocation2 + $0x67] sm:$0xff] }
 0x589   :  { %v7418_v1 = vpack.i.bf16 %v10255_v6, %v10262_v31  ;;  %v4317_v3 = vmax.f32 %v4267_v19, 0.0  ;;  %v4270_v35 = vadd.f32 %v10206_v13, %v4173_v44  ;;  %6156 = vmatprep.mubr.msk.bf16.mxu1 %vm210_vm0, %v4971_v9  ;;  %v4428_v12 = vld [vmem:[#allocation2 + $0x69] sm:$0xff]  ;;  %v7433_v39 = vpack.i.bf16 %v10274_v11, %v10253_v32 }
 0x58a   :  { %7409 = vrot.lane.b32.xlu0 %v7408_v15, %s8016_s18  ;;  %v7428_v20 = vpack.i.bf16 %v4428_v12, %v4474_v46  ;;  %v10290_v58 = vld [vmem:[#allocation2 + $0x68] sm:$0xff] }
 0x58b   :  { %7419 = vrot.lane.b32.xlu1 %v7418_v1, %s8038_s24  ;;  %4333 = vst.msk [vmem:[#allocation2 + $0x80] sm:$0xff] %vm210_vm0, %v4317_v3  ;;  %v4318_v27 = vmax.f32 %v4270_v35, 0.0 }
 0x58d   :  { %4334 = vst.msk [vmem:[#allocation2 + $0x98] sm:$0xff] %vm210_vm0, %v4318_v27  ;;  %v5944_v14 = vpop.f32.mrb[28].mxu1 }
 0x58e   :  { %7414 = vrot.lane.b32.xlu0 %v7418_v1, %s8039_s21  ;;  %v5945_v13 = vpop.f32.mrb[29].mxu1  ;;  %v4480_v1 = vld [vmem:[#allocation2 + $0xe1] sm:$0xff] }
 0x58f   :  { %7424 = vrot.lane.b32.xlu1 %v7423_v0, %s8016_s18  ;;  %v5946_v8 = vadd.f32 %v5945_v13, %v5944_v14  ;;  %v5947_v21 = vpop.f32.mrb[30].mxu1 }
 0x590   :  { %v5948_v4 = vpop.f32.mrb[31].mxu1 }
 0x591   :  { %v4178_v40 = vadd.f32 %v5946_v8, %v10224_v47  ;;  %v5949_v45 = vadd.f32 %v5948_v4, %v5947_v21 }
 0x592   :  { %7429 = vrot.lane.b32.xlu0 %v7428_v20, %s8038_s24  ;;  %v4476_v55 = vld [vmem:[#allocation2 + $0x81] sm:$0xff] }
 0x593   :  { %7434 = vrot.lane.b32.xlu1 %v7433_v39, %s8039_s21  ;;  %v10282_v48 = vld [vmem:[#allocation2 + $0x7f] sm:$0xff]  ;;  %v4275_v34 = vadd.f32 %v10200_v54, %v4178_v40  ;;  %v4181_v23 = vadd.f32 %v5949_v45, %v10224_v47  ;;  %v4974_v53 = vpack.c.bf16 %v4476_v55, %v4428_v12  ;;  %v7453_v50 = vpack.i.bf16 %v4476_v55, %v4428_v12 }
 0x594   :  { %v10284_v7 = vld [vmem:[#allocation2 + $0x80] sm:$0xff]  ;;  %v7438_v59 = vpack.i.bf16 %v10282_v48, %v10274_v11  ;;  %v10301_v46 = vld [vmem:[#allocation2 + $0x97] sm:$0xff] }
 0x595   :  { %v7448_v61 = vpack.i.bf16 %v10284_v7, %v10290_v58  ;;  %v4319_v63 = vmax.f32 %v4275_v34, 0.0  ;;  %v4278_v37 = vadd.f32 %v10204_v43, %v4181_v23  ;;  %6157 = vmatmul.mubr.msk.bf16.vlgmr.msra.gmra.mrb[48].mxu1 %vm210_vm0, %v4974_v53  ;;  %v4430_v36 = vld [vmem:[#allocation2 + $0x99] sm:$0xff]  ;;  %v7463_v44 = vpack.i.bf16 %v10301_v46, %v10282_v48 }
 0x596   :  { %7439 = vrot.lane.b32.xlu0 %v7438_v59, %s8016_s18  ;;  %v7458_v43 = vpack.i.bf16 %v4430_v36, %v4476_v55  ;;  %v10307_v15 = vld [vmem:[#allocation2 + $0x98] sm:$0xff] }
 0x597   :  { %7449 = vrot.lane.b32.xlu1 %v7448_v61, %s8038_s24  ;;  %4335 = vst.msk [vmem:[#allocation2 + $0xb0] sm:$0xff] %vm210_vm0, %v4319_v63  ;;  %v4320_v54 = vmax.f32 %v4278_v37, 0.0  ;;  %v4448_v37 = vld [vmem:[#allocation2 + $0xdf] sm:$0xff] }
 0x599   :  { %4336 = vst.msk [vmem:[#allocation2 + $0xc8] sm:$0xff] %vm210_vm0, %v4320_v54  ;;  %v4369_v54 = vld [vmem:[#allocation2 + $0xf8] sm:$0xff] }
 0x59a   :  { %7444 = vrot.lane.b32.xlu0 %v7448_v61, %s8039_s21 }
 0x59b   :  { %7454 = vrot.lane.b32.xlu1 %v7453_v50, %s8016_s18 }
 0x59d   :  { %v5950_v19 = vpop.f32.mrb[32].mxu1 }
 0x59e   :  { %7459 = vrot.lane.b32.xlu0 %v7458_v43, %s8038_s24  ;;  %v5951_v9 = vpop.f32.mrb[33].mxu1  ;;  %v4478_v27 = vld [vmem:[#allocation2 + $0xb1] sm:$0xff]  ;;  %v4464_v43 = vld [vmem:[#allocation2 + $0xe0] sm:$0xff] }
 0x59f   :  { %7464 = vrot.lane.b32.xlu1 %v7463_v44, %s8039_s21  ;;  %v5952_v3 = vadd.f32 %v5951_v9, %v5950_v19  ;;  %v5953_v35 = vpop.f32.mrb[34].mxu1  ;;  %v10310_v0 = vld [vmem:[#allocation2 + $0xaf] sm:$0xff]  ;;  %v4977_v13 = vpack.c.bf16 %v4478_v27, %v4430_v36  ;;  %v7483_v53 = vpack.i.bf16 %v4478_v27, %v4430_v36 }
 0x5a0   :  { %v10312_v12 = vld [vmem:[#allocation2 + $0xb0] sm:$0xff]  ;;  %v5954_v14 = vpop.f32.mrb[35].mxu1  ;;  %v7468_v8 = vpack.i.bf16 %v10310_v0, %v10301_v46  ;;  %v4400_v59 = vld [vmem:[#allocation2 + $0xc7] sm:$0xff] }
 0x5a1   :  { %v7478_v21 = vpack.i.bf16 %v10312_v12, %v10307_v15  ;;  %v4186_v20 = vadd.f32 %v5952_v3, %v10224_v47  ;;  %v5955_v4 = vadd.f32 %v5954_v14, %v5953_v35  ;;  %v4479_v39 = vld [vmem:[#allocation2 + $0xc9] sm:$0xff]  ;;  %6160 = vmatprep.mubr.msk.bf16.mxu1 %vm210_vm0, %v4977_v13  ;;  %v4385_v13 = vld [vmem:[#allocation2 + $0xf9] sm:$0xff] }
 0x5a2   :  { %7469 = vrot.lane.b32.xlu0 %v7468_v8, %s8016_s18  ;;  %v4980_v40 = vpack.c.bf16 %v4480_v1, %v4479_v39  ;;  %v7488_v63 = vpack.i.bf16 %v4479_v39, %v4478_v27  ;;  %v10333_v36 = vld [vmem:[#allocation2 + $0xc8] sm:$0xff] }
 0x5a3   :  { %v4283_v45 = vadd.f32 %v10210_v41, %v4186_v20  ;;  %v4189_v55 = vadd.f32 %v5955_v4, %v10224_v47  ;;  %7479 = vrot.lane.b32.xlu1 %v7478_v21, %s8038_s24  ;;  %v7503_v41 = vpack.i.bf16 %v4400_v59, %v10310_v0  ;;  %v7498_v27 = vpack.i.bf16 %v4464_v43, %v10333_v36 }
 0x5a4   :  { %6161 = vmatmul.mubr.msk.bf16.gmra.mrb[52].mxu1 %vm210_vm0, %v4980_v40 }
 0x5a5   :  { %v4321_v34 = vmax.f32 %v4283_v45, 0.0  ;;  %v4286_v23 = vadd.f32 %v10214_v33, %v4189_v55  ;;  %v7493_v33 = vpack.i.bf16 %v4448_v37, %v4400_v59 }
 0x5a6   :  { %7474 = vrot.lane.b32.xlu0 %v7478_v21, %s8039_s21 }
 0x5a7   :  { %4337 = vst.msk [vmem:[#allocation2 + $0x110] sm:$0xff] %vm210_vm0, %v4321_v34  ;;  %v4322_v61 = vmax.f32 %v4286_v23, 0.0  ;;  %7484 = vrot.lane.b32.xlu1 %v7483_v53, %s8016_s18 }
 0x5a9   :  { %4338 = vst.msk [vmem:[#allocation2 + $0x128] sm:$0xff] %vm210_vm0, %v4322_v61 }
 0x5aa   :  { %7489 = vrot.lane.b32.xlu0 %v7488_v63, %s8038_s24 }
 0x5ab   :  { %7504 = vrot.lane.b32.xlu1 %v7503_v41, %s8039_s21 }
 0x5ad   :  { %v5956_v50 = vpop.f32.mrb[36].mxu1 }
 0x5ae   :  { %7494 = vrot.lane.b32.xlu0 %v7493_v33, %s8016_s18  ;;  %v5957_v19 = vpop.f32.mrb[37].mxu1  ;;  %v10336_v44 = vld [vmem:[#allocation2 + $0x110] sm:$0xff] }
 0x5af   :  { %v5958_v9 = vadd.f32 %v5957_v19, %v5956_v50  ;;  %v5959_v1 = vpop.f32.mrb[38].mxu1  ;;  %v7508_v3 = vpack.i.bf16 %v10336_v44, %v4369_v54  ;;  %v4433_v14 = vld [vmem:[#allocation2 + $0x111] sm:$0xff] }
 0x5b0   :  { %v5960_v35 = vpop.f32.mrb[39].mxu1  ;;  %v4434_v20 = vld [vmem:[#allocation2 + $0x129] sm:$0xff]  ;;  %v7513_v40 = vpack.i.bf16 %v4433_v14, %v4385_v13 }
 0x5b1   :  { %v4194_v8 = vadd.f32 %v5958_v9, %v10224_v47  ;;  %v5961_v21 = vadd.f32 %v5960_v35, %v5959_v1  ;;  %7509 = vrot.lane.b32.xlu1 %v7508_v3, %s8038_s24  ;;  %v7518_v45 = vpack.i.bf16 %v4434_v20, %v4433_v14  ;;  %v10345_v55 = vld [vmem:[#allocation2 + $0x127] sm:$0xff]  ;;  %v10350_v53 = vld [vmem:[#allocation2 + $0x10f] sm:$0xff] }
 0x5b2   :  { %7499 = vrot.lane.b32.xlu0 %v7498_v27, %s8039_s21  ;;  %v10366_v27 = vld [vmem:[#allocation2 + $0x128] sm:$0xff] }
 0x5b3   :  { %v4291_v4 = vadd.f32 %v10208_v28, %v4194_v8  ;;  %v4197_v39 = vadd.f32 %v5961_v21, %v10224_v47  ;;  %v7523_v28 = vpack.i.bf16 %v10345_v55, %v10350_v53 }
 0x5b5   :  { %v4323_v34 = vmax.f32 %v4291_v4, 0.0  ;;  %v4294_v23 = vadd.f32 %v10212_v17, %v4197_v39  ;;  %7514 = vrot.lane.b32.xlu1 %v7513_v40, %s8016_s18 }
 0x5b6   :  { %7519 = vrot.lane.b32.xlu0 %v7518_v45, %s8038_s24 }
 0x5b7   :  { %4339 = vst.msk [vmem:[#allocation2 + $0x140] sm:$0xff] %vm210_vm0, %v4323_v34  ;;  %v4324_v59 = vmax.f32 %v4294_v23, 0.0 }
 0x5b9   :  { %4340 = vst.msk [vmem:[#allocation2 + $0x158] sm:$0xff] %vm210_vm0, %v4324_v59  ;;  %v5962_v61 = vpop.f32.mrb[40].mxu1  ;;  %7524 = vrot.lane.b32.xlu1 %v7523_v28, %s8039_s21 }
 0x5ba   :  { %v5963_v63 = vpop.f32.mrb[41].mxu1 }
 0x5bb   :  { %v5964_v41 = vadd.f32 %v5963_v63, %v5962_v61  ;;  %v5965_v17 = vpop.f32.mrb[42].mxu1 }
 0x5bc   :  { %v5966_v37 = vpop.f32.mrb[43].mxu1 }
 0x5bd   :  { %v4202_v33 = vadd.f32 %v5964_v41, %v10224_v47  ;;  %v5967_v54 = vadd.f32 %v5966_v37, %v5965_v17 }
 0x5be   :  { %v4482_v50 = vld [vmem:[#allocation2 + $0x141] sm:$0xff] }
 0x5bf   :  { %v10358_v43 = vld [vmem:[#allocation2 + $0x13f] sm:$0xff]  ;;  %v4299_v9 = vadd.f32 %v10218_v25, %v4202_v33  ;;  %v4205_v1 = vadd.f32 %v5967_v54, %v10224_v47  ;;  %v4983_v3 = vpack.c.bf16 %v4482_v50, %v4434_v20  ;;  %v7543_v21 = vpack.i.bf16 %v4482_v50, %v4434_v20 }
 0x5c0   :  { %v10360_v19 = vld [vmem:[#allocation2 + $0x140] sm:$0xff]  ;;  %v7528_v35 = vpack.i.bf16 %v10358_v43, %v10345_v55  ;;  %v10377_v40 = vld [vmem:[#allocation2 + $0x157] sm:$0xff] }
 0x5c1   :  { %v7538_v14 = vpack.i.bf16 %v10360_v19, %v10366_v27  ;;  %v4325_v13 = vmax.f32 %v4299_v9, 0.0  ;;  %v4302_v8 = vadd.f32 %v10222_v29, %v4205_v1  ;;  %6164 = vmatprep.mubr.msk.bf16.mxu1 %vm210_vm0, %v4983_v3  ;;  %v4436_v4 = vld [vmem:[#allocation2 + $0x159] sm:$0xff]  ;;  %v7553_v28 = vpack.i.bf16 %v10377_v40, %v10358_v43 }
 0x5c2   :  { %7529 = vrot.lane.b32.xlu0 %v7528_v35, %s8016_s18  ;;  %v7548_v23 = vpack.i.bf16 %v4436_v4, %v4482_v50  ;;  %v10393_v9 = vld [vmem:[#allocation2 + $0x158] sm:$0xff] }
 0x5c3   :  { %7539 = vrot.lane.b32.xlu1 %v7538_v14, %s8038_s24  ;;  %4341 = vst.msk [vmem:[#allocation2 + $0x170] sm:$0xff] %vm210_vm0, %v4325_v13  ;;  %v4326_v25 = vmax.f32 %v4302_v8, 0.0 }
 0x5c5   :  { %4342 = vst.msk [vmem:[#allocation2 + $0x188] sm:$0xff] %vm210_vm0, %v4326_v25  ;;  %v5968_v39 = vpop.f32.mrb[44].mxu1 }
 0x5c6   :  { %7534 = vrot.lane.b32.xlu0 %v7538_v14, %s8039_s21  ;;  %v5969_v29 = vpop.f32.mrb[45].mxu1 }
 0x5c7   :  { %7544 = vrot.lane.b32.xlu1 %v7543_v21, %s8016_s18  ;;  %v5970_v45 = vadd.f32 %v5969_v29, %v5968_v39  ;;  %v5971_v34 = vpop.f32.mrb[46].mxu1  ;;  %v4488_v21 = vld [vmem:[#allocation2 + $0x1d1] sm:$0xff] }
 0x5c8   :  { %v5972_v59 = vpop.f32.mrb[47].mxu1 }
 0x5c9   :  { %v4210_v20 = vadd.f32 %v5970_v45, %v10224_v47  ;;  %v5973_v61 = vadd.f32 %v5972_v59, %v5971_v34 }
 0x5ca   :  { %7549 = vrot.lane.b32.xlu0 %v7548_v23, %s8038_s24  ;;  %v4484_v63 = vld [vmem:[#allocation2 + $0x171] sm:$0xff] }
 0x5cb   :  { %7554 = vrot.lane.b32.xlu1 %v7553_v28, %s8039_s21  ;;  %v10385_v41 = vld [vmem:[#allocation2 + $0x16f] sm:$0xff]  ;;  %v4307_v37 = vadd.f32 %v10216_v16, %v4210_v20  ;;  %v4213_v33 = vadd.f32 %v5973_v61, %v10224_v47  ;;  %v4986_v54 = vpack.c.bf16 %v4484_v63, %v4436_v4  ;;  %v7573_v47 = vpack.i.bf16 %v4484_v63, %v4436_v4 }
 0x5cc   :  { %v10387_v17 = vld [vmem:[#allocation2 + $0x170] sm:$0xff]  ;;  %v7558_v50 = vpack.i.bf16 %v10385_v41, %v10377_v40  ;;  %v10404_v13 = vld [vmem:[#allocation2 + $0x187] sm:$0xff] }
 0x5cd   :  { %v7568_v1 = vpack.i.bf16 %v10387_v17, %v10393_v9  ;;  %v4327_v3 = vmax.f32 %v4307_v37, 0.0  ;;  %v4310_v35 = vadd.f32 %v10220_v10, %v4213_v33  ;;  %6165 = vmatmul.mubr.msk.bf16.gmra.mrb[56].mxu1 %vm210_vm0, %v4986_v54  ;;  %v4438_v14 = vld [vmem:[#allocation2 + $0x189] sm:$0xff]  ;;  %v7583_v8 = vpack.i.bf16 %v10404_v13, %v10385_v41 }
 0x5ce   :  { %7559 = vrot.lane.b32.xlu0 %v7558_v50, %s8016_s18  ;;  %v7578_v10 = vpack.i.bf16 %v4438_v14, %v4484_v63  ;;  %v10410_v25 = vld [vmem:[#allocation2 + $0x188] sm:$0xff] }
 0x5cf   :  { %7569 = vrot.lane.b32.xlu1 %v7568_v1, %s8038_s24  ;;  %4343 = vst.msk [vmem:[#allocation2 + $0x1a0] sm:$0xff] %vm210_vm0, %v4327_v3  ;;  %v4328_v16 = vmax.f32 %v4310_v35, 0.0  ;;  %v4456_v33 = vld [vmem:[#allocation2 + $0x1cf] sm:$0xff] }
 0x5d1   :  { %4344 = vst.msk [vmem:[#allocation2 + $0x1b8] sm:$0xff] %vm210_vm0, %v4328_v16 }
 0x5d2   :  { %7564 = vrot.lane.b32.xlu0 %v7568_v1, %s8039_s21  ;;  %v4472_v1 = vld [vmem:[#allocation2 + $0x1d0] sm:$0xff] }
 0x5d3   :  { %7574 = vrot.lane.b32.xlu1 %v7573_v47, %s8016_s18 }
 0x5d6   :  { %7579 = vrot.lane.b32.xlu0 %v7578_v10, %s8038_s24  ;;  %v4486_v4 = vld [vmem:[#allocation2 + $0x1a1] sm:$0xff] }
 0x5d7   :  { %7584 = vrot.lane.b32.xlu1 %v7583_v8, %s8039_s21  ;;  %v10413_v39 = vld [vmem:[#allocation2 + $0x19f] sm:$0xff]  ;;  %v4989_v45 = vpack.c.bf16 %v4486_v4, %v4438_v14  ;;  %v7603_v20 = vpack.i.bf16 %v4486_v4, %v4438_v14 }
 0x5d8   :  { %v10415_v29 = vld [vmem:[#allocation2 + $0x1a0] sm:$0xff]  ;;  %v7588_v34 = vpack.i.bf16 %v10413_v39, %v10404_v13  ;;  %v4408_v61 = vld [vmem:[#allocation2 + $0x1b7] sm:$0xff] }
 0x5d9   :  { %v7598_v23 = vpack.i.bf16 %v10415_v29, %v10410_v25  ;;  %v4487_v59 = vld [vmem:[#allocation2 + $0x1b9] sm:$0xff]  ;;  %6168 = vmatprep.mubr.msk.bf16.mxu1 %vm210_vm0, %v4989_v45  ;;  %v7623_v37 = vpack.i.bf16 %v4408_v61, %v10413_v39  ;;  %v7613_v54 = vpack.i.bf16 %v4456_v33, %v4408_v61 }
 0x5da   :  { %7589 = vrot.lane.b32.xlu0 %v7588_v34, %s8016_s18  ;;  %v4992_v28 = vpack.c.bf16 %v4488_v21, %v4487_v59  ;;  %v7608_v63 = vpack.i.bf16 %v4487_v59, %v4486_v4  ;;  %v10430_v50 = vld [vmem:[#allocation2 + $0x1b8] sm:$0xff]  ;;  %v4345_v34 = vld [vmem:[#allocation2 + $0x7] sm:$0xff] }
 0x5db   :  { %7599 = vrot.lane.b32.xlu1 %v7598_v23, %s8038_s24  ;;  %v7618_v3 = vpack.i.bf16 %v4472_v1, %v10430_v50 }
 0x5dc   :  { %6169 = vmatmul.mubr.msk.bf16.gmra.mrb[60].mxu1 %vm210_vm0, %v4992_v28 }
 0x5de   :  { %7594 = vrot.lane.b32.xlu0 %v7598_v23, %s8039_s21 }
 0x5df   :  { %7604 = vrot.lane.b32.xlu1 %v7603_v20, %s8016_s18 }
 0x5e2   :  { %7609 = vrot.lane.b32.xlu0 %v7608_v63, %s8038_s24 }
 0x5e3   :  { %7624 = vrot.lane.b32.xlu1 %v7623_v37, %s8039_s21  ;;  %v7390_v35 = vpop.permute.xlu1 %7389 }
 0x5e4   :  { %v7392_v10 = vunpack.i.h.bf16 %v7390_v35  ;;  %v7391_v8 = vunpack.i.l.bf16 %v7390_v35 }
 0x5e5   :  { %v7400_v47 = vpop.permute.xlu0 %7399 }
 0x5e6   :  { %7614 = vrot.lane.b32.xlu0 %v7613_v54, %s8016_s18  ;;  %v7402_v21 = vunpack.i.h.bf16 %v7400_v47  ;;  %v7401_v4 = vunpack.i.l.bf16 %v7400_v47  ;;  %v4873_v33 = vsel %vm210_vm0, %v4345_v34, %v7391_v8  ;;  %v4874_v54 = vsel %vm210_vm0, %v10241_v42, %v7392_v10 }
 0x5e7   :  { %v7395_v16 = vpop.permute.xlu1 %7394 }
 0x5e8   :  { %v7397_v23 = vunpack.i.h.bf16 %v7395_v16  ;;  %v7396_v59 = vunpack.i.l.bf16 %v7395_v16  ;;  %v4922_v1 = vsel %vm210_vm0, %v10262_v31, %v7402_v21 }
 0x5ea   :  { %7619 = vrot.lane.b32.xlu0 %v7618_v3, %s8039_s21  ;;  %v4921_v3 = vsel %vm210_vm0, %v10230_v38, %v7401_v4  ;;  %v4889_v47 = vsel %vm2773_vm11, %v4873_v33, %v7396_v59  ;;  %v4890_v16 = vsel %vm2773_vm11, %v4874_v54, %v7397_v23 }
 0x5eb   :  { %v7405_v14 = vpop.permute.xlu1 %7404 }
 0x5ec   :  { %v7407_v20 = vunpack.i.h.bf16 %v7405_v14  ;;  %v7406_v61 = vunpack.i.l.bf16 %v7405_v14 }
 0x5ee   :  { %v4906_v8 = vsel %vm2790_vm12, %v4890_v16, %v7407_v20 }
 0x5fc   :  { %v7410_v45 = vpop.permute.xlu0 %7409 }
 0x5fd   :  { %v7420_v28 = vpop.permute.xlu1 %7419  ;;  %v7412_v63 = vunpack.i.h.bf16 %v7410_v45  ;;  %v7411_v37 = vunpack.i.l.bf16 %v7410_v45  ;;  %v4905_v45 = vsel %vm2790_vm12, %v4889_v47, %v7406_v61 }
 0x5fe   :  { %v4969_v34 = vpack.c.bf16 %v4906_v8, %v4905_v45  ;;  %v7422_v23 = vunpack.i.h.bf16 %v7420_v28  ;;  %v7421_v33 = vunpack.i.l.bf16 %v7420_v28 }
 0x5ff   :  { %v4937_v42 = vsel %vm2773_vm11, %v4921_v3, %v7411_v37  ;;  %v4938_v10 = vsel %vm2773_vm11, %v4922_v1, %v7412_v63 }
 0x600   :  { %v7415_v35 = vpop.permute.xlu0 %7414 }
 0x601   :  { %v7417_v52 = vunpack.i.h.bf16 %v7415_v35  ;;  %v7416_v14 = vunpack.i.l.bf16 %v7415_v35  ;;  %v7425_v49 = vpop.permute.xlu1 %7424 }
 0x602   :  { %v7427_v54 = vunpack.i.h.bf16 %v7425_v49  ;;  %v7426_v61 = vunpack.i.l.bf16 %v7425_v49 }
 0x603   :  { %v4953_v31 = vsel %vm2790_vm12, %v4937_v42, %v7416_v14  ;;  %v4954_v38 = vsel %vm2790_vm12, %v4938_v10, %v7417_v52  ;;  %v4876_v52 = vsel %vm210_vm0, %v10253_v32, %v7422_v23  ;;  %v4875_v14 = vsel %vm210_vm0, %v10238_v30, %v7421_v33 }
 0x604   :  { %v7430_v21 = vpop.permute.xlu0 %7429  ;;  %v4970_v4 = vpack.c.bf16 %v4954_v38, %v4953_v31  ;;  %v4891_v45 = vsel %vm2773_vm11, %v4875_v14, %v7426_v61  ;;  %v4892_v28 = vsel %vm2773_vm11, %v4876_v52, %v7427_v54 }
 0x605   :  { %v7435_v59 = vpop.permute.xlu1 %7434  ;;  %v7432_v20 = vunpack.i.h.bf16 %v7430_v21  ;;  %v7431_v47 = vunpack.i.l.bf16 %v7430_v21 }
 0x606   :  { %5200 = vmatprep.mubr.bf16.mxu0 %v4970_v4  ;;  %v7437_v3 = vunpack.i.h.bf16 %v7435_v59  ;;  %v7436_v63 = vunpack.i.l.bf16 %v7435_v59 }
 0x607   :  { %5201 = vmatmul.mubr.bf16.vlgmr.msra.gmra.mrb[64].mxu0 %v4969_v34  ;;  %v4924_v49 = vsel %vm210_vm0, %v10290_v58, %v7432_v20  ;;  %v4923_v42 = vsel %vm210_vm0, %v10255_v6, %v7431_v47 }
 0x608   :  { %v7440_v35 = vpop.permute.xlu0 %7439  ;;  %v4907_v30 = vsel %vm2790_vm12, %v4891_v45, %v7436_v63  ;;  %v4908_v4 = vsel %vm2790_vm12, %v4892_v28, %v7437_v3 }
 0x609   :  { %v7450_v37 = vpop.permute.xlu1 %7449  ;;  %v7442_v1 = vunpack.i.h.bf16 %v7440_v35  ;;  %v7441_v16 = vunpack.i.l.bf16 %v7440_v35  ;;  %v4972_v54 = vpack.c.bf16 %v4908_v4, %v4907_v30 }
 0x60a   :  { %v7452_v6 = vunpack.i.h.bf16 %v7450_v37  ;;  %v7451_v61 = vunpack.i.l.bf16 %v7450_v37 }
 0x60b   :  { %v4939_v21 = vsel %vm2773_vm11, %v4923_v42, %v7441_v16  ;;  %v4940_v32 = vsel %vm2773_vm11, %v4924_v49, %v7442_v1 }
 0x60c   :  { %v7445_v8 = vpop.permute.xlu0 %7444  ;;  %v4878_v28 = vsel %vm210_vm0, %v10282_v48, %v7452_v6 }
 0x60d   :  { %v7447_v10 = vunpack.i.h.bf16 %v7445_v8  ;;  %v7446_v31 = vunpack.i.l.bf16 %v7445_v8  ;;  %v7455_v38 = vpop.permute.xlu1 %7454  ;;  %v4877_v8 = vsel %vm210_vm0, %v10274_v11, %v7451_v61 }
 0x60e   :  { %v7457_v35 = vunpack.i.h.bf16 %v7455_v38  ;;  %v7456_v20 = vunpack.i.l.bf16 %v7455_v38 }
 0x60f   :  { %v4955_v34 = vsel %vm2790_vm12, %v4939_v21, %v7446_v31  ;;  %v4956_v59 = vsel %vm2790_vm12, %v4940_v32, %v7447_v10 }
 0x610   :  { %v7460_v23 = vpop.permute.xlu0 %7459  ;;  %v4973_v58 = vpack.c.bf16 %v4956_v59, %v4955_v34  ;;  %v4893_v49 = vsel %vm2773_vm11, %v4877_v8, %v7456_v20  ;;  %v4894_v37 = vsel %vm2773_vm11, %v4878_v28, %v7457_v35 }
 0x611   :  { %v7465_v33 = vpop.permute.xlu1 %7464  ;;  %v7462_v1 = vunpack.i.h.bf16 %v7460_v23  ;;  %v7461_v16 = vunpack.i.l.bf16 %v7460_v23 }
 0x612   :  { %5208 = vmatprep.mubr.bf16.mxu0 %v4973_v58  ;;  %v7467_v52 = vunpack.i.h.bf16 %v7465_v33  ;;  %v7466_v3 = vunpack.i.l.bf16 %v7465_v33 }
 0x613   :  { %5209 = vmatmul.mubr.bf16.gmra.mrb[68].mxu0 %v4972_v54  ;;  %v4926_v10 = vsel %vm210_vm0, %v10307_v15, %v7462_v1  ;;  %v4925_v31 = vsel %vm210_vm0, %v10284_v7, %v7461_v16 }
 0x614   :  { %v7470_v47 = vpop.permute.xlu0 %7469  ;;  %v4909_v11 = vsel %vm2790_vm12, %v4893_v49, %v7466_v3  ;;  %v4910_v4 = vsel %vm2790_vm12, %v4894_v37, %v7467_v52 }
 0x615   :  { %v7480_v63 = vpop.permute.xlu1 %7479  ;;  %v7472_v14 = vunpack.i.h.bf16 %v7470_v47  ;;  %v7471_v45 = vunpack.i.l.bf16 %v7470_v47  ;;  %v4975_v58 = vpack.c.bf16 %v4910_v4, %v4909_v11 }
 0x616   :  { %v7482_v7 = vunpack.i.h.bf16 %v7480_v63  ;;  %v7481_v33 = vunpack.i.l.bf16 %v7480_v63 }
 0x617   :  { %v4941_v30 = vsel %vm2773_vm11, %v4925_v31, %v7471_v45  ;;  %v4942_v48 = vsel %vm2773_vm11, %v4926_v10, %v7472_v14 }
 0x618   :  { %v7475_v42 = vpop.permute.xlu0 %7474  ;;  %v4880_v14 = vsel %vm210_vm0, %v10310_v0, %v7482_v7  ;;  %v4879_v45 = vsel %vm210_vm0, %v10301_v46, %v7481_v33 }
 0x619   :  { %v7477_v38 = vunpack.i.h.bf16 %v7475_v42  ;;  %v7476_v21 = vunpack.i.l.bf16 %v7475_v42  ;;  %v7485_v32 = vpop.permute.xlu1 %7484 }
 0x61a   :  { %v7487_v6 = vunpack.i.h.bf16 %v7485_v32  ;;  %v7486_v61 = vunpack.i.l.bf16 %v7485_v32 }
 0x61b   :  { %v4957_v34 = vsel %vm2790_vm12, %v4941_v30, %v7476_v21  ;;  %v4958_v59 = vsel %vm2790_vm12, %v4942_v48, %v7477_v38 }
 0x61c   :  { %v7490_v23 = vpop.permute.xlu0 %7489  ;;  %v4976_v15 = vpack.c.bf16 %v4958_v59, %v4957_v34  ;;  %v4895_v28 = vsel %vm2773_vm11, %v4879_v45, %v7486_v61  ;;  %v4896_v63 = vsel %vm2773_vm11, %v4880_v14, %v7487_v6 }
 0x61d   :  { %v7505_v54 = vpop.permute.xlu1 %7504  ;;  %v7492_v20 = vunpack.i.h.bf16 %v7490_v23  ;;  %v7491_v47 = vunpack.i.l.bf16 %v7490_v23  ;;  %v4353_v23 = vld [vmem:[#allocation2 + $0xf7] sm:$0xff] }
 0x61e   :  { %5216 = vmatprep.mubr.bf16.mxu0 %v4976_v15  ;;  %v7507_v1 = vunpack.i.h.bf16 %v7505_v54  ;;  %v7506_v16 = vunpack.i.l.bf16 %v7505_v54 }
 0x61f   :  { %5217 = vmatmul.mubr.bf16.gmra.mrb[72].mxu0 %v4975_v58  ;;  %v4928_v37 = vsel %vm210_vm0, %v10333_v36, %v7492_v20  ;;  %v4927_v42 = vsel %vm210_vm0, %v10312_v12, %v7491_v47 }
 0x620   :  { %v7495_v35 = vpop.permute.xlu0 %7494  ;;  %v4911_v46 = vsel %vm2790_vm12, %v4895_v28, %v7506_v16  ;;  %v4912_v21 = vsel %vm2790_vm12, %v4896_v63, %v7507_v1 }
 0x621   :  { %v7497_v52 = vunpack.i.h.bf16 %v7495_v35  ;;  %v7496_v3 = vunpack.i.l.bf16 %v7495_v35  ;;  %v4978_v11 = vpack.c.bf16 %v4912_v21, %v4911_v46 }
 0x623   :  { %v7510_v49 = vpop.permute.xlu1 %7509  ;;  %v4943_v38 = vsel %vm2773_vm11, %v4927_v42, %v7496_v3  ;;  %v4944_v0 = vsel %vm2773_vm11, %v4928_v37, %v7497_v52 }
 0x624   :  { %v7500_v8 = vpop.permute.xlu0 %7499  ;;  %v7512_v34 = vunpack.i.h.bf16 %v7510_v49  ;;  %v7511_v59 = vunpack.i.l.bf16 %v7510_v49 }
 0x625   :  { %v7502_v10 = vunpack.i.h.bf16 %v7500_v8  ;;  %v7501_v31 = vunpack.i.l.bf16 %v7500_v8 }
 0x626   :  { %v4882_v1 = vsel %vm210_vm0, %v10350_v53, %v7512_v34  ;;  %v4881_v16 = vsel %vm210_vm0, %v4353_v23, %v7511_v59 }
 0x627   :  { %v4959_v32 = vsel %vm2790_vm12, %v4943_v38, %v7501_v31  ;;  %v4960_v30 = vsel %vm2790_vm12, %v4944_v0, %v7502_v10  ;;  %v7515_v36 = vpop.permute.xlu1 %7514 }
 0x628   :  { %v4979_v48 = vpack.c.bf16 %v4960_v30, %v4959_v32  ;;  %v7520_v12 = vpop.permute.xlu0 %7519  ;;  %v7517_v15 = vunpack.i.h.bf16 %v7515_v36  ;;  %v7516_v58 = vunpack.i.l.bf16 %v7515_v36 }
 0x629   :  { %v7522_v33 = vunpack.i.h.bf16 %v7520_v12  ;;  %v7521_v54 = vunpack.i.l.bf16 %v7520_v12 }
 0x62a   :  { %5224 = vmatprep.mubr.bf16.mxu0 %v4979_v48  ;;  %v4897_v52 = vsel %vm2773_vm11, %v4881_v16, %v7516_v58  ;;  %v4898_v3 = vsel %vm2773_vm11, %v4882_v1, %v7517_v15 }
 0x62b   :  { %5225 = vmatmul.mubr.bf16.gmra.mrb[76].mxu0 %v4978_v11  ;;  %v7525_v4 = vpop.permute.xlu1 %7524  ;;  %v4930_v45 = vsel %vm210_vm0, %v10366_v27, %v7522_v33  ;;  %v4929_v28 = vsel %vm210_vm0, %v10336_v44, %v7521_v54 }
 0x62c   :  { %v7527_v61 = vunpack.i.h.bf16 %v7525_v4  ;;  %v7526_v35 = vunpack.i.l.bf16 %v7525_v4 }
 0x62e   :  { %v4913_v42 = vsel %vm2790_vm12, %v4897_v52, %v7526_v35  ;;  %v4914_v10 = vsel %vm2790_vm12, %v4898_v3, %v7527_v61 }
 0x62f   :  { %v4981_v21 = vpack.c.bf16 %v4914_v10, %v4913_v42 }
 0x634   :  { %v7530_v7 = vpop.permute.xlu0 %7529 }
 0x635   :  { %v7540_v6 = vpop.permute.xlu1 %7539  ;;  %v7532_v20 = vunpack.i.h.bf16 %v7530_v7  ;;  %v7531_v47 = vunpack.i.l.bf16 %v7530_v7 }
 0x636   :  { %v7542_v44 = vunpack.i.h.bf16 %v7540_v6  ;;  %v7541_v32 = vunpack.i.l.bf16 %v7540_v6 }
 0x637   :  { %v4945_v37 = vsel %vm2773_vm11, %v4929_v28, %v7531_v47  ;;  %v4946_v53 = vsel %vm2773_vm11, %v4930_v45, %v7532_v20 }
 0x638   :  { %v7535_v14 = vpop.permute.xlu0 %7534  ;;  %v4884_v58 = vsel %vm210_vm0, %v10358_v43, %v7542_v44  ;;  %v4883_v7 = vsel %vm210_vm0, %v10345_v55, %v7541_v32 }
 0x639   :  { %v7537_v63 = vunpack.i.h.bf16 %v7535_v14  ;;  %v7536_v8 = vunpack.i.l.bf16 %v7535_v14  ;;  %v7545_v49 = vpop.permute.xlu1 %7544 }
 0x63a   :  { %v7547_v30 = vunpack.i.h.bf16 %v7545_v49  ;;  %v7546_v48 = vunpack.i.l.bf16 %v7545_v49 }
 0x63b   :  { %v4961_v31 = vsel %vm2790_vm12, %v4945_v37, %v7536_v8  ;;  %v4962_v38 = vsel %vm2790_vm12, %v4946_v53, %v7537_v63 }
 0x63c   :  { %v7550_v0 = vpop.permute.xlu0 %7549  ;;  %v4982_v27 = vpack.c.bf16 %v4962_v38, %v4961_v31  ;;  %v4899_v33 = vsel %vm2773_vm11, %v4883_v7, %v7546_v48  ;;  %v4900_v54 = vsel %vm2773_vm11, %v4884_v58, %v7547_v30 }
 0x63d   :  { %v7555_v46 = vpop.permute.xlu1 %7554  ;;  %v7552_v36 = vunpack.i.h.bf16 %v7550_v0  ;;  %v7551_v12 = vunpack.i.l.bf16 %v7550_v0 }
 0x63e   :  { %5232 = vmatprep.mubr.bf16.mxu0 %v4982_v27  ;;  %v7557_v34 = vunpack.i.h.bf16 %v7555_v46  ;;  %v7556_v59 = vunpack.i.l.bf16 %v7555_v46 }
 0x63f   :  { %5233 = vmatmul.mubr.bf16.gmra.mrb[80].mxu0 %v4981_v21  ;;  %v4932_v61 = vsel %vm210_vm0, %v10393_v9, %v7552_v36  ;;  %v4931_v35 = vsel %vm210_vm0, %v10360_v19, %v7551_v12 }
 0x640   :  { %v7560_v11 = vpop.permute.xlu0 %7559  ;;  %v4915_v55 = vsel %vm2790_vm12, %v4899_v33, %v7556_v59  ;;  %v4916_v52 = vsel %vm2790_vm12, %v4900_v54, %v7557_v34 }
 0x641   :  { %v7570_v4 = vpop.permute.xlu1 %7569  ;;  %v7562_v23 = vunpack.i.h.bf16 %v7560_v11  ;;  %v7561_v15 = vunpack.i.l.bf16 %v7560_v11  ;;  %v4984_v63 = vpack.c.bf16 %v4916_v52, %v4915_v55 }
 0x642   :  { %v7572_v19 = vunpack.i.h.bf16 %v7570_v4  ;;  %v7571_v8 = vunpack.i.l.bf16 %v7570_v4 }
 0x643   :  { %v4947_v16 = vsel %vm2773_vm11, %v4931_v35, %v7561_v15  ;;  %v4948_v43 = vsel %vm2773_vm11, %v4932_v61, %v7562_v23 }
 0x644   :  { %v7565_v6 = vpop.permute.xlu0 %7564  ;;  %v4886_v21 = vsel %vm210_vm0, %v10385_v41, %v7572_v19  ;;  %v4885_v44 = vsel %vm210_vm0, %v10377_v40, %v7571_v8 }
 0x645   :  { %v7567_v20 = vunpack.i.h.bf16 %v7565_v6  ;;  %v7566_v47 = vunpack.i.l.bf16 %v7565_v6  ;;  %v7575_v1 = vpop.permute.xlu1 %7574 }
 0x646   :  { %v7577_v49 = vunpack.i.h.bf16 %v7575_v1  ;;  %v7576_v37 = vunpack.i.l.bf16 %v7575_v1 }
 0x647   :  { %v4963_v3 = vsel %vm2790_vm12, %v4947_v16, %v7566_v47  ;;  %v4964_v14 = vsel %vm2790_vm12, %v4948_v43, %v7567_v20 }
 0x648   :  { %v7580_v45 = vpop.permute.xlu0 %7579  ;;  %v4985_v9 = vpack.c.bf16 %v4964_v14, %v4963_v3  ;;  %v4901_v32 = vsel %vm2773_vm11, %v4885_v44, %v7576_v37  ;;  %v4902_v30 = vsel %vm2773_vm11, %v4886_v21, %v7577_v49  ;;  %v7689_v21 = vld [vmem:[#allocation21 + $0x8] sm:$0xff]  }
 0x649   :  { %v7585_v28 = vpop.permute.xlu1 %7584  ;;  %v7582_v42 = vunpack.i.h.bf16 %v7580_v45  ;;  %v7581_v10 = vunpack.i.l.bf16 %v7580_v45 }
 0x64a   :  { %5240 = vmatprep.mubr.bf16.mxu0 %v4985_v9  ;;  %v7587_v38 = vunpack.i.h.bf16 %v7585_v28  ;;  %v7586_v0 = vunpack.i.l.bf16 %v7585_v28 }
 0x64b   :  { %5241 = vmatmul.mubr.bf16.gmra.mrb[84].mxu0 %v4984_v63  ;;  %v4934_v11 = vsel %vm210_vm0, %v10410_v25, %v7582_v42  ;;  %v4933_v36 = vsel %vm210_vm0, %v10387_v17, %v7581_v10 }
 0x64c   :  { %v7590_v53 = vpop.permute.xlu0 %7589  ;;  %v4917_v40 = vsel %vm2790_vm12, %v4901_v32, %v7586_v0  ;;  %v4918_v23 = vsel %vm2790_vm12, %v4902_v30, %v7587_v38 }
 0x64d   :  { %v7600_v31 = vpop.permute.xlu1 %7599  ;;  %v7592_v27 = vunpack.i.h.bf16 %v7590_v53  ;;  %v7591_v46 = vunpack.i.l.bf16 %v7590_v53  ;;  %v4987_v33 = vpack.c.bf16 %v4918_v23, %v4917_v40 }
 0x64e   :  { %v7602_v17 = vunpack.i.h.bf16 %v7600_v31  ;;  %v7601_v54 = vunpack.i.l.bf16 %v7600_v31 }
 0x64f   :  { %v4949_v59 = vsel %vm2773_vm11, %v4933_v36, %v7591_v46  ;;  %v4950_v41 = vsel %vm2773_vm11, %v4934_v11, %v7592_v27  ;;  %v7688_v46 = vld [vmem:[#allocation21] sm:$0xff]  }
 0x650   :  { %v7595_v48 = vpop.permute.xlu0 %7594  ;;  %v4888_v3 = vsel %vm210_vm0, %v10413_v39, %v7602_v17  ;;  %v4887_v14 = vsel %vm210_vm0, %v10404_v13, %v7601_v54  ;;  %6172 = vmatprep.subr.bf16.mxu1 %v7688_v46 }
 0x651   :  { %v7597_v12 = vunpack.i.h.bf16 %v7595_v48  ;;  %v7596_v4 = vunpack.i.l.bf16 %v7595_v48  ;;  %v7605_v34 = vpop.permute.xlu1 %7604  ;;  %6173 = vmatpush3.bf16.msra.mxu1 %v7688_v46 }
 0x652   :  { %v7607_v61 = vunpack.i.h.bf16 %v7605_v34  ;;  %v7606_v35 = vunpack.i.l.bf16 %v7605_v34  ;;  %6174 = vmatprep.subr.bf16.mxu1 %v7689_v21 }
 0x653   :  { %v4965_v15 = vsel %vm2790_vm12, %v4949_v59, %v7596_v4  ;;  %v4966_v58 = vsel %vm2790_vm12, %v4950_v41, %v7597_v12 }
 0x654   :  { %v7610_v7 = vpop.permute.xlu0 %7609  ;;  %v4988_v25 = vpack.c.bf16 %v4966_v58, %v4965_v15  ;;  %v4903_v45 = vsel %vm2773_vm11, %v4887_v14, %v7606_v35  ;;  %v4904_v9 = vsel %vm2773_vm11, %v4888_v3, %v7607_v61  ;;  %v10581_v15 = vld [vmem:[#allocation20] ss:$0 sm:$0xff]  ;;  %v10738_v35 = vmax.f32 %v9763_v26, 0.0 }
 0x655   :  { %v7625_v6 = vpop.permute.xlu1 %7624  ;;  %v7612_v47 = vunpack.i.h.bf16 %v7610_v7  ;;  %v7611_v1 = vunpack.i.l.bf16 %v7610_v7  ;;  %6175 = vmatpush3.bf16.msra.mxu1 %v7689_v21 }
 0x656   :  { %5248 = vmatprep.mubr.bf16.mxu0 %v4988_v25  ;;  %v7627_v16 = vunpack.i.h.bf16 %v7625_v6  ;;  %v7626_v43 = vunpack.i.l.bf16 %v7625_v6 }
 0x657   :  { %5249 = vmatmul.mubr.bf16.gmra.mrb[88].mxu0 %v4987_v33  ;;  %v4936_v63 = vsel %vm210_vm0, %v10430_v50, %v7612_v47  ;;  %v4935_v19 = vsel %vm210_vm0, %v10415_v29, %v7611_v1  ;;  %v10739_v1 = vmax.f32 %v9767_v24, 0.0 }
 0x658   :  { %v7615_v20 = vpop.permute.xlu0 %7614  ;;  %v4919_v53 = vsel %vm2790_vm12, %v4903_v45, %v7626_v43  ;;  %v4920_v13 = vsel %vm2790_vm12, %v4904_v9, %v7627_v16 }
 0x659   :  { %v7617_v55 = vunpack.i.h.bf16 %v7615_v20  ;;  %v7616_v52 = vunpack.i.l.bf16 %v7615_v20  ;;  %v4990_v38 = vpack.c.bf16 %v4920_v13, %v4919_v53 }
 0x65b   :  { %v4951_v37 = vsel %vm2773_vm11, %v4935_v19, %v7616_v52  ;;  %v4952_v39 = vsel %vm2773_vm11, %v4936_v63, %v7617_v55 }
 0x65c   :  { %v7620_v28 = vpop.permute.xlu0 %7619 }
 0x65d   :  { %v7622_v8 = vunpack.i.h.bf16 %v7620_v28  ;;  %v7621_v49 = vunpack.i.l.bf16 %v7620_v28 }
 0x65f   :  { %v4967_v42 = vsel %vm2790_vm12, %v4951_v37, %v7621_v49  ;;  %v4968_v10 = vsel %vm2790_vm12, %v4952_v39, %v7622_v8  ;;  %v10740_v49 = vmax.f32 %v9796_v60, 0.0  ;;  %v10741_v39 = vmax.f32 %v9801_v56, 0.0 }
 0x660   :  { %v4991_v31 = vpack.c.bf16 %v4968_v10, %v4967_v42 }
 0x662   :  { %5256 = vmatprep.mubr.bf16.mxu0 %v4991_v31 }
 0x663   :  { %5257 = vmatmul.mubr.bf16.gmra.mrb[92].mxu0 %v4990_v38 }
 0x668   :  { %v6158_v50 = vpop.f32.mrb[48].mxu1 }
 0x669   :  { %v5299_v29 = vpop.f32.mrb[49].mxu1 }
 0x66a   :  { %v6159_v0 = vpop.f32.mrb[50].mxu1 }
 0x66b   :  { %v5302_v27 = vpop.f32.mrb[51].mxu1 }
 0x677   :  { %v10561_v44 = vpop.f32.mrb[52].mxu1 }
 0x678   :  { %v5315_v32 = vpop.f32.mrb[53].mxu1 }
 0x679   :  { %v10563_v30 = vpop.f32.mrb[54].mxu1 }
 0x67a   :  { %v5318_v48 = vpop.f32.mrb[55].mxu1 }
 0x6a0   :  { %v10565_v11 = vpop.f32.mrb[56].mxu1 }
 0x6a1   :  { %v10567_v36 = vpop.f32.mrb[57].mxu1 }
 0x6a2   :  { %v10569_v12 = vpop.f32.mrb[58].mxu1 }
 0x6a3   :  { %v10571_v4 = vpop.f32.mrb[59].mxu1 }
 0x6af   :  { %v10573_v34 = vpop.f32.mrb[60].mxu1 }
 0x6b0   :  { %v10575_v59 = vpop.f32.mrb[61].mxu1 }
 0x6b1   :  { %v10577_v41 = vpop.f32.mrb[62].mxu1 }
 0x6b2   :  { %v10579_v40 = vpop.f32.mrb[63].mxu1 }
 0x6da   :  { %v6000_v23 = vpop.f32.mrb[64].mxu0 }
 0x6db   :  { %v6001_v58 = vpop.f32.mrb[65].mxu0 }
 0x6dc   :  { %v6002_v7 = vadd.f32 %v6001_v58, %v6000_v23  ;;  %v6003_v25 = vpop.f32.mrb[66].mxu0 }
 0x6dd   :  { %v6004_v33 = vpop.f32.mrb[67].mxu0 }
 0x6de   :  { %v5203_v17 = vadd.f32 %v6002_v7, %v10581_v15  ;;  %v6005_v54 = vadd.f32 %v6004_v33, %v6003_v25  ;;  %v10743_v7 = vmax.f32 %v9845_v22, 0.0  ;;  %v10744_v22 = vmax.f32 %v9858_v18, 0.0 }
 0x6e0   :  { %v5300_v6 = vadd.f32 %v5299_v29, %v5203_v17  ;;  %v5206_v61 = vadd.f32 %v6005_v54, %v10581_v15 }
 0x6e2   :  { %v5362_v20 = vadd.f32 %v5300_v6, %v10738_v35  ;;  %v5303_v47 = vadd.f32 %v5302_v27, %v5206_v61 }
 0x6e4   :  { %v5363_v16 = vadd.f32 %v5303_v47, %v10739_v1  ;;  %v5378_v43 = vmax.f32 %v5362_v20, 0.0 }
 0x6e6   :  { %v5379_v55 = vmax.f32 %v5363_v16, 0.0  ;;  %v6006_v52 = vpop.f32.mrb[68].mxu0 }
 0x6e7   :  { %v6007_v3 = vpop.f32.mrb[69].mxu0 }
 0x6e8   :  { %v6008_v14 = vadd.f32 %v6007_v3, %v6006_v52  ;;  %v6009_v45 = vpop.f32.mrb[70].mxu0  ;;  %v5394_v9 = vpack.c.bf16 %v5379_v55, %v5378_v43  ;;  %v10745_v55 = vmax.f32 %v9863_v57, 0.0  ;;  %v10746_v57 = vmax.f32 %v9890_v51, 0.0 }
 0x6e9   :  { %v6010_v28 = vpop.f32.mrb[71].mxu0 }
 0x6ea   :  { %v5211_v63 = vadd.f32 %v6008_v14, %v10581_v15  ;;  %v6011_v19 = vadd.f32 %v6010_v28, %v6009_v45  ;;  %6176 = vmatprep.mubr.msk.bf16.mxu1 %vm210_vm0, %v5394_v9 }
 0x6ec   :  { %v5308_v8 = vadd.f32 %v6158_v50, %v5211_v63  ;;  %v5214_v26 = vadd.f32 %v6011_v19, %v10581_v15 }
 0x6ee   :  { %v5364_v24 = vadd.f32 %v5308_v8, %v10740_v49  ;;  %v5311_v37 = vadd.f32 %v6159_v0, %v5214_v26  ;;  %v10742_v0 = vmax.f32 %v9840_v5, 0.0 }
 0x6f0   :  { %v5365_v53 = vadd.f32 %v5311_v37, %v10741_v39  ;;  %v5380_v13 = vmax.f32 %v5364_v24, 0.0  ;;  %v10747_v37 = vmax.f32 %v9896_v62, 0.0  ;;  %v10748_v62 = vmax.f32 %v9943_v2, 0.0 }
 0x6f2   :  { %v5381_v42 = vmax.f32 %v5365_v53, 0.0  ;;  %v6012_v10 = vpop.f32.mrb[72].mxu0 }
 0x6f3   :  { %v6013_v31 = vpop.f32.mrb[73].mxu0 }
 0x6f4   :  { %v5395_v38 = vpack.c.bf16 %v5381_v42, %v5380_v13  ;;  %v6014_v29 = vadd.f32 %v6013_v31, %v6012_v10  ;;  %v6015_v27 = vpop.f32.mrb[74].mxu0 }
 0x6f5   :  { %v6016_v46 = vpop.f32.mrb[75].mxu0 }
 0x6f6   :  { %v5219_v21 = vadd.f32 %v6014_v29, %v10581_v15  ;;  %v6017_v50 = vadd.f32 %v6016_v46, %v6015_v27  ;;  %6177 = vmatmul.mubr.msk.bf16.vlgmr.msra.gmra.mrb[64].mxu1 %vm210_vm0, %v5395_v38 }
 0x6f8   :  { %v5316_v23 = vadd.f32 %v5315_v32, %v5219_v21  ;;  %v5222_v60 = vadd.f32 %v6017_v50, %v10581_v15 }
 0x6fa   :  { %v5366_v56 = vadd.f32 %v5316_v23, %v10742_v0  ;;  %v5319_v58 = vadd.f32 %v5318_v48, %v5222_v60  ;;  %v10749_v23 = vld [vmem:[#allocation33_spill] sm:$0xff] }
 0x6fb   :  { %v10750_v60 = vmax.f32 %v10749_v23, 0.0 }
 0x6fc   :  { %v5367_v25 = vadd.f32 %v5319_v58, %v10743_v7  ;;  %v5382_v33 = vmax.f32 %v5366_v56, 0.0 }
 0x6fe   :  { %v5383_v17 = vmax.f32 %v5367_v25, 0.0  ;;  %v6018_v54 = vpop.f32.mrb[76].mxu0 }
 0x6ff   :  { %v6019_v6 = vpop.f32.mrb[77].mxu0 }
 0x700   :  { %v6020_v61 = vadd.f32 %v6019_v6, %v6018_v54  ;;  %v6021_v35 = vpop.f32.mrb[78].mxu0  ;;  %v5396_v20 = vpack.c.bf16 %v5383_v17, %v5382_v33 }
 0x701   :  { %v6022_v47 = vpop.f32.mrb[79].mxu0 }
 0x702   :  { %v5227_v1 = vadd.f32 %v6020_v61, %v10581_v15  ;;  %v6023_v32 = vadd.f32 %v6022_v47, %v6021_v35  ;;  %6180 = vmatprep.mubr.msk.bf16.mxu1 %vm210_vm0, %v5396_v20  ;;  %v10751_v35 = vld [vmem:[#allocation34_spill] sm:$0xff] }
 0x703   :  { %v10752_v20 = vmax.f32 %v10751_v35, 0.0 }
 0x704   :  { %v5324_v5 = vadd.f32 %v10561_v44, %v5227_v1  ;;  %v5230_v48 = vadd.f32 %v6023_v32, %v10581_v15  ;;  %v10753_v32 = vld [vmem:[#allocation35_spill] sm:$0xff] }
 0x706   :  { %v5368_v16 = vadd.f32 %v5324_v5, %v10744_v22  ;;  %v5327_v43 = vadd.f32 %v10563_v30, %v5230_v48  ;;  %v10754_v5 = vmax.f32 %v10753_v32, 0.0 }
 0x708   :  { %v5369_v52 = vadd.f32 %v5327_v43, %v10745_v55  ;;  %v5384_v3 = vmax.f32 %v5368_v16, 0.0 }
 0x70a   :  { %v5385_v14 = vmax.f32 %v5369_v52, 0.0 }
 0x70c   :  { %v5397_v45 = vpack.c.bf16 %v5385_v14, %v5384_v3 }
 0x70e   :  { %6181 = vmatmul.mubr.msk.bf16.gmra.mrb[68].mxu1 %vm210_vm0, %v5397_v45 }
 0x712   :  { %v6024_v9 = vpop.f32.mrb[80].mxu0 }
 0x713   :  { %v6025_v28 = vpop.f32.mrb[81].mxu0 }
 0x714   :  { %v6026_v63 = vadd.f32 %v6025_v28, %v6024_v9  ;;  %v6027_v19 = vpop.f32.mrb[82].mxu0 }
 0x715   :  { %v6028_v44 = vpop.f32.mrb[83].mxu0 }
 0x716   :  { %v5235_v8 = vadd.f32 %v6026_v63, %v10581_v15  ;;  %v6029_v26 = vadd.f32 %v6028_v44, %v6027_v19  ;;  %v10755_v63 = vld [vmem:[#allocation36_spill] sm:$0xff] }
 0x717   :  { %v10756_v19 = vmax.f32 %v10755_v63, 0.0 }
 0x718   :  { %v5332_v18 = vadd.f32 %v10567_v36, %v5235_v8  ;;  %v5238_v30 = vadd.f32 %v6029_v26, %v10581_v15  ;;  %v10757_v26 = vld [vmem:[#allocation37_spill] sm:$0xff] }
 0x71a   :  { %v5370_v49 = vadd.f32 %v5332_v18, %v10746_v57  ;;  %v5335_v24 = vadd.f32 %v10571_v4, %v5238_v30  ;;  %v10758_v18 = vmax.f32 %v10757_v26, 0.0 }
 0x71c   :  { %v5371_v39 = vadd.f32 %v5335_v24, %v10747_v37  ;;  %v5386_v53 = vmax.f32 %v5370_v49, 0.0  ;;  %v10649_v37 = vld [vmem:[#allocation23] ss:$0 sm:$0xff] }
 0x71e   :  { %v5387_v13 = vmax.f32 %v5371_v39, 0.0  ;;  %v6030_v42 = vpop.f32.mrb[84].mxu0 }
 0x71f   :  { %v6031_v10 = vpop.f32.mrb[85].mxu0 }
 0x720   :  { %v6032_v31 = vadd.f32 %v6031_v10, %v6030_v42  ;;  %v6033_v38 = vpop.f32.mrb[86].mxu0  ;;  %v5398_v29 = vpack.c.bf16 %v5387_v13, %v5386_v53 }
 0x721   :  { %v6034_v27 = vpop.f32.mrb[87].mxu0 }
 0x722   :  { %v5243_v36 = vadd.f32 %v6032_v31, %v10581_v15  ;;  %v6035_v46 = vadd.f32 %v6034_v27, %v6033_v38  ;;  %6184 = vmatprep.mubr.msk.bf16.mxu1 %vm210_vm0, %v5398_v29 }
 0x724   :  { %v5340_v51 = vadd.f32 %v10565_v11, %v5243_v36  ;;  %v5246_v4 = vadd.f32 %v6035_v46, %v10581_v15 }
 0x726   :  { %v5372_v21 = vadd.f32 %v5340_v51, %v10748_v62  ;;  %v5343_v50 = vadd.f32 %v10569_v12, %v5246_v4 }
 0x728   :  { %v5373_v0 = vadd.f32 %v5343_v50, %v10750_v60  ;;  %v5388_v56 = vmax.f32 %v5372_v21, 0.0 }
 0x72a   :  { %v5389_v58 = vmax.f32 %v5373_v0, 0.0  ;;  %v6036_v7 = vpop.f32.mrb[88].mxu0 }
 0x72b   :  { %v6037_v25 = vpop.f32.mrb[89].mxu0 }
 0x72c   :  { %v6038_v33 = vadd.f32 %v6037_v25, %v6036_v7  ;;  %v6039_v17 = vpop.f32.mrb[90].mxu0  ;;  %v5399_v54 = vpack.c.bf16 %v5389_v58, %v5388_v56 }
 0x72d   :  { %v6040_v6 = vpop.f32.mrb[91].mxu0 }
 0x72e   :  { %v5251_v11 = vadd.f32 %v6038_v33, %v10581_v15  ;;  %v6041_v61 = vadd.f32 %v6040_v6, %v6039_v17  ;;  %6185 = vmatmul.mubr.msk.bf16.gmra.mrb[72].mxu1 %vm210_vm0, %v5399_v54 }
 0x730   :  { %v5348_v2 = vadd.f32 %v10575_v59, %v5251_v11  ;;  %v5254_v12 = vadd.f32 %v6041_v61, %v10581_v15 }
 0x732   :  { %v5374_v47 = vadd.f32 %v5348_v2, %v10752_v20  ;;  %v5351_v1 = vadd.f32 %v10579_v40, %v5254_v12 }
 0x734   :  { %v5375_v48 = vadd.f32 %v5351_v1, %v10754_v5  ;;  %v5390_v22 = vmax.f32 %v5374_v47, 0.0 }
 0x736   :  { %v5391_v16 = vmax.f32 %v5375_v48, 0.0  ;;  %v6042_v43 = vpop.f32.mrb[92].mxu0 }
 0x737   :  { %v6043_v55 = vpop.f32.mrb[93].mxu0 }
 0x738   :  { %v6044_v52 = vadd.f32 %v6043_v55, %v6042_v43  ;;  %v6045_v3 = vpop.f32.mrb[94].mxu0  ;;  %v5400_v14 = vpack.c.bf16 %v5391_v16, %v5390_v22 }
 0x739   :  { %v6046_v45 = vpop.f32.mrb[95].mxu0 }
 0x73a   :  { %v5259_v59 = vadd.f32 %v6044_v52, %v10581_v15  ;;  %v6047_v9 = vadd.f32 %v6046_v45, %v6045_v3  ;;  %6188 = vmatprep.mubr.msk.bf16.mxu1 %vm210_vm0, %v5400_v14 }
 0x73c   :  { %v5356_v28 = vadd.f32 %v10573_v34, %v5259_v59  ;;  %v5262_v40 = vadd.f32 %v6047_v9, %v10581_v15 }
 0x73e   :  { %v5376_v44 = vadd.f32 %v5356_v28, %v10756_v19  ;;  %v5359_v8 = vadd.f32 %v10577_v41, %v5262_v40 }
 0x740   :  { %v5377_v30 = vadd.f32 %v5359_v8, %v10758_v18  ;;  %v5392_v57 = vmax.f32 %v5376_v44, 0.0 }
 0x742   :  { %v5393_v49 = vmax.f32 %v5377_v30, 0.0 }
 0x744   :  { %v5401_v24 = vpack.c.bf16 %v5393_v49, %v5392_v57 }
 0x746   :  { %6189 = vmatmul.mubr.msk.bf16.gmra.mrb[76].mxu1 %vm210_vm0, %v5401_v24 }
 0x7c9   :  { %v6178_v39 = vpop.f32.mrb[64].mxu1 }
 0x7ca   :  { %v5492_v34 = vadd.f32 %v6178_v39, %v10649_v37  ;;  %v5483_v53 = vpop.f32.mrb[65].mxu1 }
 0x7cb   :  { %v5484_v15 = vadd.f32 %v10649_v37, %v5483_v53  ;;  %v6179_v13 = vpop.f32.mrb[66].mxu1 }
 0x7cc   :  { %v5548_v42 = vmax.f32 %v5492_v34, 0.0  ;;  %v5495_v41 = vadd.f32 %v6179_v13, %v10649_v37  ;;  %v5486_v10 = vpop.f32.mrb[67].mxu1 }
 0x7cd   :  { %v5546_v31 = vmax.f32 %v5484_v15, 0.0  ;;  %v5487_v38 = vadd.f32 %v10649_v37, %v5486_v10 }
 0x7ce   :  { %v5800_v29 = vpack.c.bf16 %v5548_v42, %v5548_v42  ;;  %v5549_v27 = vmax.f32 %v5495_v41, 0.0 }
 0x7cf   :  { %v5798_v36 = vpack.c.bf16 %v5546_v31, %v5546_v31  ;;  %v5547_v46 = vmax.f32 %v5487_v38, 0.0 }
 0x7d0   :  { %5629 = vst.msk [vmem:[#allocation24 + $0x8] sm:$0xf] %vm5626_vm13, %v5800_v29  ;;  %v5801_v51 = vpack.c.bf16 %v5549_v27, %v5549_v27 }
 0x7d1   :  { %5627 = vst.msk [vmem:[#allocation24] sm:$0xf] %vm5626_vm13, %v5798_v36  ;;  %v5799_v4 = vpack.c.bf16 %v5547_v46, %v5547_v46 }
 0x7d2   :  { %5630 = vst.msk [vmem:[#allocation24 + $0xc] sm:$0xf] %vm5626_vm13, %v5801_v51 }
 0x7d3   :  { %5628 = vst.msk [vmem:[#allocation24 + $0x4] sm:$0xf] %vm5626_vm13, %v5799_v4 }
 0x7e1   :  { %v6182_v62 = vpop.f32.mrb[68].mxu1 }
 0x7e2   :  { %v5508_v21 = vadd.f32 %v6182_v62, %v10649_v37  ;;  %v5499_v50 = vpop.f32.mrb[69].mxu1 }
 0x7e3   :  { %v5500_v23 = vadd.f32 %v10649_v37, %v5499_v50  ;;  %v6183_v60 = vpop.f32.mrb[70].mxu1 }
 0x7e4   :  { %v5552_v0 = vmax.f32 %v5508_v21, 0.0  ;;  %v5511_v56 = vadd.f32 %v6183_v60, %v10649_v37  ;;  %v5502_v58 = vpop.f32.mrb[71].mxu1 }
 0x7e5   :  { %v5550_v7 = vmax.f32 %v5500_v23, 0.0  ;;  %v5503_v25 = vadd.f32 %v10649_v37, %v5502_v58 }
 0x7e6   :  { %v5804_v33 = vpack.c.bf16 %v5552_v0, %v5552_v0  ;;  %v5553_v17 = vmax.f32 %v5511_v56, 0.0 }
 0x7e7   :  { %v5802_v54 = vpack.c.bf16 %v5550_v7, %v5550_v7  ;;  %v5551_v6 = vmax.f32 %v5503_v25, 0.0 }
 0x7e8   :  { %5633 = vst.msk [vmem:[#allocation24 + $0x18] sm:$0xf] %vm5626_vm13, %v5804_v33  ;;  %v5805_v11 = vpack.c.bf16 %v5553_v17, %v5553_v17 }
 0x7e9   :  { %5631 = vst.msk [vmem:[#allocation24 + $0x10] sm:$0xf] %vm5626_vm13, %v5802_v54  ;;  %v5803_v61 = vpack.c.bf16 %v5551_v6, %v5551_v6 }
 0x7ea   :  { %5634 = vst.msk [vmem:[#allocation24 + $0x1c] sm:$0xf] %vm5626_vm13, %v5805_v11 }
 0x7eb   :  { %5632 = vst.msk [vmem:[#allocation24 + $0x14] sm:$0xf] %vm5626_vm13, %v5803_v61 }
 0x801   :  { %v6186_v2 = vpop.f32.mrb[72].mxu1 }
 0x802   :  { %v5524_v12 = vadd.f32 %v6186_v2, %v10649_v37  ;;  %v5515_v35 = vpop.f32.mrb[73].mxu1 }
 0x803   :  { %v5516_v20 = vadd.f32 %v10649_v37, %v5515_v35  ;;  %v6187_v47 = vpop.f32.mrb[74].mxu1 }
 0x804   :  { %v5556_v1 = vmax.f32 %v5524_v12, 0.0  ;;  %v5527_v32 = vadd.f32 %v6187_v47, %v10649_v37  ;;  %v5518_v5 = vpop.f32.mrb[75].mxu1 }
 0x805   :  { %v5554_v48 = vmax.f32 %v5516_v20, 0.0  ;;  %v5519_v22 = vadd.f32 %v10649_v37, %v5518_v5 }
 0x806   :  { %v5808_v16 = vpack.c.bf16 %v5556_v1, %v5556_v1  ;;  %v5557_v43 = vmax.f32 %v5527_v32, 0.0 }
 0x807   :  { %v5806_v55 = vpack.c.bf16 %v5554_v48, %v5554_v48  ;;  %v5555_v52 = vmax.f32 %v5519_v22, 0.0 }
 0x808   :  { %5637 = vst.msk [vmem:[#allocation24 + $0x28] sm:$0xf] %vm5626_vm13, %v5808_v16  ;;  %v5809_v3 = vpack.c.bf16 %v5557_v43, %v5557_v43 }
 0x809   :  { %5635 = vst.msk [vmem:[#allocation24 + $0x20] sm:$0xf] %vm5626_vm13, %v5806_v55  ;;  %v5807_v14 = vpack.c.bf16 %v5555_v52, %v5555_v52 }
 0x80a   :  { %5638 = vst.msk [vmem:[#allocation24 + $0x2c] sm:$0xf] %vm5626_vm13, %v5809_v3 }
 0x80b   :  { %5636 = vst.msk [vmem:[#allocation24 + $0x24] sm:$0xf] %vm5626_vm13, %v5807_v14 }
 0x819   :  { %v6190_v45 = vpop.f32.mrb[76].mxu1 }
 0x81a   :  { %v5540_v59 = vadd.f32 %v6190_v45, %v10649_v37  ;;  %v5531_v9 = vpop.f32.mrb[77].mxu1 }
 0x81b   :  { %v5532_v28 = vadd.f32 %v10649_v37, %v5531_v9  ;;  %v6191_v40 = vpop.f32.mrb[78].mxu1 }
 0x81c   :  { %v5560_v63 = vmax.f32 %v5540_v59, 0.0  ;;  %v5543_v19 = vadd.f32 %v6191_v40, %v10649_v37  ;;  %v5534_v44 = vpop.f32.mrb[79].mxu1 }
 0x81d   :  { %v5558_v8 = vmax.f32 %v5532_v28, 0.0  ;;  %v5535_v26 = vadd.f32 %v10649_v37, %v5534_v44 }
 0x81e   :  { %v5812_v18 = vpack.c.bf16 %v5560_v63, %v5560_v63  ;;  %v5561_v30 = vmax.f32 %v5543_v19, 0.0 }
 0x81f   :  { %v5810_v57 = vpack.c.bf16 %v5558_v8, %v5558_v8  ;;  %v5559_v49 = vmax.f32 %v5535_v26, 0.0 }
 0x820   :  { %5641 = vst.msk [vmem:[#allocation24 + $0x38] sm:$0xf] %vm5626_vm13, %v5812_v18  ;;  %v5813_v24 = vpack.c.bf16 %v5561_v30, %v5561_v30 }
 0x821   :  { %5639 = vst.msk [vmem:[#allocation24 + $0x30] sm:$0xf] %vm5626_vm13, %v5810_v57  ;;  %v5811_v39 = vpack.c.bf16 %v5559_v49, %v5559_v49 }
 0x822   :  { %5642 = vst.msk [vmem:[#allocation24 + $0x3c] sm:$0xf] %vm5626_vm13, %v5813_v24 }
 0x823   :  { %5640 = vst.msk [vmem:[#allocation24 + $0x34] sm:$0xf] %vm5626_vm13, %v5811_v39 }
 0x824   :  { %7988 = shalt.err (!%p7985_p10)
}
 0x825   :  { %s7989_s20 = scalar_lea.hbm %s10711_s13, 1024 }
 0x826   :  { %p7990_p11 = scmp.ne.s32.totalorder %s10711_s13, %s7989_s20  ;;  %p7993_p12 = scmp.lt.u32.totalorder %s7989_s20, %s10711_s13 }
 0x828   :  { %p7995_p13 = pnand %p7993_p12, %p7990_p11 }
 0x82a   :  { %7998 = shalt.err (!%p7995_p13)
}
 0x82b   :  { %5654 = dma.vmem_to_hbm [thread:$0]  %s5649_s7, 1024, %s10711_s13, [#allocation5], %s8016_s18, %s8016_s18, %s8017_s19  }
 0x82c   :  { %8013 = dma.done.wait [#allocation5], 1024  }
 0x82d   :  { %8014 = vsyncadd [#allocation5], 4294966272 }
 0x82e   :  { %5658 = vsyncpa [#allocation4], 1 }
 0x82f   :  { %5659 = vsyncpa [#allocation7], 1 }
 0x830   :  { %5660 = vsyncpa [#allocation10], 1 }
 0x831   :  { %5661 = vsyncpa [#allocation13], 1 }
 0x832   :  { %5662 = vsyncpa [#allocation16], 1 }
 0x833   :  { %5663 = vsyncpa [#allocation19], 1 }
 0x834   :  { %5664 = vsyncpa [#allocation22], 1 }
 0x835   :  { %5665 = vsyncpa [#allocation5], 1 }

</bundles_post_ra>
